<compile_context>
chip_gen: v5e
topology: v5e:2x2
jax: 0.10.0
libtpu: 0.0.40
codegen_flags: <defaults>
</compile_context>

<pallas_src>
import math
from functools import partial

import numpy as np
import jax
import jax.numpy as jnp
from jax.experimental import pallas as pl
from jax.experimental.pallas import tpu as pltpu


def _round_up(x, m):
    return ((x + m - 1) // m) * m


# ----------------------------------------------------------------------------
# Kernel A: Time2Vec (SineActivation) + rotate (+ optional LayerNorm), fused.
# Full-width (TR, D) layout: the re/im half swap is one lane concat, stores are
# lane dense.
# ----------------------------------------------------------------------------
def _t2v_rotate(x, xs, twf, tbf, dh):
    # Time2Vec relation (duplicated over both halves via duplicated twf/tbf).
    lin = xs * twf + tbf                                      # (r, D)
    lane = jax.lax.broadcasted_iota(jnp.int32, lin.shape, 1)
    half = jnp.where(lane < dh, lane, lane - dh)
    rel = jnp.where(half < dh - 1, jnp.sin(lin), lin)         # sin features + linear last
    # rotate(): embedding_range = 26/dh, phase = relation / (embedding_range/pi)
    phase = rel * (math.pi * dh / 26.0)
    cosp = jnp.cos(phase)
    sinp = jnp.sin(phase)
    x_swap = jnp.concatenate([x[:, dh:], x[:, :dh]], axis=-1)  # [im, re]
    sgn = jnp.where(lane < dh, -1.0, 1.0)                      # re: -im*sin, im: +re*sin
    return x * cosp + x_swap * sinp * sgn


def rotate_kernel(x_ref, xs_ref, twf_ref, tbf_ref, o_ref, *, dh):
    o_ref[...] = _t2v_rotate(x_ref[...], xs_ref[...], twf_ref[...], tbf_ref[...], dh)


def rotate_ln_kernel(x_ref, xs_ref, twf_ref, tbf_ref, g_ref, b_ref, o_ref, *, dh):
    y = _t2v_rotate(x_ref[...], xs_ref[...], twf_ref[...], tbf_ref[...], dh)
    mu = jnp.mean(y, axis=-1, keepdims=True)
    var = jnp.mean((y - mu) ** 2, axis=-1, keepdims=True)
    o_ref[...] = (y - mu) * jax.lax.rsqrt(var + 1e-12) * g_ref[...] + b_ref[...]


def rotate_fused(seq_emb, times_scaled, tw, tb, gamma=None, beta=None, *, dh, with_ln):
    B, S, D = seq_emb.shape
    R = B * S
    TR = min(512, _round_up(R, 8))
    Rp = _round_up(R, TR)
    x = seq_emb.reshape(R, D).astype(jnp.float32)
    xs = times_scaled.reshape(R, 1).astype(jnp.float32)
    if Rp != R:
        x = jnp.pad(x, ((0, Rp - R), (0, 0)))
        xs = jnp.pad(xs, ((0, Rp - R), (0, 0)))
    twf = jnp.concatenate([tw, tw]).reshape(1, D).astype(jnp.float32)
    tbf = jnp.concatenate([tb, tb]).reshape(1, D).astype(jnp.float32)

    in_specs = [pl.BlockSpec((TR, D), lambda i: (i, 0)),
                pl.BlockSpec((TR, 1), lambda i: (i, 0)),
                pl.BlockSpec((1, D), lambda i: (0, 0)),
                pl.BlockSpec((1, D), lambda i: (0, 0))]
    args = [x, xs, twf, tbf]
    if with_ln:
        in_specs += [pl.BlockSpec((1, D), lambda i: (0, 0)),
                     pl.BlockSpec((1, D), lambda i: (0, 0))]
        args += [gamma.reshape(1, D).astype(jnp.float32),
                 beta.reshape(1, D).astype(jnp.float32)]
        kern = partial(rotate_ln_kernel, dh=dh)
    else:
        kern = partial(rotate_kernel, dh=dh)

    out = pl.pallas_call(
        kern,
        grid=(Rp // TR,),
        in_specs=in_specs,
        out_specs=pl.BlockSpec((TR, D), lambda i: (i, 0)),
        out_shape=jax.ShapeDtypeStruct((Rp, D), jnp.float32),
        compiler_params=pltpu.CompilerParams(dimension_semantics=("parallel",)),
    )(*args)
    return out[:R].reshape(B, S, D)


# ----------------------------------------------------------------------------
# Kernel B: step-independent decoder prefix: x1 = norm1(x + self_attn(x, x, x)).
# x layout: (N, L, E), N = original sequence axis (batched), L = original batch
# axis (attention axis), mirroring nn.TransformerDecoderLayer batch_first=False.
# QKV packed into one (D,3D) matmul; heads processed with static lane slices.
# ----------------------------------------------------------------------------
def self_attn_norm1_kernel(x_ref, wqkv_ref, bqkv_ref, wo_ref, bo_ref, g_ref, beta_ref,
                           o_ref, *, nhead):
    x = x_ref[...]                              # (tn, L, E)
    tn, L, E = x.shape
    dh = E // nhead
    scale = 1.0 / math.sqrt(dh)

    xf = x.reshape(tn * L, E)
    qkv = jnp.dot(xf, wqkv_ref[...], preferred_element_type=jnp.float32) + bqkv_ref[...]
    qkv = qkv.reshape(tn, L, 3 * E)

    heads = []
    for h in range(nhead):                      # static loop, lane slices, no transposes
        qh = qkv[:, :, h * dh:(h + 1) * dh]
        kh = qkv[:, :, E + h * dh:E + (h + 1) * dh]
        vh = qkv[:, :, 2 * E + h * dh:2 * E + (h + 1) * dh]
        s = jnp.einsum('nld,nmd->nlm', qh, kh,
                       preferred_element_type=jnp.float32) * scale
        s = s - jnp.max(s, axis=-1, keepdims=True)
        p = jnp.exp(s)
        p = p / jnp.sum(p, axis=-1, keepdims=True)
        heads.append(jnp.einsum('nlm,nmd->nld', p, vh,
                                preferred_element_type=jnp.float32))
    oh = jnp.concatenate(heads, axis=-1)        # (tn, L, E)

    attn = jnp.dot(oh.reshape(tn * L, E), wo_ref[...],
                   preferred_element_type=jnp.float32) + bo_ref[...]
    y = x + attn.reshape(tn, L, E)
    mu = jnp.mean(y, axis=-1, keepdims=True)
    var = jnp.mean((y - mu) ** 2, axis=-1, keepdims=True)
    o_ref[...] = (y - mu) * jax.lax.rsqrt(var + 1e-5) * g_ref[...] + beta_ref[...]


# ----------------------------------------------------------------------------
# Kernel C: ALL diffusion steps fused into one call, grid = (row_tiles, T).
# Per (tile, t): norm2 + FFN + norm3, p_sample / q_sample with in-kernel
# counter-hash noise, BCE + AUC partial sums -> one lane-dense (1,128) row.
# Row inputs and FFN weights stay VMEM-resident across the whole T axis.
# ----------------------------------------------------------------------------
def _hash32(x):
    # lowbias32 integer hash: portable counter-based PRNG (plain jnp ops).
    x = x ^ (x >> jnp.uint32(16))
    x = x * jnp.uint32(0x7FEB352D)
    x = x ^ (x >> jnp.uint32(15))
    x = x * jnp.uint32(0x846CA68B)
    x = x ^ (x >> jnp.uint32(16))
    return x


def _softplus(x):
    # softplus(-x) == -log(sigmoid(x)) exactly; stable, 2 EUP ops per logit.
    return jnp.maximum(x, 0.0) + jnp.log(1.0 + jnp.exp(-jnp.abs(x)))


def diffusion_kernel(coef_ref, salt_ref, cvec_ref, x1m_ref, x1a_ref, x0_ref, neg_ref,
                     wm_ref, wa_ref, w1_ref, b1_ref, w2_ref, b2_ref, lng_ref, lnb_ref,
                     o_ref, *, act):
    sigma = coef_ref[0, 0, 0]       # exp(0.5 * posterior_log_variance_clipped[t])
    c_mean = coef_ref[0, 0, 1]      # sqrt_alphas_cumprod[t]
    c_std = coef_ref[0, 0, 2]       # sqrt(1 - alphas_cumprod[t])

    cvec = cvec_ref[0]              # (1, D) constant cross-attention output for step t
    lng = lng_ref[...]
    lnb = lnb_ref[...]
    g2, b2n = lng[0:1], lnb[0:1]
    g3, b3n = lng[1:2], lnb[1:2]
    w1 = w1_ref[...]
    b1 = b1_ref[...]
    w2 = w2_ref[...]
    b2 = b2_ref[...]

    def ln(v, g, b):
        mu = jnp.mean(v, axis=-1, keepdims=True)
        var = jnp.mean((v - mu) ** 2, axis=-1, keepdims=True)
        return (v - mu) * jax.lax.rsqrt(var + 1e-5) * g + b

    def decoder_tail(x1):
        x2 = ln(x1 + cvec, g2, b2n)
        h = act(jnp.dot(x2, w1, preferred_element_type=jnp.float32) + b1)
        h = jnp.dot(h, w2, preferred_element_type=jnp.float32) + b2
        return ln(x2 + h, g3, b3n)

    x1m = x1m_ref[...]
    mo_m = decoder_tail(x1m)
    mo_a = decoder_tail(x1a_ref[...])

    # --- noise: counter hash + Box-Muller (one hash -> two uniforms -> two normals) ---
    TR, D = x1m.shape
    row = jax.lax.broadcasted_iota(jnp.int32, (TR, D), 0)
    col = jax.lax.broadcasted_iota(jnp.int32, (TR, D), 1)
    cnt = ((pl.program_id(0) * TR + row) * D + col).astype(jnp.uint32)

    def normal_pair(salt_i32):
        h = _hash32(cnt ^ salt_i32.astype(jnp.uint32))
        u1 = (h & jnp.uint32(0xFFFF)).astype(jnp.int32).astype(jnp.float32) * (1.0 / 65536.0)
        u2 = (h >> jnp.uint32(16)).astype(jnp.int32).astype(jnp.float32) * (1.0 / 65536.0)
        r = jnp.sqrt(-2.0 * jnp.log(1.0 - u1))
        th = (2.0 * math.pi) * u2
        return r * jnp.cos(th), r * jnp.sin(th)

    nz_m, nz_a = normal_pair(salt_ref[0, 0, 0])
    nz_q, _ = normal_pair(salt_ref[0, 0, 1])

    x_new = mo_m + sigma * nz_m                  # p_sample(model_output)['sample']
    aug_x = mo_a + sigma * nz_a                  # p_sample(aug_output)['sample']
    pos = c_mean * x0_ref[...] + c_std * nz_q    # q_sample(x_0, t)
    neg = neg_ref[...]
    wm = wm_ref[...]                             # (TR, 1) is_target (main)
    wa = wa_ref[...]                             # (TR, 1) raw aug ids (as in reference)

    def bce_partials(seq, w):
        pos_l = jnp.sum(pos * seq, axis=-1, keepdims=True)
        neg_l = jnp.sum(neg * seq, axis=-1, keepdims=True)
        per = (_softplus(-pos_l) + _softplus(neg_l)) * w
        d = pos_l - neg_l
        sgn = jnp.where(d > 0, 1.0, jnp.where(d < 0, -1.0, 0.0))
        return jnp.sum(per), jnp.sum((sgn + 1.0) * 0.5 * w)

    lm, am = bce_partials(x_new, wm)
    la, _ = bce_partials(aug_x, wa)
    wsm = jnp.sum(wm)
    wsa = jnp.sum(wa)

    lane = jax.lax.broadcasted_iota(jnp.int32, (1, 128), 1)
    vec = (jnp.where(lane == 0, lm, 0.0) + jnp.where(lane == 1, wsm, 0.0)
           + jnp.where(lane == 2, am, 0.0) + jnp.where(lane == 3, la, 0.0)
           + jnp.where(lane == 4, wsa, 0.0))
    o_ref[...] = vec.reshape(1, 1, 1, 128)
    # TODO(synk): sampled x / aug_x are only needed by the unprovided XNetLoss /
    # XNetLossCrossView contrastive terms and are not written back.


# ----------------------------------------------------------------------------
# Model wrapper (parameter setup + glue).
# ----------------------------------------------------------------------------
class Args:
    def __init__(self, **kw):
        self.__dict__.update(kw)


class CDDRecModelPallas:
    def __init__(self, args, key):
        self.args = args
        D = args.hidden_size
        assert D % 2 == 0 and D % args.num_attention_heads == 0
        Dh = D // 2                      # int(0.5 * hidden_size)
        F = args.hidden_size             # dim_feedforward = hidden_size
        self.dh = Dh

        def normal(k, shape, std=args.initializer_range):
            return std * jax.random.normal(k, shape, jnp.float32)

        ks = jax.random.split(key, 24)
        p = {}
        p['item_emb'] = normal(ks[0], (args.item_size, D)).at[0].set(0.0)  # padding_idx=0
        p['pos_emb'] = normal(ks[1], (args.max_seq_length, D))
        p['time_emb'] = normal(ks[2], (args.T, D))
        # SineActivation params (torch.randn -> std 1): [w (Dh-1), w0], [b (Dh-1), b0]
        p['tw'] = jnp.concatenate([jax.random.normal(ks[3], (Dh - 1,)),
                                   jax.random.normal(ks[4], (1,))])
        p['tb'] = jnp.concatenate([jax.random.normal(ks[5], (Dh - 1,)),
                                   jax.random.normal(ks[6], (1,))])
        p['tw_tgt'] = jnp.concatenate([jax.random.normal(ks[7], (Dh - 1,)),
                                       jax.random.normal(ks[8], (1,))])
        p['tb_tgt'] = jnp.concatenate([jax.random.normal(ks[9], (Dh - 1,)),
                                       jax.random.normal(ks[10], (1,))])
        p['ln_g'] = jnp.ones((D,), jnp.float32)
        p['ln_b'] = jnp.zeros((D,), jnp.float32)
        # TransformerDecoderLayer weights, stored as (in, out) so kernels do x @ W.
        p['dec_wqkv'] = normal(ks[11], (D, 3 * D))          # packed self-attn Q|K|V
        p['dec_bqkv'] = jnp.zeros((1, 3 * D), jnp.float32)
        p['dec_wo'] = normal(ks[12], (D, D))                 # self-attn out proj
        p['dec_bo'] = jnp.zeros((1, D), jnp.float32)
        # Cross-attn over identical keys -> only V and out projections matter.
        p['dec_wvc'] = normal(ks[13], (D, D))
        p['dec_bvc'] = jnp.zeros((1, D), jnp.float32)
        p['dec_woc'] = normal(ks[14], (D, D))
        p['dec_boc'] = jnp.zeros((1, D), jnp.float32)
        p['dec_w1'] = normal(ks[15], (D, F))
        p['dec_b1'] = jnp.zeros((1, F), jnp.float32)
        p['dec_w2'] = normal(ks[16], (F, D))
        p['dec_b2'] = jnp.zeros((1, D), jnp.float32)
        p['dec_lng'] = jnp.ones((3, D), jnp.float32)
        p['dec_lnb'] = jnp.zeros((3, D), jnp.float32)
        self.params = p

        # Diffusion schedule (float64 host math, stored as f32 tables).
        betas = np.linspace(args.beta_1, args.beta_T, args.T, dtype=np.float64)
        alphas = 1.0 - betas
        ac = np.cumprod(alphas)
        ac_prev = np.concatenate([[1.0], ac[:-1]])
        post_var = betas * (1.0 - ac_prev) / (1.0 - ac)
        post_log_var_clipped = np.log(np.concatenate([[post_var[1]], post_var[1:]]))
        self.sigma = jnp.asarray(np.exp(0.5 * post_log_var_clipped), jnp.float32)
        self.sqrt_ac = jnp.asarray(np.sqrt(ac), jnp.float32)
        self.sqrt_1m_ac = jnp.asarray(np.sqrt(1.0 - ac), jnp.float32)

        if getattr(args, 'hidden_act', 'relu') == 'gelu':
            self._act = partial(jax.nn.gelu, approximate=True)   # tanh approx (TPU-friendly)
        else:
            self._act = lambda v: jnp.maximum(v, 0.0)

        self._fwd = jax.jit(self._forward_impl)

    # ---- add_position_embedding ----
    def add_position_embedding(self, input_ids, times_ids):
        B, S = input_ids.shape
        p = self.params
        item_emb = p['item_emb'][input_ids]                      # (B,S,D)
        pos_emb = p['pos_emb'][:S][None]                         # (1,S,D)
        seq_emb = item_emb + pos_emb
        times_scaled = times_ids.astype(jnp.float32) / 47.0      # OriginTime2Vec
        # TODO(synk): the extended causal attention mask is only consumed by the
        # (unprovided) Encoder class, so it is not materialized here.
        return rotate_fused(seq_emb, times_scaled, p['tw'], p['tb'],
                            p['ln_g'], p['ln_b'], dh=self.dh, with_ln=True)

    # ---- step-independent decoder prefix for both views (one gridded call) ----
    def self_attn_norm1(self, main_bsd, aug_bsd):
        p = self.params
        args = self.args
        B, S, D = main_bsd.shape
        # TODO(synk): the host-side transpose+concat here is two small HBM round-trips;
        # folding the (S,B,D) layout into rotate_fused's out_spec would remove them.
        x = jnp.concatenate([jnp.transpose(main_bsd, (1, 0, 2)),
                             jnp.transpose(aug_bsd, (1, 0, 2))],
                            axis=0).astype(jnp.float32)          # (2S, B, D)
        N2 = 2 * S
        tn = max(1, min(N2, (1 << 20) // max(1, B * D * 4)))     # ~1 MiB blocks (v5e safe)
        if N2 >= 2:
            tn = min(tn, max(1, N2 // 2))                        # >=2 parallel blocks (v7x)
        Np = _round_up(N2, tn)
        if Np != N2:
            x = jnp.pad(x, ((0, Np - N2), (0, 0), (0, 0)))

        out = pl.pallas_call(
            partial(self_attn_norm1_kernel, nhead=args.num_attention_heads),
            grid=(Np // tn,),
            in_specs=[pl.BlockSpec((tn, B, D), lambda i: (i, 0, 0)),
                      pl.BlockSpec((D, 3 * D), lambda i: (0, 0)),
                      pl.BlockSpec((1, 3 * D), lambda i: (0, 0)),
                      pl.BlockSpec((D, D), lambda i: (0, 0)),
                      pl.BlockSpec((1, D), lambda i: (0, 0)),
                      pl.BlockSpec((1, D), lambda i: (0, 0)),
                      pl.BlockSpec((1, D), lambda i: (0, 0))],
            out_specs=pl.BlockSpec((tn, B, D), lambda i: (i, 0, 0)),
            out_shape=jax.ShapeDtypeStruct((Np, B, D), jnp.float32),
            compiler_params=pltpu.CompilerParams(dimension_semantics=("parallel",)),
        )(x, p['dec_wqkv'], p['dec_bqkv'], p['dec_wo'], p['dec_bo'],
          p['dec_lng'][0:1], p['dec_lnb'][0:1])

        out = out[:N2]
        x1_main = jnp.transpose(out[:S], (1, 0, 2)).reshape(B * S, D)
        x1_aug = jnp.transpose(out[S:], (1, 0, 2)).reshape(B * S, D)
        return x1_main, x1_aug

    # ---- all diffusion steps in one call, grid = (row_tiles, T) ----
    def _diffusion_all_steps(self, coefs, salts, cvecs, x1m, x1a, x0, neg, wm, wa, TR):
        p = self.params
        D = self.args.hidden_size
        F = p['dec_w1'].shape[1]
        T = self.args.T
        Rp = x1m.shape[0]
        nt = Rp // TR

        def row():
            return pl.BlockSpec((TR, D), lambda i, t: (i, 0))

        def roww():
            return pl.BlockSpec((TR, 1), lambda i, t: (i, 0))

        def const(shape):
            return pl.BlockSpec(shape, lambda i, t: tuple(0 for _ in shape))

        def per_t(shape):
            return pl.BlockSpec(shape, lambda i, t: (t, 0, 0))

        out = pl.pallas_call(
            partial(diffusion_kernel, act=self._act),
            grid=(nt, T),
            in_specs=[per_t((1, 1, 128)),        # coefs[t]
                      per_t((1, 1, 128)),        # salts[t]
                      per_t((1, 1, D)),          # cvecs[t]
                      row(), row(), row(), row(),  # x1m, x1a, x0, neg (resident over t)
                      roww(), roww(),              # wm, wa
                      const((D, F)), const((1, F)),
                      const((F, D)), const((1, D)),
                      const((2, D)), const((2, D))],
            out_specs=pl.BlockSpec((1, 1, 1, 128), lambda i, t: (i, t, 0, 0)),
            out_shape=jax.ShapeDtypeStruct((nt, T, 1, 128), jnp.float32),
            compiler_params=pltpu.CompilerParams(
                dimension_semantics=("parallel", "arbitrary")),
        )(coefs, salts, cvecs, x1m, x1a, x0, neg, wm, wa,
          p['dec_w1'], p['dec_b1'], p['dec_w2'], p['dec_b2'],
          p['dec_lng'][1:3], p['dec_lnb'][1:3])
        return out

    # ---- forward ----
    def forward(self, input_ids, times_ids, target_pos, target_neg,
                aug_input_ids, aug_times_ids, target_times, epoch, key):
        del epoch  # unused (dropout eval-mode; contrastive schedules omitted)
        return self._fwd(input_ids, times_ids, target_pos, target_neg,
                         aug_input_ids, aug_times_ids, target_times, key)

    def _forward_impl(self, input_ids, times_ids, target_pos, target_neg,
                      aug_input_ids, aug_times_ids, target_times, key):
        args = self.args
        p = self.params
        B, S = input_ids.shape
        D = args.hidden_size
        R = B * S
        T = args.T

        input_emb = self.add_position_embedding(input_ids, times_ids)
        # TODO(synk): Encoder (conditional_encoder) definition was not provided;
        # treated as identity, so conditional_emb == input_emb.
        conditional_emb = input_emb
        aug_input_emb = self.add_position_embedding(aug_input_ids, aug_times_ids)
        aug_conditional_emb = aug_input_emb

        x0 = p['item_emb'][target_pos]
        x0 = rotate_fused(x0, target_times.astype(jnp.float32) / 47.0,
                          p['tw_tgt'], p['tb_tgt'], dh=self.dh, with_ln=False)
        neg = p['item_emb'][target_neg].astype(jnp.float32)

        # step-independent decoder prefix (self-attn + norm1), both views at once
        x1_main, x1_aug = self.self_attn_norm1(conditional_emb, aug_conditional_emb)

        # row tiling for the fused diffusion kernel (>=2 tiles when possible, <=512 rows)
        TR = min(512, _round_up(R, 8))
        if R > 8 and _round_up(R, TR) // TR < 2:
            TR = _round_up((R + 1) // 2, 8)
        Rp = _round_up(R, TR)

        def padrows(a):
            return jnp.pad(a, ((0, Rp - R), (0, 0))) if Rp != R else a

        x1m_p = padrows(x1_main)
        x1a_p = padrows(x1_aug)
        x0_p = padrows(x0.reshape(R, D))
        neg_p = padrows(neg.reshape(R, D))
        wm_p = padrows((input_ids > 0).astype(jnp.float32).reshape(R, 1))
        # NOTE: the reference uses raw aug item ids as BCE weights for the aug view.
        wa_p = padrows(aug_input_ids.astype(jnp.float32).reshape(R, 1))

        # Per-step constants, hoisted out of the kernel grid:
        # cross-attn over identical keys == out_proj(V_proj(time_emb[t])).
        cvecs = jnp.dot(p['time_emb'], p['dec_wvc']) + p['dec_bvc']
        cvecs = (jnp.dot(cvecs, p['dec_woc']) + p['dec_boc']).reshape(T, 1, D)
        cvecs = cvecs.astype(jnp.float32)
        coefs = jnp.zeros((T, 1, 128), jnp.float32)
        coefs = coefs.at[:, 0, 0].set(self.sigma)
        coefs = coefs.at[:, 0, 1].set(self.sqrt_ac)
        coefs = coefs.at[:, 0, 2].set(self.sqrt_1m_ac)
        salts = jax.random.randint(key, (T, 1, 128), 0, 2 ** 31 - 1, dtype=jnp.int32)

        partials = self._diffusion_all_steps(coefs, salts, cvecs, x1m_p, x1a_p,
                                             x0_p, neg_p, wm_p, wa_p, TR)
        sums = jnp.sum(partials[:, :, 0, :], axis=0)           # (T, 128)
        loss_t = sums[:, 0] / sums[:, 1]
        auc_t = sums[:, 2] / sums[:, 1]
        loss_t_aug = sums[:, 3] / sums[:, 4]
        inv_ip1 = 1.0 / (jnp.arange(T, dtype=jnp.float32) + 1.0)
        # TODO(synk): XNetLoss / XNetLossCrossView / InfoNCE_Linear definitions are not
        # provided; their 0.3-weighted contrastive terms are omitted.
        loss = jnp.sum((loss_t + loss_t_aug) * inv_ip1)
        batch_auc = auc_t[0]   # reference returns the AUC from the last loop iter (i=0)
        return loss, batch_auc, conditional_emb


# ----------------------------------------------------------------------------
if __name__ == "__main__":
    args = Args(T=4, hidden_size=32, num_attention_heads=2, max_seq_length=8,
                item_size=64, beta_1=1e-4, beta_T=0.02, initializer_range=0.02,
                hidden_act="relu")
    root = jax.random.PRNGKey(0)
    kparam, kdata, knoise = jax.random.split(root, 3)

    model = CDDRecModelPallas(args, kparam)

    B, S = 2, args.max_seq_length
    kk = jax.random.split(kdata, 7)
    input_ids = jax.random.randint(kk[0], (B, S), 0, args.item_size)
    times_ids = jax.random.randint(kk[1], (B, S), 0, 48)
    target_pos = jax.random.randint(kk[2], (B, S), 1, args.item_size)
    target_neg = jax.random.randint(kk[3], (B, S), 1, args.item_size)
    aug_input_ids = jax.random.randint(kk[4], (B, S), 0, args.item_size)
    aug_times_ids = jax.random.randint(kk[5], (B, S), 0, 48)
    target_times = jax.random.randint(kk[6], (B, S), 0, 48)

    loss, auc, cond = model.forward(input_ids, times_ids, target_pos, target_neg,
                                    aug_input_ids, aug_times_ids, target_times,
                                    epoch=0, key=knoise)
    jax.block_until_ready((loss, auc, cond))
    print("KERNEL_OK")
</pallas_src>

<mosaic_0001>
module attributes {stable_mosaic.version = 11 : i64} {
  func.func @self_attn_norm1_kernel(%arg0: i32, %arg1: memref<8x2x32xf32, #tpu.memory_space<vmem>>, %arg2: memref<32x96xf32, #tpu.memory_space<vmem>>, %arg3: memref<1x96xf32, #tpu.memory_space<vmem>>, %arg4: memref<32x32xf32, #tpu.memory_space<vmem>>, %arg5: memref<1x32xf32, #tpu.memory_space<vmem>>, %arg6: memref<1x32xf32, #tpu.memory_space<vmem>>, %arg7: memref<1x32xf32, #tpu.memory_space<vmem>>, %arg8: memref<8x2x32xf32, #tpu.memory_space<vmem>>) attributes {dimension_semantics = [#tpu.dimension_semantics<parallel>], iteration_bounds = array<i64: 2>, scalar_prefetch = 0 : i64, scratch_operands = 0 : i64, tpu.core_type = #tpu.core_type<tc>, window_params = [{transform_indices = @transform_0, window_bounds = array<i64: 8, 2, 32>}, {pipeline_mode = #tpu.pipeline_mode<synchronous>, transform_indices = @transform_1, window_bounds = array<i64: 32, 96>}, {pipeline_mode = #tpu.pipeline_mode<synchronous>, transform_indices = @transform_2, window_bounds = array<i64: 1, 96>}, {pipeline_mode = #tpu.pipeline_mode<synchronous>, transform_indices = @transform_3, window_bounds = array<i64: 32, 32>}, {pipeline_mode = #tpu.pipeline_mode<synchronous>, transform_indices = @transform_4, window_bounds = array<i64: 1, 32>}, {pipeline_mode = #tpu.pipeline_mode<synchronous>, transform_indices = @transform_5, window_bounds = array<i64: 1, 32>}, {pipeline_mode = #tpu.pipeline_mode<synchronous>, transform_indices = @transform_6, window_bounds = array<i64: 1, 32>}, {transform_indices = @transform_7, window_bounds = array<i64: 8, 2, 32>}]} {
    %c0 = arith.constant 0 : index
    %c0_0 = arith.constant 0 : index
    %c0_1 = arith.constant 0 : index
    %0 = vector.load %arg1[%c0, %c0_0, %c0_1] : memref<8x2x32xf32, #tpu.memory_space<vmem>>, vector<8x2x32xf32>
    %1 = vector.shape_cast %0 : vector<8x2x32xf32> to vector<16x32xf32>
    %c0_2 = arith.constant 0 : index
    %c0_3 = arith.constant 0 : index
    %2 = vector.load %arg2[%c0_2, %c0_3] : memref<32x96xf32, #tpu.memory_space<vmem>>, vector<32x96xf32>
    %cst = arith.constant dense<0.000000e+00> : vector<16x96xf32>
    %3 = tpu.matmul %1, %2, %cst {dimension_numbers = #tpu.dot_dimension_numbers<[1], [0], [0], [1], [0, 0, 1, 1], [], []>} : vector<16x32xf32>, vector<32x96xf32>, vector<16x96xf32> -> vector<16x96xf32>
    %c0_4 = arith.constant 0 : index
    %c0_5 = arith.constant 0 : index
    %4 = vector.load %arg3[%c0_4, %c0_5] : memref<1x96xf32, #tpu.memory_space<vmem>>, vector<1x96xf32>
    %5 = vector.broadcast %4 : vector<1x96xf32> to vector<16x96xf32>
    %6 = arith.addf %3, %5 : vector<16x96xf32>
    %7 = vector.shape_cast %6 : vector<16x96xf32> to vector<8x2x96xf32>
    %8 = vector.extract_strided_slice %7 {offsets = [0, 0, 0], sizes = [8, 2, 16], strides = [1, 1, 1]} : vector<8x2x96xf32> to vector<8x2x16xf32>
    %9 = vector.extract_strided_slice %7 {offsets = [0, 0, 32], sizes = [8, 2, 16], strides = [1, 1, 1]} : vector<8x2x96xf32> to vector<8x2x16xf32>
    %10 = vector.extract_strided_slice %7 {offsets = [0, 0, 64], sizes = [8, 2, 16], strides = [1, 1, 1]} : vector<8x2x96xf32> to vector<8x2x16xf32>
    "tpu.trace_start"() <{level = 10 : i32, message = "nld,nmd->nlm"}> : () -> ()
    %cst_6 = arith.constant dense<0.000000e+00> : vector<8x2x2xf32>
    %11 = tpu.matmul %8, %9, %cst_6 {dimension_numbers = #tpu.dot_dimension_numbers<[2], [2], [1], [1], [0, 0, 0, 1, 1, 1], [0], [0]>} : vector<8x2x16xf32>, vector<8x2x16xf32>, vector<8x2x2xf32> -> vector<8x2x2xf32>
    "tpu.trace_stop"() : () -> ()
    %cst_7 = arith.constant 2.500000e-01 : f32
    %12 = vector.broadcast %cst_7 : f32 to vector<8x2x2xf32>
    %13 = arith.mulf %11, %12 : vector<8x2x2xf32>
    %cst_8 = arith.constant dense<0xFF800000> : vector<8x2xf32>
    %14 = vector.multi_reduction <maximumf>, %13, %cst_8 [2] : vector<8x2x2xf32> to vector<8x2xf32>
    %15 = vector.shape_cast %14 : vector<8x2xf32> to vector<8x2x1xf32>
    %16 = vector.broadcast %15 : vector<8x2x1xf32> to vector<8x2x2xf32>
    %17 = arith.subf %13, %16 : vector<8x2x2xf32>
    %18 = math.exp %17 : vector<8x2x2xf32>
    %cst_9 = arith.constant dense<0.000000e+00> : vector<8x2xf32>
    %19 = vector.multi_reduction <add>, %18, %cst_9 [2] : vector<8x2x2xf32> to vector<8x2xf32>
    %20 = vector.shape_cast %19 : vector<8x2xf32> to vector<8x2x1xf32>
    %21 = vector.broadcast %20 : vector<8x2x1xf32> to vector<8x2x2xf32>
    %22 = arith.divf %18, %21 : vector<8x2x2xf32>
    "tpu.trace_start"() <{level = 10 : i32, message = "nlm,nmd->nld"}> : () -> ()
    %cst_10 = arith.constant dense<0.000000e+00> : vector<8x2x16xf32>
    %23 = tpu.matmul %22, %10, %cst_10 {dimension_numbers = #tpu.dot_dimension_numbers<[2], [1], [1], [2], [0, 0, 0, 1, 1, 2], [0], [0]>} : vector<8x2x2xf32>, vector<8x2x16xf32>, vector<8x2x16xf32> -> vector<8x2x16xf32>
    "tpu.trace_stop"() : () -> ()
    %24 = vector.extract_strided_slice %7 {offsets = [0, 0, 16], sizes = [8, 2, 16], strides = [1, 1, 1]} : vector<8x2x96xf32> to vector<8x2x16xf32>
    %25 = vector.extract_strided_slice %7 {offsets = [0, 0, 48], sizes = [8, 2, 16], strides = [1, 1, 1]} : vector<8x2x96xf32> to vector<8x2x16xf32>
    %26 = vector.extract_strided_slice %7 {offsets = [0, 0, 80], sizes = [8, 2, 16], strides = [1, 1, 1]} : vector<8x2x96xf32> to vector<8x2x16xf32>
    "tpu.trace_start"() <{level = 10 : i32, message = "nld,nmd->nlm"}> : () -> ()
    %cst_11 = arith.constant dense<0.000000e+00> : vector<8x2x2xf32>
    %27 = tpu.matmul %24, %25, %cst_11 {dimension_numbers = #tpu.dot_dimension_numbers<[2], [2], [1], [1], [0, 0, 0, 1, 1, 1], [0], [0]>} : vector<8x2x16xf32>, vector<8x2x16xf32>, vector<8x2x2xf32> -> vector<8x2x2xf32>
    "tpu.trace_stop"() : () -> ()
    %cst_12 = arith.constant 2.500000e-01 : f32
    %28 = vector.broadcast %cst_12 : f32 to vector<8x2x2xf32>
    %29 = arith.mulf %27, %28 : vector<8x2x2xf32>
    %cst_13 = arith.constant dense<0xFF800000> : vector<8x2xf32>
    %30 = vector.multi_reduction <maximumf>, %29, %cst_13 [2] : vector<8x2x2xf32> to vector<8x2xf32>
    %31 = vector.shape_cast %30 : vector<8x2xf32> to vector<8x2x1xf32>
    %32 = vector.broadcast %31 : vector<8x2x1xf32> to vector<8x2x2xf32>
    %33 = arith.subf %29, %32 : vector<8x2x2xf32>
    %34 = math.exp %33 : vector<8x2x2xf32>
    %cst_14 = arith.constant dense<0.000000e+00> : vector<8x2xf32>
    %35 = vector.multi_reduction <add>, %34, %cst_14 [2] : vector<8x2x2xf32> to vector<8x2xf32>
    %36 = vector.shape_cast %35 : vector<8x2xf32> to vector<8x2x1xf32>
    %37 = vector.broadcast %36 : vector<8x2x1xf32> to vector<8x2x2xf32>
    %38 = arith.divf %34, %37 : vector<8x2x2xf32>
    "tpu.trace_start"() <{level = 10 : i32, message = "nlm,nmd->nld"}> : () -> ()
    %cst_15 = arith.constant dense<0.000000e+00> : vector<8x2x16xf32>
    %39 = tpu.matmul %38, %26, %cst_15 {dimension_numbers = #tpu.dot_dimension_numbers<[2], [1], [1], [2], [0, 0, 0, 1, 1, 2], [0], [0]>} : vector<8x2x2xf32>, vector<8x2x16xf32>, vector<8x2x16xf32> -> vector<8x2x16xf32>
    "tpu.trace_stop"() : () -> ()
    %40 = tpu.concatenate %23, %39 in 2 : vector<8x2x16xf32>, vector<8x2x16xf32> -> vector<8x2x32xf32>
    %41 = vector.shape_cast %40 : vector<8x2x32xf32> to vector<16x32xf32>
    %c0_16 = arith.constant 0 : index
    %c0_17 = arith.constant 0 : index
    %42 = vector.load %arg4[%c0_16, %c0_17] : memref<32x32xf32, #tpu.memory_space<vmem>>, vector<32x32xf32>
    %cst_18 = arith.constant dense<0.000000e+00> : vector<16x32xf32>
    %43 = tpu.matmul %41, %42, %cst_18 {dimension_numbers = #tpu.dot_dimension_numbers<[1], [0], [0], [1], [0, 0, 1, 1], [], []>} : vector<16x32xf32>, vector<32x32xf32>, vector<16x32xf32> -> vector<16x32xf32>
    %c0_19 = arith.constant 0 : index
    %c0_20 = arith.constant 0 : index
    %44 = vector.load %arg5[%c0_19, %c0_20] : memref<1x32xf32, #tpu.memory_space<vmem>>, vector<1x32xf32>
    %45 = vector.broadcast %44 : vector<1x32xf32> to vector<16x32xf32>
    %46 = arith.addf %43, %45 : vector<16x32xf32>
    %47 = vector.shape_cast %46 : vector<16x32xf32> to vector<8x2x32xf32>
    %48 = arith.addf %0, %47 : vector<8x2x32xf32>
    %cst_21 = arith.constant dense<0.000000e+00> : vector<8x2xf32>
    %49 = vector.multi_reduction <add>, %48, %cst_21 [2] : vector<8x2x32xf32> to vector<8x2xf32>
    %50 = vector.shape_cast %49 : vector<8x2xf32> to vector<8x2x1xf32>
    %cst_22 = arith.constant 3.200000e+01 : f32
    %51 = vector.broadcast %cst_22 : f32 to vector<8x2x1xf32>
    %52 = arith.divf %50, %51 : vector<8x2x1xf32>
    %53 = vector.broadcast %52 : vector<8x2x1xf32> to vector<8x2x32xf32>
    %54 = arith.subf %48, %53 : vector<8x2x32xf32>
    %55 = arith.mulf %54, %54 : vector<8x2x32xf32>
    %cst_23 = arith.constant dense<0.000000e+00> : vector<8x2xf32>
    %56 = vector.multi_reduction <add>, %55, %cst_23 [2] : vector<8x2x32xf32> to vector<8x2xf32>
    %57 = vector.shape_cast %56 : vector<8x2xf32> to vector<8x2x1xf32>
    %cst_24 = arith.constant 3.200000e+01 : f32
    %58 = vector.broadcast %cst_24 : f32 to vector<8x2x1xf32>
    %59 = arith.divf %57, %58 : vector<8x2x1xf32>
    %60 = vector.broadcast %52 : vector<8x2x1xf32> to vector<8x2x32xf32>
    %61 = arith.subf %48, %60 : vector<8x2x32xf32>
    %cst_25 = arith.constant 9.99999974E-6 : f32
    %62 = vector.broadcast %cst_25 : f32 to vector<8x2x1xf32>
    %63 = arith.addf %59, %62 : vector<8x2x1xf32>
    %64 = math.rsqrt %63 : vector<8x2x1xf32>
    %65 = vector.broadcast %64 : vector<8x2x1xf32> to vector<8x2x32xf32>
    %66 = arith.mulf %61, %65 : vector<8x2x32xf32>
    %c0_26 = arith.constant 0 : index
    %c0_27 = arith.constant 0 : index
    %67 = vector.load %arg6[%c0_26, %c0_27] : memref<1x32xf32, #tpu.memory_space<vmem>>, vector<1x32xf32>
    %68 = vector.shape_cast %67 : vector<1x32xf32> to vector<1x1x32xf32>
    %69 = vector.broadcast %68 : vector<1x1x32xf32> to vector<8x2x32xf32>
    %70 = arith.mulf %66, %69 : vector<8x2x32xf32>
    %c0_28 = arith.constant 0 : index
    %c0_29 = arith.constant 0 : index
    %71 = vector.load %arg7[%c0_28, %c0_29] : memref<1x32xf32, #tpu.memory_space<vmem>>, vector<1x32xf32>
    %72 = vector.shape_cast %71 : vector<1x32xf32> to vector<1x1x32xf32>
    %73 = vector.broadcast %72 : vector<1x1x32xf32> to vector<8x2x32xf32>
    %74 = arith.addf %70, %73 : vector<8x2x32xf32>
    %c0_30 = arith.constant 0 : index
    %c0_31 = arith.constant 0 : index
    %c0_32 = arith.constant 0 : index
    %75 = vector.load %arg8[%c0_30, %c0_31, %c0_32] : memref<8x2x32xf32, #tpu.memory_space<vmem>>, vector<8x2x32xf32>
    tpu.vector_store %arg8[%c0_30, %c0_31, %c0_32], %74 {strides = array<i32>} : memref<8x2x32xf32, #tpu.memory_space<vmem>>, vector<8x2x32xf32>,
    return
  }
  func.func @transform_0(%arg0: i32) -> (i32, i32, i32) {
    %c0_i32 = arith.constant 0 : i32
    %c0_i32_0 = arith.constant 0 : i32
    %c0_i32_1 = arith.constant 0 : i32
    return %arg0, %c0_i32, %c0_i32_0 : i32, i32, i32
  }
  func.func @transform_1(%arg0: i32) -> (i32, i32) {
    %c0_i32 = arith.constant 0 : i32
    %c0_i32_0 = arith.constant 0 : i32
    %c0_i32_1 = arith.constant 0 : i32
    return %c0_i32, %c0_i32_0 : i32, i32
  }
  func.func @transform_2(%arg0: i32) -> (i32, i32) {
    %c0_i32 = arith.constant 0 : i32
    %c0_i32_0 = arith.constant 0 : i32
    %c0_i32_1 = arith.constant 0 : i32
    return %c0_i32, %c0_i32_0 : i32, i32
  }
  func.func @transform_3(%arg0: i32) -> (i32, i32) {
    %c0_i32 = arith.constant 0 : i32
    %c0_i32_0 = arith.constant 0 : i32
    %c0_i32_1 = arith.constant 0 : i32
    return %c0_i32, %c0_i32_0 : i32, i32
  }
  func.func @transform_4(%arg0: i32) -> (i32, i32) {
    %c0_i32 = arith.constant 0 : i32
    %c0_i32_0 = arith.constant 0 : i32
    %c0_i32_1 = arith.constant 0 : i32
    return %c0_i32, %c0_i32_0 : i32, i32
  }
  func.func @transform_5(%arg0: i32) -> (i32, i32) {
    %c0_i32 = arith.constant 0 : i32
    %c0_i32_0 = arith.constant 0 : i32
    %c0_i32_1 = arith.constant 0 : i32
    return %c0_i32, %c0_i32_0 : i32, i32
  }
  func.func @transform_6(%arg0: i32) -> (i32, i32) {
    %c0_i32 = arith.constant 0 : i32
    %c0_i32_0 = arith.constant 0 : i32
    %c0_i32_1 = arith.constant 0 : i32
    return %c0_i32, %c0_i32_0 : i32, i32
  }
  func.func @transform_7(%arg0: i32) -> (i32, i32, i32) {
    %c0_i32 = arith.constant 0 : i32
    %c0_i32_0 = arith.constant 0 : i32
    %c0_i32_1 = arith.constant 0 : i32
    return %arg0, %c0_i32, %c0_i32_0 : i32, i32, i32
  }
}

module attributes {stable_mosaic.version = 11 : i64} {
  func.func @rotate_ln_kernel(%arg0: i32, %arg1: memref<16x32xf32, #tpu.memory_space<vmem>>, %arg2: memref<16x1xf32, #tpu.memory_space<vmem>>, %arg3: memref<1x32xf32, #tpu.memory_space<vmem>>, %arg4: memref<1x32xf32, #tpu.memory_space<vmem>>, %arg5: memref<1x32xf32, #tpu.memory_space<vmem>>, %arg6: memref<1x32xf32, #tpu.memory_space<vmem>>, %arg7: memref<16x32xf32, #tpu.memory_space<vmem>>) attributes {dimension_semantics = [#tpu.dimension_semantics<parallel>], iteration_bounds = array<i64: 1>, scalar_prefetch = 0 : i64, scratch_operands = 0 : i64, tpu.core_type = #tpu.core_type<tc>, window_params = [{transform_indices = @transform_0, window_bounds = array<i64: 16, 32>}, {transform_indices = @transform_1, window_bounds = array<i64: 16, 1>}, {pipeline_mode = #tpu.pipeline_mode<synchronous>, transform_indices = @transform_2, window_bounds = array<i64: 1, 32>}, {pipeline_mode = #tpu.pipeline_mode<synchronous>, transform_indices = @transform_3, window_bounds = array<i64: 1, 32>}, {pipeline_mode = #tpu.pipeline_mode<synchronous>, transform_indices = @transform_4, window_bounds = array<i64: 1, 32>}, {pipeline_mode = #tpu.pipeline_mode<synchronous>, transform_indices = @transform_5, window_bounds = array<i64: 1, 32>}, {transform_indices = @transform_6, window_bounds = array<i64: 16, 32>}]} {
    %c0 = arith.constant 0 : index
    %c0_0 = arith.constant 0 : index
    %0 = vector.load %arg1[%c0, %c0_0] : memref<16x32xf32, #tpu.memory_space<vmem>>, vector<16x32xf32>
    %c0_1 = arith.constant 0 : index
    %c0_2 = arith.constant 0 : index
    %1 = vector.load %arg2[%c0_1, %c0_2] : memref<16x1xf32, #tpu.memory_space<vmem>>, vector<16x1xf32>
    %c0_3 = arith.constant 0 : index
    %c0_4 = arith.constant 0 : index
    %2 = vector.load %arg3[%c0_3, %c0_4] : memref<1x32xf32, #tpu.memory_space<vmem>>, vector<1x32xf32>
    %c0_5 = arith.constant 0 : index
    %c0_6 = arith.constant 0 : index
    %3 = vector.load %arg4[%c0_5, %c0_6] : memref<1x32xf32, #tpu.memory_space<vmem>>, vector<1x32xf32>
    %4 = vector.broadcast %1 : vector<16x1xf32> to vector<16x32xf32>
    %5 = vector.broadcast %2 : vector<1x32xf32> to vector<16x32xf32>
    %6 = arith.mulf %4, %5 : vector<16x32xf32>
    %7 = vector.broadcast %3 : vector<1x32xf32> to vector<16x32xf32>
    %8 = arith.addf %6, %7 : vector<16x32xf32>
    %9 = tpu.iota {dimensions = array<i32: 1>} : vector<16x32xi32>
    %c16_i32 = arith.constant 16 : i32
    %10 = vector.broadcast %c16_i32 : i32 to vector<16x32xi32>
    %11 = arith.cmpi slt, %9, %10 : vector<16x32xi32>
    %c16_i32_7 = arith.constant 16 : i32
    %12 = vector.broadcast %c16_i32_7 : i32 to vector<16x32xi32>
    %13 = arith.subi %9, %12 : vector<16x32xi32>
    %14 = arith.select %11, %9, %13 : vector<16x32xi1>, vector<16x32xi32>
    %c15_i32 = arith.constant 15 : i32
    %15 = vector.broadcast %c15_i32 : i32 to vector<16x32xi32>
    %16 = arith.cmpi slt, %14, %15 : vector<16x32xi32>
    %17 = math.sin %8 : vector<16x32xf32>
    %18 = arith.select %16, %17, %8 : vector<16x32xi1>, vector<16x32xf32>
    %cst = arith.constant 1.93328774 : f32
    %19 = vector.broadcast %cst : f32 to vector<16x32xf32>
    %20 = arith.mulf %18, %19 : vector<16x32xf32>
    %21 = math.cos %20 : vector<16x32xf32>
    %22 = math.sin %20 : vector<16x32xf32>
    %23 = vector.extract_strided_slice %0 {offsets = [0, 16], sizes = [16, 16], strides = [1, 1]} : vector<16x32xf32> to vector<16x16xf32>
    %24 = vector.extract_strided_slice %0 {offsets = [0, 0], sizes = [16, 16], strides = [1, 1]} : vector<16x32xf32> to vector<16x16xf32>
    %25 = tpu.concatenate %23, %24 in 1 : vector<16x16xf32>, vector<16x16xf32> -> vector<16x32xf32>
    %c16_i32_8 = arith.constant 16 : i32
    %26 = vector.broadcast %c16_i32_8 : i32 to vector<16x32xi32>
    %27 = arith.cmpi slt, %9, %26 : vector<16x32xi32>
    %cst_9 = arith.constant -1.000000e+00 : f32
    %cst_10 = arith.constant 1.000000e+00 : f32
    %28 = vector.broadcast %cst_9 : f32 to vector<16x32xf32>
    %29 = vector.broadcast %cst_10 : f32 to vector<16x32xf32>
    %30 = arith.select %27, %28, %29 : vector<16x32xi1>, vector<16x32xf32>
    %31 = arith.mulf %0, %21 : vector<16x32xf32>
    %32 = arith.mulf %25, %22 : vector<16x32xf32>
    %33 = arith.mulf %32, %30 : vector<16x32xf32>
    %34 = arith.addf %31, %33 : vector<16x32xf32>
    %cst_11 = arith.constant dense<0.000000e+00> : vector<16xf32>
    %35 = vector.multi_reduction <add>, %34, %cst_11 [1] : vector<16x32xf32> to vector<16xf32>
    %36 = vector.shape_cast %35 : vector<16xf32> to vector<16x1xf32>
    %cst_12 = arith.constant 3.200000e+01 : f32
    %37 = vector.broadcast %cst_12 : f32 to vector<16x1xf32>
    %38 = arith.divf %36, %37 : vector<16x1xf32>
    %39 = vector.broadcast %38 : vector<16x1xf32> to vector<16x32xf32>
    %40 = arith.subf %34, %39 : vector<16x32xf32>
    %41 = arith.mulf %40, %40 : vector<16x32xf32>
    %cst_13 = arith.constant dense<0.000000e+00> : vector<16xf32>
    %42 = vector.multi_reduction <add>, %41, %cst_13 [1] : vector<16x32xf32> to vector<16xf32>
    %43 = vector.shape_cast %42 : vector<16xf32> to vector<16x1xf32>
    %cst_14 = arith.constant 3.200000e+01 : f32
    %44 = vector.broadcast %cst_14 : f32 to vector<16x1xf32>
    %45 = arith.divf %43, %44 : vector<16x1xf32>
    %46 = vector.broadcast %38 : vector<16x1xf32> to vector<16x32xf32>
    %47 = arith.subf %34, %46 : vector<16x32xf32>
    %cst_15 = arith.constant 9.99999996E-13 : f32
    %48 = vector.broadcast %cst_15 : f32 to vector<16x1xf32>
    %49 = arith.addf %45, %48 : vector<16x1xf32>
    %50 = math.rsqrt %49 : vector<16x1xf32>
    %51 = vector.broadcast %50 : vector<16x1xf32> to vector<16x32xf32>
    %52 = arith.mulf %47, %51 : vector<16x32xf32>
    %c0_16 = arith.constant 0 : index
    %c0_17 = arith.constant 0 : index
    %53 = vector.load %arg5[%c0_16, %c0_17] : memref<1x32xf32, #tpu.memory_space<vmem>>, vector<1x32xf32>
    %54 = vector.broadcast %53 : vector<1x32xf32> to vector<16x32xf32>
    %55 = arith.mulf %52, %54 : vector<16x32xf32>
    %c0_18 = arith.constant 0 : index
    %c0_19 = arith.constant 0 : index
    %56 = vector.load %arg6[%c0_18, %c0_19] : memref<1x32xf32, #tpu.memory_space<vmem>>, vector<1x32xf32>
    %57 = vector.broadcast %56 : vector<1x32xf32> to vector<16x32xf32>
    %58 = arith.addf %55, %57 : vector<16x32xf32>
    %c0_20 = arith.constant 0 : index
    %c0_21 = arith.constant 0 : index
    %59 = vector.load %arg7[%c0_20, %c0_21] : memref<16x32xf32, #tpu.memory_space<vmem>>, vector<16x32xf32>
    tpu.vector_store %arg7[%c0_20, %c0_21], %58 {strides = array<i32>} : memref<16x32xf32, #tpu.memory_space<vmem>>, vector<16x32xf32>,
    return
  }
  func.func @transform_0(%arg0: i32) -> (i32, i32) {
    %c0_i32 = arith.constant 0 : i32
    %c0_i32_0 = arith.constant 0 : i32
    return %arg0, %c0_i32 : i32, i32
  }
  func.func @transform_1(%arg0: i32) -> (i32, i32) {
    %c0_i32 = arith.constant 0 : i32
    %c0_i32_0 = arith.constant 0 : i32
    return %arg0, %c0_i32 : i32, i32
  }
  func.func @transform_2(%arg0: i32) -> (i32, i32) {
    %c0_i32 = arith.constant 0 : i32
    %c0_i32_0 = arith.constant 0 : i32
    %c0_i32_1 = arith.constant 0 : i32
    return %c0_i32, %c0_i32_0 : i32, i32
  }
  func.func @transform_3(%arg0: i32) -> (i32, i32) {
    %c0_i32 = arith.constant 0 : i32
    %c0_i32_0 = arith.constant 0 : i32
    %c0_i32_1 = arith.constant 0 : i32
    return %c0_i32, %c0_i32_0 : i32, i32
  }
  func.func @transform_4(%arg0: i32) -> (i32, i32) {
    %c0_i32 = arith.constant 0 : i32
    %c0_i32_0 = arith.constant 0 : i32
    %c0_i32_1 = arith.constant 0 : i32
    return %c0_i32, %c0_i32_0 : i32, i32
  }
  func.func @transform_5(%arg0: i32) -> (i32, i32) {
    %c0_i32 = arith.constant 0 : i32
    %c0_i32_0 = arith.constant 0 : i32
    %c0_i32_1 = arith.constant 0 : i32
    return %c0_i32, %c0_i32_0 : i32, i32
  }
  func.func @transform_6(%arg0: i32) -> (i32, i32) {
    %c0_i32 = arith.constant 0 : i32
    %c0_i32_0 = arith.constant 0 : i32
    return %arg0, %c0_i32 : i32, i32
  }
}

module attributes {stable_mosaic.version = 11 : i64} {
  func.func @diffusion_kernel(%arg0: i32, %arg1: i32, %arg2: memref<1x1x128xf32, #tpu.memory_space<vmem>>, %arg3: memref<1x1x128xi32, #tpu.memory_space<vmem>>, %arg4: memref<1x1x32xf32, #tpu.memory_space<vmem>>, %arg5: memref<8x32xf32, #tpu.memory_space<vmem>>, %arg6: memref<8x32xf32, #tpu.memory_space<vmem>>, %arg7: memref<8x32xf32, #tpu.memory_space<vmem>>, %arg8: memref<8x32xf32, #tpu.memory_space<vmem>>, %arg9: memref<8x1xf32, #tpu.memory_space<vmem>>, %arg10: memref<8x1xf32, #tpu.memory_space<vmem>>, %arg11: memref<32x32xf32, #tpu.memory_space<vmem>>, %arg12: memref<1x32xf32, #tpu.memory_space<vmem>>, %arg13: memref<32x32xf32, #tpu.memory_space<vmem>>, %arg14: memref<1x32xf32, #tpu.memory_space<vmem>>, %arg15: memref<2x32xf32, #tpu.memory_space<vmem>>, %arg16: memref<2x32xf32, #tpu.memory_space<vmem>>, %arg17: memref<1x1x1x128xf32, #tpu.memory_space<vmem>>) attributes {dimension_semantics = [#tpu.dimension_semantics<parallel>, #tpu.dimension_semantics<arbitrary>], iteration_bounds = array<i64: 2, 4>, scalar_prefetch = 0 : i64, scratch_operands = 0 : i64, tpu.core_type = #tpu.core_type<tc>, window_params = [{transform_indices = @transform_0, window_bounds = array<i64: 1, 1, 128>}, {transform_indices = @transform_1, window_bounds = array<i64: 1, 1, 128>}, {transform_indices = @transform_2, window_bounds = array<i64: 1, 1, 32>}, {transform_indices = @transform_3, window_bounds = array<i64: 8, 32>}, {transform_indices = @transform_4, window_bounds = array<i64: 8, 32>}, {transform_indices = @transform_5, window_bounds = array<i64: 8, 32>}, {transform_indices = @transform_6, window_bounds = array<i64: 8, 32>}, {transform_indices = @transform_7, window_bounds = array<i64: 8, 1>}, {transform_indices = @transform_8, window_bounds = array<i64: 8, 1>}, {pipeline_mode = #tpu.pipeline_mode<synchronous>, transform_indices = @transform_9, window_bounds = array<i64: 32, 32>}, {pipeline_mode = #tpu.pipeline_mode<synchronous>, transform_indices = @transform_10, window_bounds = array<i64: 1, 32>}, {pipeline_mode = #tpu.pipeline_mode<synchronous>, transform_indices = @transform_11, window_bounds = array<i64: 32, 32>}, {pipeline_mode = #tpu.pipeline_mode<synchronous>, transform_indices = @transform_12, window_bounds = array<i64: 1, 32>}, {pipeline_mode = #tpu.pipeline_mode<synchronous>, transform_indices = @transform_13, window_bounds = array<i64: 2, 32>}, {pipeline_mode = #tpu.pipeline_mode<synchronous>, transform_indices = @transform_14, window_bounds = array<i64: 2, 32>}, {transform_indices = @transform_15, window_bounds = array<i64: 1, 1, 1, 128>}]} {
    %c0 = arith.constant 0 : index
    %c0_0 = arith.constant 0 : index
    %c0_1 = arith.constant 0 : index
    %0 = vector.load %arg2[%c0, %c0_0, %c0_1] : memref<1x1x128xf32, #tpu.memory_space<vmem>>, vector<1x1x1xf32>
    %1 = vector.extract %0[0, 0, 0] : f32 from vector<1x1x1xf32>
    %c0_2 = arith.constant 0 : index
    %c0_3 = arith.constant 0 : index
    %c1 = arith.constant 1 : index
    %2 = vector.load %arg2[%c0_2, %c0_3, %c1] : memref<1x1x128xf32, #tpu.memory_space<vmem>>, vector<1x1x1xf32>
    %3 = vector.extract %2[0, 0, 0] : f32 from vector<1x1x1xf32>
    %c0_4 = arith.constant 0 : index
    %c0_5 = arith.constant 0 : index
    %c2 = arith.constant 2 : index
    %4 = vector.load %arg2[%c0_4, %c0_5, %c2] : memref<1x1x128xf32, #tpu.memory_space<vmem>>, vector<1x1x1xf32>
    %5 = vector.extract %4[0, 0, 0] : f32 from vector<1x1x1xf32>
    %c0_6 = arith.constant 0 : index
    %c0_7 = arith.constant 0 : index
    %c0_8 = arith.constant 0 : index
    %6 = vector.load %arg4[%c0_6, %c0_7, %c0_8] : memref<1x1x32xf32, #tpu.memory_space<vmem>>, vector<1x1x32xf32>
    %7 = vector.shape_cast %6 : vector<1x1x32xf32> to vector<1x32xf32>
    %c0_9 = arith.constant 0 : index
    %c0_10 = arith.constant 0 : index
    %8 = vector.load %arg15[%c0_9, %c0_10] : memref<2x32xf32, #tpu.memory_space<vmem>>, vector<2x32xf32>
    %c0_11 = arith.constant 0 : index
    %c0_12 = arith.constant 0 : index
    %9 = vector.load %arg16[%c0_11, %c0_12] : memref<2x32xf32, #tpu.memory_space<vmem>>, vector<2x32xf32>
    %10 = vector.extract_strided_slice %8 {offsets = [0, 0], sizes = [1, 32], strides = [1, 1]} : vector<2x32xf32> to vector<1x32xf32>
    %11 = vector.extract_strided_slice %9 {offsets = [0, 0], sizes = [1, 32], strides = [1, 1]} : vector<2x32xf32> to vector<1x32xf32>
    %12 = vector.extract_strided_slice %8 {offsets = [1, 0], sizes = [1, 32], strides = [1, 1]} : vector<2x32xf32> to vector<1x32xf32>
    %13 = vector.extract_strided_slice %9 {offsets = [1, 0], sizes = [1, 32], strides = [1, 1]} : vector<2x32xf32> to vector<1x32xf32>
    %c0_13 = arith.constant 0 : index
    %c0_14 = arith.constant 0 : index
    %14 = vector.load %arg11[%c0_13, %c0_14] : memref<32x32xf32, #tpu.memory_space<vmem>>, vector<32x32xf32>
    %c0_15 = arith.constant 0 : index
    %c0_16 = arith.constant 0 : index
    %15 = vector.load %arg12[%c0_15, %c0_16] : memref<1x32xf32, #tpu.memory_space<vmem>>, vector<1x32xf32>
    %c0_17 = arith.constant 0 : index
    %c0_18 = arith.constant 0 : index
    %16 = vector.load %arg13[%c0_17, %c0_18] : memref<32x32xf32, #tpu.memory_space<vmem>>, vector<32x32xf32>
    %c0_19 = arith.constant 0 : index
    %c0_20 = arith.constant 0 : index
    %17 = vector.load %arg14[%c0_19, %c0_20] : memref<1x32xf32, #tpu.memory_space<vmem>>, vector<1x32xf32>
    %c0_21 = arith.constant 0 : index
    %c0_22 = arith.constant 0 : index
    %18 = vector.load %arg5[%c0_21, %c0_22] : memref<8x32xf32, #tpu.memory_space<vmem>>, vector<8x32xf32>
    %19 = vector.broadcast %7 : vector<1x32xf32> to vector<8x32xf32>
    %20 = arith.addf %18, %19 : vector<8x32xf32>
    %cst = arith.constant dense<0.000000e+00> : vector<8xf32>
    %21 = vector.multi_reduction <add>, %20, %cst [1] : vector<8x32xf32> to vector<8xf32>
    %22 = vector.shape_cast %21 : vector<8xf32> to vector<8x1xf32>
    %cst_23 = arith.constant 3.200000e+01 : f32
    %23 = vector.broadcast %cst_23 : f32 to vector<8x1xf32>
    %24 = arith.divf %22, %23 : vector<8x1xf32>
    %25 = vector.broadcast %24 : vector<8x1xf32> to vector<8x32xf32>
    %26 = arith.subf %20, %25 : vector<8x32xf32>
    %27 = arith.mulf %26, %26 : vector<8x32xf32>
    %cst_24 = arith.constant dense<0.000000e+00> : vector<8xf32>
    %28 = vector.multi_reduction <add>, %27, %cst_24 [1] : vector<8x32xf32> to vector<8xf32>
    %29 = vector.shape_cast %28 : vector<8xf32> to vector<8x1xf32>
    %cst_25 = arith.constant 3.200000e+01 : f32
    %30 = vector.broadcast %cst_25 : f32 to vector<8x1xf32>
    %31 = arith.divf %29, %30 : vector<8x1xf32>
    %32 = vector.broadcast %24 : vector<8x1xf32> to vector<8x32xf32>
    %33 = arith.subf %20, %32 : vector<8x32xf32>
    %cst_26 = arith.constant 9.99999974E-6 : f32
    %34 = vector.broadcast %cst_26 : f32 to vector<8x1xf32>
    %35 = arith.addf %31, %34 : vector<8x1xf32>
    %36 = math.rsqrt %35 : vector<8x1xf32>
    %37 = vector.broadcast %36 : vector<8x1xf32> to vector<8x32xf32>
    %38 = arith.mulf %33, %37 : vector<8x32xf32>
    %39 = vector.broadcast %10 : vector<1x32xf32> to vector<8x32xf32>
    %40 = arith.mulf %38, %39 : vector<8x32xf32>
    %41 = vector.broadcast %11 : vector<1x32xf32> to vector<8x32xf32>
    %42 = arith.addf %40, %41 : vector<8x32xf32>
    %cst_27 = arith.constant dense<0.000000e+00> : vector<8x32xf32>
    %43 = tpu.matmul %42, %14, %cst_27 {dimension_numbers = #tpu.dot_dimension_numbers<[1], [0], [0], [1], [0, 0, 1, 1], [], []>} : vector<8x32xf32>, vector<32x32xf32>, vector<8x32xf32> -> vector<8x32xf32>
    %44 = vector.broadcast %15 : vector<1x32xf32> to vector<8x32xf32>
    %45 = arith.addf %43, %44 : vector<8x32xf32>
    %cst_28 = arith.constant 0.000000e+00 : f32
    %46 = vector.broadcast %cst_28 : f32 to vector<8x32xf32>
    %47 = arith.maximumf %45, %46 : vector<8x32xf32>
    %cst_29 = arith.constant dense<0.000000e+00> : vector<8x32xf32>
    %48 = tpu.matmul %47, %16, %cst_29 {dimension_numbers = #tpu.dot_dimension_numbers<[1], [0], [0], [1], [0, 0, 1, 1], [], []>} : vector<8x32xf32>, vector<32x32xf32>, vector<8x32xf32> -> vector<8x32xf32>
    %49 = vector.broadcast %17 : vector<1x32xf32> to vector<8x32xf32>
    %50 = arith.addf %48, %49 : vector<8x32xf32>
    %51 = arith.addf %42, %50 : vector<8x32xf32>
    %cst_30 = arith.constant dense<0.000000e+00> : vector<8xf32>
    %52 = vector.multi_reduction <add>, %51, %cst_30 [1] : vector<8x32xf32> to vector<8xf32>
    %53 = vector.shape_cast %52 : vector<8xf32> to vector<8x1xf32>
    %cst_31 = arith.constant 3.200000e+01 : f32
    %54 = vector.broadcast %cst_31 : f32 to vector<8x1xf32>
    %55 = arith.divf %53, %54 : vector<8x1xf32>
    %56 = vector.broadcast %55 : vector<8x1xf32> to vector<8x32xf32>
    %57 = arith.subf %51, %56 : vector<8x32xf32>
    %58 = arith.mulf %57, %57 : vector<8x32xf32>
    %cst_32 = arith.constant dense<0.000000e+00> : vector<8xf32>
    %59 = vector.multi_reduction <add>, %58, %cst_32 [1] : vector<8x32xf32> to vector<8xf32>
    %60 = vector.shape_cast %59 : vector<8xf32> to vector<8x1xf32>
    %cst_33 = arith.constant 3.200000e+01 : f32
    %61 = vector.broadcast %cst_33 : f32 to vector<8x1xf32>
    %62 = arith.divf %60, %61 : vector<8x1xf32>
    %63 = vector.broadcast %55 : vector<8x1xf32> to vector<8x32xf32>
    %64 = arith.subf %51, %63 : vector<8x32xf32>
    %cst_34 = arith.constant 9.99999974E-6 : f32
    %65 = vector.broadcast %cst_34 : f32 to vector<8x1xf32>
    %66 = arith.addf %62, %65 : vector<8x1xf32>
    %67 = math.rsqrt %66 : vector<8x1xf32>
    %68 = vector.broadcast %67 : vector<8x1xf32> to vector<8x32xf32>
    %69 = arith.mulf %64, %68 : vector<8x32xf32>
    %70 = vector.broadcast %12 : vector<1x32xf32> to vector<8x32xf32>
    %71 = arith.mulf %69, %70 : vector<8x32xf32>
    %72 = vector.broadcast %13 : vector<1x32xf32> to vector<8x32xf32>
    %73 = arith.addf %71, %72 : vector<8x32xf32>
    %c0_35 = arith.constant 0 : index
    %c0_36 = arith.constant 0 : index
    %74 = vector.load %arg6[%c0_35, %c0_36] : memref<8x32xf32, #tpu.memory_space<vmem>>, vector<8x32xf32>
    %75 = vector.broadcast %7 : vector<1x32xf32> to vector<8x32xf32>
    %76 = arith.addf %74, %75 : vector<8x32xf32>
    %cst_37 = arith.constant dense<0.000000e+00> : vector<8xf32>
    %77 = vector.multi_reduction <add>, %76, %cst_37 [1] : vector<8x32xf32> to vector<8xf32>
    %78 = vector.shape_cast %77 : vector<8xf32> to vector<8x1xf32>
    %cst_38 = arith.constant 3.200000e+01 : f32
    %79 = vector.broadcast %cst_38 : f32 to vector<8x1xf32>
    %80 = arith.divf %78, %79 : vector<8x1xf32>
    %81 = vector.broadcast %80 : vector<8x1xf32> to vector<8x32xf32>
    %82 = arith.subf %76, %81 : vector<8x32xf32>
    %83 = arith.mulf %82, %82 : vector<8x32xf32>
    %cst_39 = arith.constant dense<0.000000e+00> : vector<8xf32>
    %84 = vector.multi_reduction <add>, %83, %cst_39 [1] : vector<8x32xf32> to vector<8xf32>
    %85 = vector.shape_cast %84 : vector<8xf32> to vector<8x1xf32>
    %cst_40 = arith.constant 3.200000e+01 : f32
    %86 = vector.broadcast %cst_40 : f32 to vector<8x1xf32>
    %87 = arith.divf %85, %86 : vector<8x1xf32>
    %88 = vector.broadcast %80 : vector<8x1xf32> to vector<8x32xf32>
    %89 = arith.subf %76, %88 : vector<8x32xf32>
    %cst_41 = arith.constant 9.99999974E-6 : f32
    %90 = vector.broadcast %cst_41 : f32 to vector<8x1xf32>
    %91 = arith.addf %87, %90 : vector<8x1xf32>
    %92 = math.rsqrt %91 : vector<8x1xf32>
    %93 = vector.broadcast %92 : vector<8x1xf32> to vector<8x32xf32>
    %94 = arith.mulf %89, %93 : vector<8x32xf32>
    %95 = vector.broadcast %10 : vector<1x32xf32> to vector<8x32xf32>
    %96 = arith.mulf %94, %95 : vector<8x32xf32>
    %97 = vector.broadcast %11 : vector<1x32xf32> to vector<8x32xf32>
    %98 = arith.addf %96, %97 : vector<8x32xf32>
    %cst_42 = arith.constant dense<0.000000e+00> : vector<8x32xf32>
    %99 = tpu.matmul %98, %14, %cst_42 {dimension_numbers = #tpu.dot_dimension_numbers<[1], [0], [0], [1], [0, 0, 1, 1], [], []>} : vector<8x32xf32>, vector<32x32xf32>, vector<8x32xf32> -> vector<8x32xf32>
    %100 = vector.broadcast %15 : vector<1x32xf32> to vector<8x32xf32>
    %101 = arith.addf %99, %100 : vector<8x32xf32>
    %cst_43 = arith.constant 0.000000e+00 : f32
    %102 = vector.broadcast %cst_43 : f32 to vector<8x32xf32>
    %103 = arith.maximumf %101, %102 : vector<8x32xf32>
    %cst_44 = arith.constant dense<0.000000e+00> : vector<8x32xf32>
    %104 = tpu.matmul %103, %16, %cst_44 {dimension_numbers = #tpu.dot_dimension_numbers<[1], [0], [0], [1], [0, 0, 1, 1], [], []>} : vector<8x32xf32>, vector<32x32xf32>, vector<8x32xf32> -> vector<8x32xf32>
    %105 = vector.broadcast %17 : vector<1x32xf32> to vector<8x32xf32>
    %106 = arith.addf %104, %105 : vector<8x32xf32>
    %107 = arith.addf %98, %106 : vector<8x32xf32>
    %cst_45 = arith.constant dense<0.000000e+00> : vector<8xf32>
    %108 = vector.multi_reduction <add>, %107, %cst_45 [1] : vector<8x32xf32> to vector<8xf32>
    %109 = vector.shape_cast %108 : vector<8xf32> to vector<8x1xf32>
    %cst_46 = arith.constant 3.200000e+01 : f32
    %110 = vector.broadcast %cst_46 : f32 to vector<8x1xf32>
    %111 = arith.divf %109, %110 : vector<8x1xf32>
    %112 = vector.broadcast %111 : vector<8x1xf32> to vector<8x32xf32>
    %113 = arith.subf %107, %112 : vector<8x32xf32>
    %114 = arith.mulf %113, %113 : vector<8x32xf32>
    %cst_47 = arith.constant dense<0.000000e+00> : vector<8xf32>
    %115 = vector.multi_reduction <add>, %114, %cst_47 [1] : vector<8x32xf32> to vector<8xf32>
    %116 = vector.shape_cast %115 : vector<8xf32> to vector<8x1xf32>
    %cst_48 = arith.constant 3.200000e+01 : f32
    %117 = vector.broadcast %cst_48 : f32 to vector<8x1xf32>
    %118 = arith.divf %116, %117 : vector<8x1xf32>
    %119 = vector.broadcast %111 : vector<8x1xf32> to vector<8x32xf32>
    %120 = arith.subf %107, %119 : vector<8x32xf32>
    %cst_49 = arith.constant 9.99999974E-6 : f32
    %121 = vector.broadcast %cst_49 : f32 to vector<8x1xf32>
    %122 = arith.addf %118, %121 : vector<8x1xf32>
    %123 = math.rsqrt %122 : vector<8x1xf32>
    %124 = vector.broadcast %123 : vector<8x1xf32> to vector<8x32xf32>
    %125 = arith.mulf %120, %124 : vector<8x32xf32>
    %126 = vector.broadcast %12 : vector<1x32xf32> to vector<8x32xf32>
    %127 = arith.mulf %125, %126 : vector<8x32xf32>
    %128 = vector.broadcast %13 : vector<1x32xf32> to vector<8x32xf32>
    %129 = arith.addf %127, %128 : vector<8x32xf32>
    %130 = tpu.iota {dimensions = array<i32: 0>} : vector<8x32xi32>
    %131 = tpu.iota {dimensions = array<i32: 1>} : vector<8x32xi32>
    %c8_i32 = arith.constant 8 : i32
    %132 = arith.muli %arg0, %c8_i32 : i32
    %133 = vector.broadcast %132 : i32 to vector<8x32xi32>
    %134 = arith.addi %133, %130 : vector<8x32xi32>
    %c32_i32 = arith.constant 32 : i32
    %135 = vector.broadcast %c32_i32 : i32 to vector<8x32xi32>
    %136 = arith.muli %134, %135 : vector<8x32xi32>
    %137 = arith.addi %136, %131 : vector<8x32xi32>
    %c0_50 = arith.constant 0 : index
    %c0_51 = arith.constant 0 : index
    %c0_52 = arith.constant 0 : index
    %138 = vector.load %arg3[%c0_50, %c0_51, %c0_52] : memref<1x1x128xi32, #tpu.memory_space<vmem>>, vector<1x1x1xi32>
    %139 = vector.extract %138[0, 0, 0] : i32 from vector<1x1x1xi32>
    %140 = vector.broadcast %139 : i32 to vector<8x32xi32>
    %141 = arith.xori %137, %140 : vector<8x32xi32>
    %c16_i32 = arith.constant 16 : i32
    %142 = vector.broadcast %c16_i32 : i32 to vector<8x32xi32>
    %143 = arith.shrui %141, %142 : vector<8x32xi32>
    %144 = arith.xori %141, %143 : vector<8x32xi32>
    %c2146121005_i32 = arith.constant 2146121005 : i32
    %145 = vector.broadcast %c2146121005_i32 : i32 to vector<8x32xi32>
    %146 = arith.muli %144, %145 : vector<8x32xi32>
    %c15_i32 = arith.constant 15 : i32
    %147 = vector.broadcast %c15_i32 : i32 to vector<8x32xi32>
    %148 = arith.shrui %146, %147 : vector<8x32xi32>
    %149 = arith.xori %146, %148 : vector<8x32xi32>
    %c-2073254261_i32 = arith.constant -2073254261 : i32
    %150 = vector.broadcast %c-2073254261_i32 : i32 to vector<8x32xi32>
    %151 = arith.muli %149, %150 : vector<8x32xi32>
    %c16_i32_53 = arith.constant 16 : i32
    %152 = vector.broadcast %c16_i32_53 : i32 to vector<8x32xi32>
    %153 = arith.shrui %151, %152 : vector<8x32xi32>
    %154 = arith.xori %151, %153 : vector<8x32xi32>
    %c65535_i32 = arith.constant 65535 : i32
    %155 = vector.broadcast %c65535_i32 : i32 to vector<8x32xi32>
    %156 = arith.andi %154, %155 : vector<8x32xi32>
    %157 = arith.sitofp %156 : vector<8x32xi32> to vector<8x32xf32>
    %cst_54 = arith.constant 1.52587891E-5 : f32
    %158 = vector.broadcast %cst_54 : f32 to vector<8x32xf32>
    %159 = arith.mulf %157, %158 : vector<8x32xf32>
    %c16_i32_55 = arith.constant 16 : i32
    %160 = vector.broadcast %c16_i32_55 : i32 to vector<8x32xi32>
    %161 = arith.shrui %154, %160 : vector<8x32xi32>
    %162 = arith.sitofp %161 : vector<8x32xi32> to vector<8x32xf32>
    %cst_56 = arith.constant 1.52587891E-5 : f32
    %163 = vector.broadcast %cst_56 : f32 to vector<8x32xf32>
    %164 = arith.mulf %162, %163 : vector<8x32xf32>
    %cst_57 = arith.constant 1.000000e+00 : f32
    %165 = vector.broadcast %cst_57 : f32 to vector<8x32xf32>
    %166 = arith.subf %165, %159 : vector<8x32xf32>
    %167 = math.log %166 : vector<8x32xf32>
    %cst_58 = arith.constant -2.000000e+00 : f32
    %168 = vector.broadcast %cst_58 : f32 to vector<8x32xf32>
    %169 = arith.mulf %168, %167 : vector<8x32xf32>
    %170 = math.sqrt %169 : vector<8x32xf32>
    %cst_59 = arith.constant 6.28318548 : f32
    %171 = vector.broadcast %cst_59 : f32 to vector<8x32xf32>
    %172 = arith.mulf %171, %164 : vector<8x32xf32>
    %173 = math.cos %172 : vector<8x32xf32>
    %174 = arith.mulf %170, %173 : vector<8x32xf32>
    %175 = math.sin %172 : vector<8x32xf32>
    %176 = arith.mulf %170, %175 : vector<8x32xf32>
    %c0_60 = arith.constant 0 : index
    %c0_61 = arith.constant 0 : index
    %c1_62 = arith.constant 1 : index
    %177 = vector.load %arg3[%c0_60, %c0_61, %c1_62] : memref<1x1x128xi32, #tpu.memory_space<vmem>>, vector<1x1x1xi32>
    %178 = vector.extract %177[0, 0, 0] : i32 from vector<1x1x1xi32>
    %179 = vector.broadcast %178 : i32 to vector<8x32xi32>
    %180 = arith.xori %137, %179 : vector<8x32xi32>
    %c16_i32_63 = arith.constant 16 : i32
    %181 = vector.broadcast %c16_i32_63 : i32 to vector<8x32xi32>
    %182 = arith.shrui %180, %181 : vector<8x32xi32>
    %183 = arith.xori %180, %182 : vector<8x32xi32>
    %c2146121005_i32_64 = arith.constant 2146121005 : i32
    %184 = vector.broadcast %c2146121005_i32_64 : i32 to vector<8x32xi32>
    %185 = arith.muli %183, %184 : vector<8x32xi32>
    %c15_i32_65 = arith.constant 15 : i32
    %186 = vector.broadcast %c15_i32_65 : i32 to vector<8x32xi32>
    %187 = arith.shrui %185, %186 : vector<8x32xi32>
    %188 = arith.xori %185, %187 : vector<8x32xi32>
    %c-2073254261_i32_66 = arith.constant -2073254261 : i32
    %189 = vector.broadcast %c-2073254261_i32_66 : i32 to vector<8x32xi32>
    %190 = arith.muli %188, %189 : vector<8x32xi32>
    %c16_i32_67 = arith.constant 16 : i32
    %191 = vector.broadcast %c16_i32_67 : i32 to vector<8x32xi32>
    %192 = arith.shrui %190, %191 : vector<8x32xi32>
    %193 = arith.xori %190, %192 : vector<8x32xi32>
    %c65535_i32_68 = arith.constant 65535 : i32
    %194 = vector.broadcast %c65535_i32_68 : i32 to vector<8x32xi32>
    %195 = arith.andi %193, %194 : vector<8x32xi32>
    %196 = arith.sitofp %195 : vector<8x32xi32> to vector<8x32xf32>
    %cst_69 = arith.constant 1.52587891E-5 : f32
    %197 = vector.broadcast %cst_69 : f32 to vector<8x32xf32>
    %198 = arith.mulf %196, %197 : vector<8x32xf32>
    %c16_i32_70 = arith.constant 16 : i32
    %199 = vector.broadcast %c16_i32_70 : i32 to vector<8x32xi32>
    %200 = arith.shrui %193, %199 : vector<8x32xi32>
    %201 = arith.sitofp %200 : vector<8x32xi32> to vector<8x32xf32>
    %cst_71 = arith.constant 1.52587891E-5 : f32
    %202 = vector.broadcast %cst_71 : f32 to vector<8x32xf32>
    %203 = arith.mulf %201, %202 : vector<8x32xf32>
    %cst_72 = arith.constant 1.000000e+00 : f32
    %204 = vector.broadcast %cst_72 : f32 to vector<8x32xf32>
    %205 = arith.subf %204, %198 : vector<8x32xf32>
    %206 = math.log %205 : vector<8x32xf32>
    %cst_73 = arith.constant -2.000000e+00 : f32
    %207 = vector.broadcast %cst_73 : f32 to vector<8x32xf32>
    %208 = arith.mulf %207, %206 : vector<8x32xf32>
    %209 = math.sqrt %208 : vector<8x32xf32>
    %cst_74 = arith.constant 6.28318548 : f32
    %210 = vector.broadcast %cst_74 : f32 to vector<8x32xf32>
    %211 = arith.mulf %210, %203 : vector<8x32xf32>
    %212 = math.cos %211 : vector<8x32xf32>
    %213 = arith.mulf %209, %212 : vector<8x32xf32>
    %214 = vector.broadcast %1 : f32 to vector<8x32xf32>
    %215 = arith.mulf %214, %174 : vector<8x32xf32>
    %216 = arith.addf %73, %215 : vector<8x32xf32>
    %217 = vector.broadcast %1 : f32 to vector<8x32xf32>
    %218 = arith.mulf %217, %176 : vector<8x32xf32>
    %219 = arith.addf %129, %218 : vector<8x32xf32>
    %c0_75 = arith.constant 0 : index
    %c0_76 = arith.constant 0 : index
    %220 = vector.load %arg7[%c0_75, %c0_76] : memref<8x32xf32, #tpu.memory_space<vmem>>, vector<8x32xf32>
    %221 = vector.broadcast %3 : f32 to vector<8x32xf32>
    %222 = arith.mulf %221, %220 : vector<8x32xf32>
    %223 = vector.broadcast %5 : f32 to vector<8x32xf32>
    %224 = arith.mulf %223, %213 : vector<8x32xf32>
    %225 = arith.addf %222, %224 : vector<8x32xf32>
    %c0_77 = arith.constant 0 : index
    %c0_78 = arith.constant 0 : index
    %226 = vector.load %arg8[%c0_77, %c0_78] : memref<8x32xf32, #tpu.memory_space<vmem>>, vector<8x32xf32>
    %c0_79 = arith.constant 0 : index
    %c0_80 = arith.constant 0 : index
    %227 = vector.load %arg9[%c0_79, %c0_80] : memref<8x1xf32, #tpu.memory_space<vmem>>, vector<8x1xf32>
    %c0_81 = arith.constant 0 : index
    %c0_82 = arith.constant 0 : index
    %228 = vector.load %arg10[%c0_81, %c0_82] : memref<8x1xf32, #tpu.memory_space<vmem>>, vector<8x1xf32>
    %229 = arith.mulf %225, %216 : vector<8x32xf32>
    %cst_83 = arith.constant dense<0.000000e+00> : vector<8xf32>
    %230 = vector.multi_reduction <add>, %229, %cst_83 [1] : vector<8x32xf32> to vector<8xf32>
    %231 = vector.shape_cast %230 : vector<8xf32> to vector<8x1xf32>
    %232 = arith.mulf %226, %216 : vector<8x32xf32>
    %cst_84 = arith.constant dense<0.000000e+00> : vector<8xf32>
    %233 = vector.multi_reduction <add>, %232, %cst_84 [1] : vector<8x32xf32> to vector<8xf32>
    %234 = vector.shape_cast %233 : vector<8xf32> to vector<8x1xf32>
    %cst_85 = arith.constant 0.000000e+00 : f32
    %235 = vector.broadcast %cst_85 : f32 to vector<8x1xf32>
    %236 = arith.subf %235, %231 : vector<8x1xf32>
    %cst_86 = arith.constant 0.000000e+00 : f32
    %237 = vector.broadcast %cst_86 : f32 to vector<8x1xf32>
    %238 = arith.maximumf %236, %237 : vector<8x1xf32>
    %239 = math.absf %236 : vector<8x1xf32>
    %cst_87 = arith.constant 0.000000e+00 : f32
    %240 = vector.broadcast %cst_87 : f32 to vector<8x1xf32>
    %241 = arith.subf %240, %239 : vector<8x1xf32>
    %242 = math.exp %241 : vector<8x1xf32>
    %cst_88 = arith.constant 1.000000e+00 : f32
    %243 = vector.broadcast %cst_88 : f32 to vector<8x1xf32>
    %244 = arith.addf %243, %242 : vector<8x1xf32>
    %245 = math.log %244 : vector<8x1xf32>
    %246 = arith.addf %238, %245 : vector<8x1xf32>
    %cst_89 = arith.constant 0.000000e+00 : f32
    %247 = vector.broadcast %cst_89 : f32 to vector<8x1xf32>
    %248 = arith.maximumf %234, %247 : vector<8x1xf32>
    %249 = math.absf %234 : vector<8x1xf32>
    %cst_90 = arith.constant 0.000000e+00 : f32
    %250 = vector.broadcast %cst_90 : f32 to vector<8x1xf32>
    %251 = arith.subf %250, %249 : vector<8x1xf32>
    %252 = math.exp %251 : vector<8x1xf32>
    %cst_91 = arith.constant 1.000000e+00 : f32
    %253 = vector.broadcast %cst_91 : f32 to vector<8x1xf32>
    %254 = arith.addf %253, %252 : vector<8x1xf32>
    %255 = math.log %254 : vector<8x1xf32>
    %256 = arith.addf %248, %255 : vector<8x1xf32>
    %257 = arith.addf %246, %256 : vector<8x1xf32>
    %258 = arith.mulf %257, %227 : vector<8x1xf32>
    %259 = arith.subf %231, %234 : vector<8x1xf32>
    %cst_92 = arith.constant 0.000000e+00 : f32
    %260 = vector.broadcast %cst_92 : f32 to vector<8x1xf32>
    %261 = arith.cmpf ogt, %259, %260 : vector<8x1xf32>
    %cst_93 = arith.constant 0.000000e+00 : f32
    %262 = vector.broadcast %cst_93 : f32 to vector<8x1xf32>
    %263 = arith.cmpf olt, %259, %262 : vector<8x1xf32>
    %cst_94 = arith.constant -1.000000e+00 : f32
    %cst_95 = arith.constant 0.000000e+00 : f32
    %264 = vector.broadcast %cst_94 : f32 to vector<8x1xf32>
    %265 = vector.broadcast %cst_95 : f32 to vector<8x1xf32>
    %266 = arith.select %263, %264, %265 : vector<8x1xi1>, vector<8x1xf32>
    %cst_96 = arith.constant 1.000000e+00 : f32
    %267 = vector.broadcast %cst_96 : f32 to vector<8x1xf32>
    %268 = arith.select %261, %267, %266 : vector<8x1xi1>, vector<8x1xf32>
    %269 = vector.shape_cast %258 : vector<8x1xf32> to vector<1x8x1xf32>
    %cst_97 = arith.constant dense<0.000000e+00> : vector<1xf32>
    %270 = vector.multi_reduction <add>, %269, %cst_97 [1, 2] : vector<1x8x1xf32> to vector<1xf32>
    %271 = vector.shape_cast %270 : vector<1xf32> to vector<1x1x1xf32>
    %272 = vector.extract %271[0, 0, 0] : f32 from vector<1x1x1xf32>
    %cst_98 = arith.constant 1.000000e+00 : f32
    %273 = vector.broadcast %cst_98 : f32 to vector<8x1xf32>
    %274 = arith.addf %268, %273 : vector<8x1xf32>
    %cst_99 = arith.constant 5.000000e-01 : f32
    %275 = vector.broadcast %cst_99 : f32 to vector<8x1xf32>
    %276 = arith.mulf %274, %275 : vector<8x1xf32>
    %277 = arith.mulf %276, %227 : vector<8x1xf32>
    %278 = vector.shape_cast %277 : vector<8x1xf32> to vector<1x8x1xf32>
    %cst_100 = arith.constant dense<0.000000e+00> : vector<1xf32>
    %279 = vector.multi_reduction <add>, %278, %cst_100 [1, 2] : vector<1x8x1xf32> to vector<1xf32>
    %280 = vector.shape_cast %279 : vector<1xf32> to vector<1x1x1xf32>
    %281 = vector.extract %280[0, 0, 0] : f32 from vector<1x1x1xf32>
    %282 = arith.mulf %225, %219 : vector<8x32xf32>
    %cst_101 = arith.constant dense<0.000000e+00> : vector<8xf32>
    %283 = vector.multi_reduction <add>, %282, %cst_101 [1] : vector<8x32xf32> to vector<8xf32>
    %284 = vector.shape_cast %283 : vector<8xf32> to vector<8x1xf32>
    %285 = arith.mulf %226, %219 : vector<8x32xf32>
    %cst_102 = arith.constant dense<0.000000e+00> : vector<8xf32>
    %286 = vector.multi_reduction <add>, %285, %cst_102 [1] : vector<8x32xf32> to vector<8xf32>
    %287 = vector.shape_cast %286 : vector<8xf32> to vector<8x1xf32>
    %cst_103 = arith.constant 0.000000e+00 : f32
    %288 = vector.broadcast %cst_103 : f32 to vector<8x1xf32>
    %289 = arith.subf %288, %284 : vector<8x1xf32>
    %cst_104 = arith.constant 0.000000e+00 : f32
    %290 = vector.broadcast %cst_104 : f32 to vector<8x1xf32>
    %291 = arith.maximumf %289, %290 : vector<8x1xf32>
    %292 = math.absf %289 : vector<8x1xf32>
    %cst_105 = arith.constant 0.000000e+00 : f32
    %293 = vector.broadcast %cst_105 : f32 to vector<8x1xf32>
    %294 = arith.subf %293, %292 : vector<8x1xf32>
    %295 = math.exp %294 : vector<8x1xf32>
    %cst_106 = arith.constant 1.000000e+00 : f32
    %296 = vector.broadcast %cst_106 : f32 to vector<8x1xf32>
    %297 = arith.addf %296, %295 : vector<8x1xf32>
    %298 = math.log %297 : vector<8x1xf32>
    %299 = arith.addf %291, %298 : vector<8x1xf32>
    %cst_107 = arith.constant 0.000000e+00 : f32
    %300 = vector.broadcast %cst_107 : f32 to vector<8x1xf32>
    %301 = arith.maximumf %287, %300 : vector<8x1xf32>
    %302 = math.absf %287 : vector<8x1xf32>
    %cst_108 = arith.constant 0.000000e+00 : f32
    %303 = vector.broadcast %cst_108 : f32 to vector<8x1xf32>
    %304 = arith.subf %303, %302 : vector<8x1xf32>
    %305 = math.exp %304 : vector<8x1xf32>
    %cst_109 = arith.constant 1.000000e+00 : f32
    %306 = vector.broadcast %cst_109 : f32 to vector<8x1xf32>
    %307 = arith.addf %306, %305 : vector<8x1xf32>
    %308 = math.log %307 : vector<8x1xf32>
    %309 = arith.addf %301, %308 : vector<8x1xf32>
    %310 = arith.addf %299, %309 : vector<8x1xf32>
    %311 = arith.mulf %310, %228 : vector<8x1xf32>
    %312 = vector.shape_cast %311 : vector<8x1xf32> to vector<1x8x1xf32>
    %cst_110 = arith.constant dense<0.000000e+00> : vector<1xf32>
    %313 = vector.multi_reduction <add>, %312, %cst_110 [1, 2] : vector<1x8x1xf32> to vector<1xf32>
    %314 = vector.shape_cast %313 : vector<1xf32> to vector<1x1x1xf32>
    %315 = vector.extract %314[0, 0, 0] : f32 from vector<1x1x1xf32>
    %316 = vector.shape_cast %227 : vector<8x1xf32> to vector<1x8x1xf32>
    %cst_111 = arith.constant dense<0.000000e+00> : vector<1xf32>
    %317 = vector.multi_reduction <add>, %316, %cst_111 [1, 2] : vector<1x8x1xf32> to vector<1xf32>
    %318 = vector.shape_cast %317 : vector<1xf32> to vector<1x1x1xf32>
    %319 = vector.extract %318[0, 0, 0] : f32 from vector<1x1x1xf32>
    %320 = vector.shape_cast %228 : vector<8x1xf32> to vector<1x8x1xf32>
    %cst_112 = arith.constant dense<0.000000e+00> : vector<1xf32>
    %321 = vector.multi_reduction <add>, %320, %cst_112 [1, 2] : vector<1x8x1xf32> to vector<1xf32>
    %322 = vector.shape_cast %321 : vector<1xf32> to vector<1x1x1xf32>
    %323 = vector.extract %322[0, 0, 0] : f32 from vector<1x1x1xf32>
    %324 = tpu.iota {dimensions = array<i32: 1>} : vector<1x128xi32>
    %c0_i32 = arith.constant 0 : i32
    %325 = vector.broadcast %c0_i32 : i32 to vector<1x128xi32>
    %326 = arith.cmpi eq, %324, %325 : vector<1x128xi32>
    %cst_113 = arith.constant 0.000000e+00 : f32
    %327 = vector.broadcast %272 : f32 to vector<1x128xf32>
    %328 = vector.broadcast %cst_113 : f32 to vector<1x128xf32>
    %329 = arith.select %326, %327, %328 : vector<1x128xi1>, vector<1x128xf32>
    %c1_i32 = arith.constant 1 : i32
    %330 = vector.broadcast %c1_i32 : i32 to vector<1x128xi32>
    %331 = arith.cmpi eq, %324, %330 : vector<1x128xi32>
    %cst_114 = arith.constant 0.000000e+00 : f32
    %332 = vector.broadcast %319 : f32 to vector<1x128xf32>
    %333 = vector.broadcast %cst_114 : f32 to vector<1x128xf32>
    %334 = arith.select %331, %332, %333 : vector<1x128xi1>, vector<1x128xf32>
    %335 = arith.addf %329, %334 : vector<1x128xf32>
    %c2_i32 = arith.constant 2 : i32
    %336 = vector.broadcast %c2_i32 : i32 to vector<1x128xi32>
    %337 = arith.cmpi eq, %324, %336 : vector<1x128xi32>
    %cst_115 = arith.constant 0.000000e+00 : f32
    %338 = vector.broadcast %281 : f32 to vector<1x128xf32>
    %339 = vector.broadcast %cst_115 : f32 to vector<1x128xf32>
    %340 = arith.select %337, %338, %339 : vector<1x128xi1>, vector<1x128xf32>
    %341 = arith.addf %335, %340 : vector<1x128xf32>
    %c3_i32 = arith.constant 3 : i32
    %342 = vector.broadcast %c3_i32 : i32 to vector<1x128xi32>
    %343 = arith.cmpi eq, %324, %342 : vector<1x128xi32>
    %cst_116 = arith.constant 0.000000e+00 : f32
    %344 = vector.broadcast %315 : f32 to vector<1x128xf32>
    %345 = vector.broadcast %cst_116 : f32 to vector<1x128xf32>
    %346 = arith.select %343, %344, %345 : vector<1x128xi1>, vector<1x128xf32>
    %347 = arith.addf %341, %346 : vector<1x128xf32>
    %c4_i32 = arith.constant 4 : i32
    %348 = vector.broadcast %c4_i32 : i32 to vector<1x128xi32>
    %349 = arith.cmpi eq, %324, %348 : vector<1x128xi32>
    %cst_117 = arith.constant 0.000000e+00 : f32
    %350 = vector.broadcast %323 : f32 to vector<1x128xf32>
    %351 = vector.broadcast %cst_117 : f32 to vector<1x128xf32>
    %352 = arith.select %349, %350, %351 : vector<1x128xi1>, vector<1x128xf32>
    %353 = arith.addf %347, %352 : vector<1x128xf32>
    %354 = vector.shape_cast %353 : vector<1x128xf32> to vector<1x1x1x128xf32>
    %c0_118 = arith.constant 0 : index
    %c0_119 = arith.constant 0 : index
    %c0_120 = arith.constant 0 : index
    %c0_121 = arith.constant 0 : index
    %355 = vector.load %arg17[%c0_118, %c0_119, %c0_120, %c0_121] : memref<1x1x1x128xf32, #tpu.memory_space<vmem>>, vector<1x1x1x128xf32>
    tpu.vector_store %arg17[%c0_118, %c0_119, %c0_120, %c0_121], %354 {strides = array<i32>} : memref<1x1x1x128xf32, #tpu.memory_space<vmem>>, vector<1x1x1x128xf32>,
    return
  }
  func.func @transform_0(%arg0: i32, %arg1: i32) -> (i32, i32, i32) {
    %c0_i32 = arith.constant 0 : i32
    %c0_i32_0 = arith.constant 0 : i32
    %c0_i32_1 = arith.constant 0 : i32
    return %arg1, %c0_i32, %c0_i32_0 : i32, i32, i32
  }
  func.func @transform_1(%arg0: i32, %arg1: i32) -> (i32, i32, i32) {
    %c0_i32 = arith.constant 0 : i32
    %c0_i32_0 = arith.constant 0 : i32
    %c0_i32_1 = arith.constant 0 : i32
    return %arg1, %c0_i32, %c0_i32_0 : i32, i32, i32
  }
  func.func @transform_2(%arg0: i32, %arg1: i32) -> (i32, i32, i32) {
    %c0_i32 = arith.constant 0 : i32
    %c0_i32_0 = arith.constant 0 : i32
    %c0_i32_1 = arith.constant 0 : i32
    return %arg1, %c0_i32, %c0_i32_0 : i32, i32, i32
  }
  func.func @transform_3(%arg0: i32, %arg1: i32) -> (i32, i32) {
    %c0_i32 = arith.constant 0 : i32
    %c0_i32_0 = arith.constant 0 : i32
    return %arg0, %c0_i32 : i32, i32
  }
  func.func @transform_4(%arg0: i32, %arg1: i32) -> (i32, i32) {
    %c0_i32 = arith.constant 0 : i32
    %c0_i32_0 = arith.constant 0 : i32
    return %arg0, %c0_i32 : i32, i32
  }
  func.func @transform_5(%arg0: i32, %arg1: i32) -> (i32, i32) {
    %c0_i32 = arith.constant 0 : i32
    %c0_i32_0 = arith.constant 0 : i32
    return %arg0, %c0_i32 : i32, i32
  }
  func.func @transform_6(%arg0: i32, %arg1: i32) -> (i32, i32) {
    %c0_i32 = arith.constant 0 : i32
    %c0_i32_0 = arith.constant 0 : i32
    return %arg0, %c0_i32 : i32, i32
  }
  func.func @transform_7(%arg0: i32, %arg1: i32) -> (i32, i32) {
    %c0_i32 = arith.constant 0 : i32
    %c0_i32_0 = arith.constant 0 : i32
    return %arg0, %c0_i32 : i32, i32
  }
  func.func @transform_8(%arg0: i32, %arg1: i32) -> (i32, i32) {
    %c0_i32 = arith.constant 0 : i32
    %c0_i32_0 = arith.constant 0 : i32
    return %arg0, %c0_i32 : i32, i32
  }
  func.func @transform_9(%arg0: i32, %arg1: i32) -> (i32, i32) {
    %c0_i32 = arith.constant 0 : i32
    %c0_i32_0 = arith.constant 0 : i32
    %c0_i32_1 = arith.constant 0 : i32
    return %c0_i32, %c0_i32_0 : i32, i32
  }
  func.func @transform_10(%arg0: i32, %arg1: i32) -> (i32, i32) {
    %c0_i32 = arith.constant 0 : i32
    %c0_i32_0 = arith.constant 0 : i32
    %c0_i32_1 = arith.constant 0 : i32
    return %c0_i32, %c0_i32_0 : i32, i32
  }
  func.func @transform_11(%arg0: i32, %arg1: i32) -> (i32, i32) {
    %c0_i32 = arith.constant 0 : i32
    %c0_i32_0 = arith.constant 0 : i32
    %c0_i32_1 = arith.constant 0 : i32
    return %c0_i32, %c0_i32_0 : i32, i32
  }
  func.func @transform_12(%arg0: i32, %arg1: i32) -> (i32, i32) {
    %c0_i32 = arith.constant 0 : i32
    %c0_i32_0 = arith.constant 0 : i32
    %c0_i32_1 = arith.constant 0 : i32
    return %c0_i32, %c0_i32_0 : i32, i32
  }
  func.func @transform_13(%arg0: i32, %arg1: i32) -> (i32, i32) {
    %c0_i32 = arith.constant 0 : i32
    %c0_i32_0 = arith.constant 0 : i32
    %c0_i32_1 = arith.constant 0 : i32
    return %c0_i32, %c0_i32_0 : i32, i32
  }
  func.func @transform_14(%arg0: i32, %arg1: i32) -> (i32, i32) {
    %c0_i32 = arith.constant 0 : i32
    %c0_i32_0 = arith.constant 0 : i32
    %c0_i32_1 = arith.constant 0 : i32
    return %c0_i32, %c0_i32_0 : i32, i32
  }
  func.func @transform_15(%arg0: i32, %arg1: i32) -> (i32, i32, i32, i32) {
    %c0_i32 = arith.constant 0 : i32
    %c0_i32_0 = arith.constant 0 : i32
    %c0_i32_1 = arith.constant 0 : i32
    return %arg0, %arg1, %c0_i32, %c0_i32_0 : i32, i32, i32, i32
  }
}

module attributes {stable_mosaic.version = 11 : i64} {
  func.func @rotate_kernel(%arg0: i32, %arg1: memref<16x32xf32, #tpu.memory_space<vmem>>, %arg2: memref<16x1xf32, #tpu.memory_space<vmem>>, %arg3: memref<1x32xf32, #tpu.memory_space<vmem>>, %arg4: memref<1x32xf32, #tpu.memory_space<vmem>>, %arg5: memref<16x32xf32, #tpu.memory_space<vmem>>) attributes {dimension_semantics = [#tpu.dimension_semantics<parallel>], iteration_bounds = array<i64: 1>, scalar_prefetch = 0 : i64, scratch_operands = 0 : i64, tpu.core_type = #tpu.core_type<tc>, window_params = [{transform_indices = @transform_0, window_bounds = array<i64: 16, 32>}, {transform_indices = @transform_1, window_bounds = array<i64: 16, 1>}, {pipeline_mode = #tpu.pipeline_mode<synchronous>, transform_indices = @transform_2, window_bounds = array<i64: 1, 32>}, {pipeline_mode = #tpu.pipeline_mode<synchronous>, transform_indices = @transform_3, window_bounds = array<i64: 1, 32>}, {transform_indices = @transform_4, window_bounds = array<i64: 16, 32>}]} {
    %c0 = arith.constant 0 : index
    %c0_0 = arith.constant 0 : index
    %0 = vector.load %arg1[%c0, %c0_0] : memref<16x32xf32, #tpu.memory_space<vmem>>, vector<16x32xf32>
    %c0_1 = arith.constant 0 : index
    %c0_2 = arith.constant 0 : index
    %1 = vector.load %arg2[%c0_1, %c0_2] : memref<16x1xf32, #tpu.memory_space<vmem>>, vector<16x1xf32>
    %c0_3 = arith.constant 0 : index
    %c0_4 = arith.constant 0 : index
    %2 = vector.load %arg3[%c0_3, %c0_4] : memref<1x32xf32, #tpu.memory_space<vmem>>, vector<1x32xf32>
    %c0_5 = arith.constant 0 : index
    %c0_6 = arith.constant 0 : index
    %3 = vector.load %arg4[%c0_5, %c0_6] : memref<1x32xf32, #tpu.memory_space<vmem>>, vector<1x32xf32>
    %4 = vector.broadcast %1 : vector<16x1xf32> to vector<16x32xf32>
    %5 = vector.broadcast %2 : vector<1x32xf32> to vector<16x32xf32>
    %6 = arith.mulf %4, %5 : vector<16x32xf32>
    %7 = vector.broadcast %3 : vector<1x32xf32> to vector<16x32xf32>
    %8 = arith.addf %6, %7 : vector<16x32xf32>
    %9 = tpu.iota {dimensions = array<i32: 1>} : vector<16x32xi32>
    %c16_i32 = arith.constant 16 : i32
    %10 = vector.broadcast %c16_i32 : i32 to vector<16x32xi32>
    %11 = arith.cmpi slt, %9, %10 : vector<16x32xi32>
    %c16_i32_7 = arith.constant 16 : i32
    %12 = vector.broadcast %c16_i32_7 : i32 to vector<16x32xi32>
    %13 = arith.subi %9, %12 : vector<16x32xi32>
    %14 = arith.select %11, %9, %13 : vector<16x32xi1>, vector<16x32xi32>
    %c15_i32 = arith.constant 15 : i32
    %15 = vector.broadcast %c15_i32 : i32 to vector<16x32xi32>
    %16 = arith.cmpi slt, %14, %15 : vector<16x32xi32>
    %17 = math.sin %8 : vector<16x32xf32>
    %18 = arith.select %16, %17, %8 : vector<16x32xi1>, vector<16x32xf32>
    %cst = arith.constant 1.93328774 : f32
    %19 = vector.broadcast %cst : f32 to vector<16x32xf32>
    %20 = arith.mulf %18, %19 : vector<16x32xf32>
    %21 = math.cos %20 : vector<16x32xf32>
    %22 = math.sin %20 : vector<16x32xf32>
    %23 = vector.extract_strided_slice %0 {offsets = [0, 16], sizes = [16, 16], strides = [1, 1]} : vector<16x32xf32> to vector<16x16xf32>
    %24 = vector.extract_strided_slice %0 {offsets = [0, 0], sizes = [16, 16], strides = [1, 1]} : vector<16x32xf32> to vector<16x16xf32>
    %25 = tpu.concatenate %23, %24 in 1 : vector<16x16xf32>, vector<16x16xf32> -> vector<16x32xf32>
    %c16_i32_8 = arith.constant 16 : i32
    %26 = vector.broadcast %c16_i32_8 : i32 to vector<16x32xi32>
    %27 = arith.cmpi slt, %9, %26 : vector<16x32xi32>
    %cst_9 = arith.constant -1.000000e+00 : f32
    %cst_10 = arith.constant 1.000000e+00 : f32
    %28 = vector.broadcast %cst_9 : f32 to vector<16x32xf32>
    %29 = vector.broadcast %cst_10 : f32 to vector<16x32xf32>
    %30 = arith.select %27, %28, %29 : vector<16x32xi1>, vector<16x32xf32>
    %31 = arith.mulf %0, %21 : vector<16x32xf32>
    %32 = arith.mulf %25, %22 : vector<16x32xf32>
    %33 = arith.mulf %32, %30 : vector<16x32xf32>
    %34 = arith.addf %31, %33 : vector<16x32xf32>
    %c0_11 = arith.constant 0 : index
    %c0_12 = arith.constant 0 : index
    %35 = vector.load %arg5[%c0_11, %c0_12] : memref<16x32xf32, #tpu.memory_space<vmem>>, vector<16x32xf32>
    tpu.vector_store %arg5[%c0_11, %c0_12], %34 {strides = array<i32>} : memref<16x32xf32, #tpu.memory_space<vmem>>, vector<16x32xf32>,
    return
  }
  func.func @transform_0(%arg0: i32) -> (i32, i32) {
    %c0_i32 = arith.constant 0 : i32
    %c0_i32_0 = arith.constant 0 : i32
    return %arg0, %c0_i32 : i32, i32
  }
  func.func @transform_1(%arg0: i32) -> (i32, i32) {
    %c0_i32 = arith.constant 0 : i32
    %c0_i32_0 = arith.constant 0 : i32
    return %arg0, %c0_i32 : i32, i32
  }
  func.func @transform_2(%arg0: i32) -> (i32, i32) {
    %c0_i32 = arith.constant 0 : i32
    %c0_i32_0 = arith.constant 0 : i32
    %c0_i32_1 = arith.constant 0 : i32
    return %c0_i32, %c0_i32_0 : i32, i32
  }
  func.func @transform_3(%arg0: i32) -> (i32, i32) {
    %c0_i32 = arith.constant 0 : i32
    %c0_i32_0 = arith.constant 0 : i32
    %c0_i32_1 = arith.constant 0 : i32
    return %c0_i32, %c0_i32_0 : i32, i32
  }
  func.func @transform_4(%arg0: i32) -> (i32, i32) {
    %c0_i32 = arith.constant 0 : i32
    %c0_i32_0 = arith.constant 0 : i32
    return %arg0, %c0_i32 : i32, i32
  }
}

</mosaic_0001>

<bundles_post_ra>
// kernel: _forward_impl.5
= control target key start
LH: loop header
LB: loop body
LE: loop exit
PB: predicated region body
PF: predicated region fallthrough
CT: control target
= control target key end

     0   :  { %v1124_v0 = vmov 0   ;;  %v1125_v28 = vmov 683565275   ;;  %v1126_v30 = vmov 2475754826   ;;  %s1132_s29 = smov 16   ;;  %s1576_s1 = inlined_call_operand.vmem [shape: f32[16,1], index: 1, kind: input, shape index: {}]   ;;  %s1577_s2 = inlined_call_operand.vmem [shape: f32[1,32], index: 2, kind: input, shape index: {}]   ;;  %s1578_s3 = inlined_call_operand.vmem [shape: f32[1,32], index: 3, kind: input, shape index: {}]   ;;  %s1579_s0 = inlined_call_operand.vmem [shape: f32[16,32], index: 0, kind: input, shape index: {}]   ;;  %s1580_s4 = inlined_call_operand.vmem [shape: f32[1,32], index: 4, kind: input, shape index: {}]   ;;  %s1581_s5 = inlined_call_operand.vmem [shape: f32[1,32], index: 5, kind: input, shape index: {}]   ;;  %s1582_s6 = inlined_call_operand.vmem [shape: f32[16,32], index: 6, kind: output, shape index: {}]  }
   0x1   :  { %1113 = vset.pattern.permute.xlu0 %v1124_v0  ;;  %v25_v1 = vld [vmem:[%s1576_s1] sm:$0xff]  ;;  %v26_v2 = vld [vmem:[%s1576_s1 + $0x8] sm:$0xff]  ;;  %v1127_v34 = vmov 2131351028   ;;  %v1128_v37 = vmov 2102212464  }
   0x2   :  { %31 = vperm.xlu0 %1113, %v25_v1   ;;  %v1114_v3 = vld [vmem:[%s1577_s2] ss:$0 sm:$0xff]  ;;  %v1129_v40 = vmov 920167782   ;;  %v1130_v43 = vmov 1326507024  }
   0x3   :  { %v1115_v4 = vld [vmem:[%s1578_s3] ss:$0 sm:$0xff]  ;;  %s1131_s3 = smov 112  }
   0xa   :  { %36 = vperm.xlu0 %1113, %v26_v2  }
  0x74   :  { %v32_v5 = vpop.permute.xlu0 %31 }
  0x75   :  { %v42_v6 = vmul.f32 %v1114_v3, %v32_v5 }
  0x77   :  { %v1183_v7 = vadd.f32 %v1115_v4, %v42_v6 }
  0x79   :  { %v55_v8 = vand.u32 2147483647, %v1183_v7  ;;  %v58_v9 = vand.u32 2139095040, %v1183_v7 }
  0x7b   :  { %v59_v10 = vshrl.u32 %v58_v9, 23  ;;  %v62_v11 = vand.u32 8388607, %v55_v8 }
  0x7c   :  { %v37_v12 = vpop.permute.xlu0 %36 }
  0x7d   :  { %v1084_v13 = vadd.s32 4294967169, %v59_v10  ;;  %v63_v14 = vor.u32 8388608, %v62_v11  ;;  %v43_v15 = vmul.f32 %v1114_v3, %v37_v12 }
  0x7f   :  { %v65_v16 = vadd.s32 1, %v1084_v13  ;;  %v1189_v17 = vadd.f32 %v1115_v4, %v43_v15  ;;  %v1191_v18 = vshll.u32 %v63_v14, 8 }
  0x81   :  { %vm66_vm0 = vcmp.gt.s32.totalorder %v65_v16, 0  ;;  %v210_v20 = vand.u32 2147483647, %v1189_v17  ;;  %v213_v21 = vand.u32 2139095040, %v1189_v17  ;;  %v104_v24 = vand.u32 65535, %v1191_v18 }
  0x82   :  { %v67_v19 = vsel %vm66_vm0, %v65_v16, 0  ;;  %v105_v25 = vshrl.u32 %v1191_v18, 16 }
  0x83   :  { %v69_v22 = vand.u32 31, %v67_v19  ;;  %v214_v26 = vshrl.u32 %v213_v21, 23  ;;  %v68_v27 = vshrl.u32 %v67_v19, 5  ;;  %v1201_v32 = vand.u32 8388607, %v210_v20 }
  0x85   :  { %v70_v23 = vsub.s32 32, %v69_v22  ;;  %v72_v29 = vshll.u32 %v1125_v28, %v69_v22  ;;  %v75_v31 = vshll.u32 %v1126_v30, %v69_v22  ;;  %v78_v36 = vshll.u32 %v1127_v34, %v69_v22 }
  0x86   :  { %v81_v39 = vshll.u32 %v1128_v37, %v69_v22  ;;  %v84_v42 = vshll.u32 %v1129_v40, %v69_v22  ;;  %v1087_v48 = vadd.s32 4294967169, %v214_v26  ;;  %vm87_vm1 = vcmp.lt.s32.totalorder %v68_v27, 1 }
  0x87   :  { %v73_v33 = vshrl.u32 %v1126_v30, %v70_v23  ;;  %v76_v35 = vshrl.u32 %v1127_v34, %v70_v23  ;;  %v79_v38 = vshrl.u32 %v1128_v37, %v70_v23  ;;  %v82_v41 = vshrl.u32 %v1129_v40, %v70_v23 }
  0x88   :  { %v85_v44 = vshrl.u32 %v1130_v43, %v70_v23  ;;  %vm90_vm2 = vcmp.lt.s32.totalorder %v68_v27, 4  ;;  %v71_v51 = vshrl.u32 %v1125_v28, %v70_v23  ;;  %vm89_vm3 = vcmp.lt.s32.totalorder %v68_v27, 3 }
  0x89   :  { %v74_v45 = vor.u32 %v73_v33, %v72_v29  ;;  %v77_v46 = vor.u32 %v76_v35, %v75_v31  ;;  %v80_v47 = vor.u32 %v79_v38, %v78_v36  ;;  %v83_v49 = vor.u32 %v82_v41, %v81_v39 }
  0x8a   :  { %v86_v50 = vor.u32 %v85_v44, %v84_v42  ;;  %v220_v57 = vadd.s32 1, %v1087_v48  ;;  %vm88_vm4 = vcmp.lt.s32.totalorder %v68_v27, 2  ;;  %v218_v5 = vor.u32 8388608, %v1201_v32 }
  0x8b   :  { %v92_v52 = vsel %vm90_vm2, %v80_v47, 2102212464  ;;  %v95_v53 = vsel %vm87_vm1, %v74_v45, %v77_v46  ;;  %v99_v54 = vsel %vm87_vm1, %v77_v46, %v80_v47  ;;  %v96_v55 = vsel %vm90_vm2, %v83_v49, 920167782 }
  0x8c   :  { %v100_v56 = vsel %vm90_vm2, %v86_v50, 1326507024  ;;  %v91_v58 = vsel %vm87_vm1, %v71_v51, %v74_v45  ;;  %v97_v59 = vsel %vm89_vm3, %v80_v47, %v96_v55  ;;  %v93_v61 = vsel %vm89_vm3, %v77_v46, %v92_v52 }
  0x8d   :  { %v101_v60 = vsel %vm89_vm3, %v83_v49, %v100_v56  ;;  %v98_v62 = vsel %vm88_vm4, %v95_v53, %v97_v59  ;;  %vm221_vm5 = vcmp.gt.s32.totalorder %v220_v57, 0  ;;  %v1213_v6 = vsel %vm88_vm4, %v91_v58, %v93_v61 }
  0x8e   :  { %v102_v63 = vsel %vm88_vm4, %v99_v54, %v101_v60  ;;  %v128_v3 = vand.u32 65535, %v98_v62  ;;  %v129_v4 = vshrl.u32 %v98_v62, 16  ;;  %v222_v11 = vsel %vm221_vm5, %v220_v57, 0 }
  0x8f   :  { %v106_v1 = vand.u32 65535, %v102_v63  ;;  %v107_v2 = vshrl.u32 %v102_v63, 16  ;;  %v224_v33 = vand.u32 31, %v222_v11  ;;  %v1220_v44 = vshrl.u32 %v222_v11, 5 }
  0x90   :  { %v131_v14 = vmul.u32 %v129_v4, %v104_v24  ;;  %v132_v15 = vmul.u32 %v128_v3, %v105_v25  ;;  %v130_v21 = vmul.u32 %v128_v3, %v104_v24  ;;  %v133_v22 = vmul.u32 %v129_v4, %v105_v25 }
  0x91   :  { %v109_v9 = vmul.u32 %v107_v2, %v104_v24  ;;  %v110_v10 = vmul.u32 %v106_v1, %v105_v25  ;;  %v108_v12 = vmul.u32 %v106_v1, %v104_v24  ;;  %v111_v13 = vmul.u32 %v107_v2, %v105_v25 }
  0x92   :  { %v134_v27 = vshll.u32 %v131_v14, 16  ;;  %v135_v29 = vshrl.u32 %v131_v14, 16  ;;  %v136_v32 = vshll.u32 %v132_v15, 16  ;;  %v137_v36 = vshrl.u32 %v132_v15, 16 }
  0x93   :  { %v112_v16 = vshll.u32 %v109_v9, 16  ;;  %v113_v19 = vshrl.u32 %v109_v9, 16  ;;  %v114_v23 = vshll.u32 %v110_v10, 16  ;;  %v115_v26 = vshrl.u32 %v110_v10, 16 }
  0x94   :  { %vm138_vm7 = vc.u32 %v130_v21, %v134_v27  ;;  %v140_v38 = vadd.s32 %v134_v27, %v130_v21  ;;  %v1217_v42 = vsub.s32 32, %v224_v33  ;;  %v227_v48 = vshll.u32 %v1125_v28, %v224_v33 }
  0x95   :  { %vm116_vm6 = vc.u32 %v108_v12, %v112_v16  ;;  %v118_v31 = vadd.s32 %v112_v16, %v108_v12  ;;  %v139_v41 = vsel %vm138_vm7, 1, %v1124_v0  ;;  %v230_v51 = vshll.u32 %v1126_v30, %v224_v33 }
  0x96   :  { %v117_v35 = vsel %vm116_vm6, 1, %v1124_v0  ;;  %v141_v25 = vadd.s32 %v139_v41, %v133_v22  ;;  %vm142_vm9 = vc.u32 %v140_v38, %v136_v32  ;;  %v1223_v47 = vadd.s32 %v140_v38, %v136_v32 }
  0x97   :  { %v119_v39 = vadd.s32 %v117_v35, %v111_v13  ;;  %vm120_vm8 = vc.u32 %v118_v31, %v114_v23  ;;  %v143_v46 = vsel %vm142_vm9, 1, %v1124_v0  ;;  %v228_v50 = vshrl.u32 %v1126_v30, %v1217_v42 }
  0x98   :  { %v121_v24 = vsel %vm120_vm8, 1, %v1124_v0  ;;  %v145_v49 = vadd.s32 %v143_v46, %v141_v25  ;;  %v231_v52 = vshrl.u32 %v1127_v34, %v1217_v42  ;;  %v233_v54 = vshll.u32 %v1127_v34, %v224_v33 }
  0x99   :  { %v123_v45 = vadd.s32 %v121_v24, %v119_v39  ;;  %v234_v55 = vshrl.u32 %v1128_v37, %v1217_v42  ;;  %v236_v56 = vshll.u32 %v1128_v37, %v224_v33  ;;  %v1235_v58 = vor.u32 %v228_v50, %v227_v48 }
  0x9a   :  { %v146_v57 = vadd.s32 %v145_v49, %v135_v29  ;;  %v1237_v59 = vor.u32 %v231_v52, %v230_v51  ;;  %v237_v60 = vshrl.u32 %v1129_v40, %v1217_v42  ;;  %v239_v63 = vshll.u32 %v1129_v40, %v224_v33 }
  0x9b   :  { %v124_v53 = vadd.s32 %v123_v45, %v113_v19  ;;  %v235_v62 = vor.u32 %v234_v55, %v233_v54  ;;  %v240_v1 = vshrl.u32 %v1130_v43, %v1217_v42  ;;  %vm242_vm11 = vcmp.lt.s32.totalorder %v1220_v44, 1 }
  0x9c   :  { %v147_v2 = vadd.s32 %v146_v57, %v137_v36  ;;  %v238_v3 = vor.u32 %v237_v60, %v236_v56  ;;  %v1249_v9 = vshll.u32 %v218_v5, 8  ;;  %v148_v10 = vmul.u32 %v1191_v18, %v1213_v6 }
  0x9d   :  { %v1241_v61 = vadd.s32 %v124_v53, %v115_v26  ;;  %v241_v4 = vor.u32 %v240_v1, %v239_v63  ;;  %vm245_vm12 = vcmp.lt.s32.totalorder %v1220_v44, 4  ;;  %v250_v12 = vsel %vm242_vm11, %v1235_v58, %v1237_v59 }
  0x9e   :  { %v151_v11 = vadd.s32 1, %v147_v2  ;;  %vm244_vm13 = vcmp.lt.s32.totalorder %v1220_v44, 3  ;;  %v251_v13 = vsel %vm245_vm12, %v238_v3, 920167782  ;;  %v254_v5 = vsel %vm242_vm11, %v1237_v59, %v235_v62 }
  0x9f   :  { %vm150_vm10 = vc.u32 %v1241_v61, %v1223_v47  ;;  %v255_v18 = vsel %vm245_vm12, %v241_v4, 1326507024  ;;  %vm243_vm14 = vcmp.lt.s32.totalorder %v1220_v44, 2  ;;  %v252_v14 = vsel %vm244_vm13, %v235_v62, %v251_v13 }
  0xa0   :  { %v152_v6 = vsel %vm150_vm10, %v151_v11, %v147_v2  ;;  %v256_v15 = vsel %vm244_vm13, %v238_v3, %v255_v18  ;;  %v253_v19 = vsel %vm243_vm14, %v250_v12, %v252_v14  ;;  %v259_v22 = vand.u32 65535, %v1249_v9 }
  0xa1   :  { %v153_v16 = vadd.s32 %v152_v6, %v148_v10  ;;  %v257_v21 = vsel %vm243_vm14, %v254_v5, %v256_v15  ;;  %v260_v23 = vshrl.u32 %v1249_v9, 16  ;;  %v284_v29 = vshrl.u32 %v253_v19, 16 }
  0xa2   :  { %v261_v26 = vand.u32 65535, %v257_v21  ;;  %v262_v27 = vshrl.u32 %v257_v21, 16  ;;  %v283_v32 = vand.u32 65535, %v253_v19  ;;  %v247_v11 = vsel %vm245_vm12, %v235_v62, 2102212464 }
  0xa3   :  { %v154_v31 = vadd.s32 536870912, %v153_v16  ;;  %v286_v38 = vmul.u32 %v284_v29, %v259_v22  ;;  %v288_v57 = vmul.u32 %v284_v29, %v260_v23  ;;  %v226_v13 = vshrl.u32 %v1125_v28, %v1217_v42 }
  0xa4   :  { %v264_v33 = vmul.u32 %v262_v27, %v259_v22  ;;  %v265_v35 = vmul.u32 %v261_v26, %v260_v23  ;;  %v263_v39 = vmul.u32 %v261_v26, %v259_v22  ;;  %v266_v25 = vmul.u32 %v262_v27, %v260_v23 }
  0xa5   :  { %v1277_v36 = vshrl.u32 %v154_v31, 30  ;;  %v285_v45 = vmul.u32 %v283_v32, %v259_v22  ;;  %v289_v46 = vshll.u32 %v286_v38, 16  ;;  %v287_v50 = vmul.u32 %v283_v32, %v260_v23 }
  0xa6   :  { %v267_v41 = vshll.u32 %v264_v33, 16  ;;  %v269_v48 = vshll.u32 %v265_v35, 16  ;;  %v268_v53 = vshrl.u32 %v264_v33, 16  ;;  %v270_v5 = vshrl.u32 %v265_v35, 16 }
  0xa7   :  { %v156_v24 = vshll.u32 %v1277_v36, 30  ;;  %vm293_vm1 = vc.u32 %v285_v45, %v289_v46  ;;  %v291_v63 = vshll.u32 %v287_v50, 16  ;;  %v295_v2 = vadd.s32 %v289_v46, %v285_v45 }
  0xa8   :  { %vm271_vm15 = vc.u32 %v263_v39, %v267_v41  ;;  %v273_v49 = vadd.s32 %v267_v41, %v263_v39  ;;  %v294_v1 = vsel %vm293_vm1, 1, %v1124_v0  ;;  %v290_v14 = vshrl.u32 %v286_v38, 16 }
  0xa9   :  { %v157_v51 = vsub.s32 %v153_v16, %v156_v24  ;;  %v272_v52 = vsel %vm271_vm15, 1, %v1124_v0  ;;  %v296_v4 = vadd.s32 %v294_v1, %v288_v57  ;;  %vm297_vm3 = vc.u32 %v295_v2, %v291_v63 }
  0xaa   :  { %v274_v54 = vadd.s32 %v272_v52, %v266_v25  ;;  %vm275_vm0 = vc.u32 %v273_v49, %v269_v48  ;;  %v298_v18 = vsel %vm297_vm3, 1, %v1124_v0  ;;  %v246_v16 = vsel %vm242_vm11, %v226_v13, %v1235_v58 }
  0xab   :  { %vm158_vm2 = vcmp.lt.s32.totalorder %v157_v51, 0  ;;  %v159_v55 = vsub.s32 0, %v157_v51  ;;  %v276_v56 = vsel %vm275_vm0, 1, %v1124_v0  ;;  %v300_v15 = vadd.s32 %v298_v18, %v296_v4 }
  0xac   :  { %v278_v60 = vadd.s32 %v276_v56, %v274_v54  ;;  %v248_v19 = vsel %vm244_vm13, %v1237_v59, %v247_v11  ;;  %v292_v21 = vshrl.u32 %v287_v50, 16  ;;  %v149_v42 = vadd.s32 %v1223_v47, %v1241_v61  ;;  %v1305_v47 = vld [vmem:[%s1579_s0] sm:$0xff] }
  0xad   :  { %v160_v3 = vsel %vm158_vm2, %v159_v55, %v157_v51  ;;  %v301_v22 = vadd.s32 %v300_v15, %v290_v14  ;;  %v299_v26 = vadd.s32 %v295_v2, %v291_v63  ;;  %v249_v31 = vsel %vm243_vm14, %v246_v16, %v248_v19  ;;  %989 = vrot.lane.b32.xlu1 %v1305_v47, %s1131_s3 }
  0xae   :  { %v161_v10 = vclz %v160_v3  ;;  %v279_v12 = vadd.s32 %v278_v60, %v268_v53  ;;  %v303_v38 = vmul.u32 %v1249_v9, %v249_v31  ;;  %995 = vrot.lane.b32.xlu2 %v1305_v47, %s1132_s29  ;;  %vm57_vm6 = vcmp.lt.s32.totalorder %v1183_v7, 0 }
  0xaf   :  { %v302_v58 = vadd.s32 %v301_v22, %v292_v21  ;;  %vm1322_vm7 = vcmp.le.f32.partialorder %v55_v8, 0.7853982  ;;  %v179_v55 = vsub.s32 4, %v1277_v36  ;;  %v49_v8 = vlaneseq }
  0xb0   :  { %v1085_v6 = vadd.s32 4294967294, %v161_v10  ;;  %v1294_v62 = vadd.s32 %v279_v12, %v270_v5  ;;  %vm198_vm15 = vweird.f32 %v1183_v7  ;;  %vm212_vm0 = vcmp.lt.s32.totalorder %v1189_v17, 0 }
  0xb1   :  { %v306_v35 = vadd.s32 1, %v302_v58  ;;  %v180_v4 = vsel %vm57_vm6, %v179_v55, %v1277_v36  ;;  %v1333_v14 = vand.u32 127, %v49_v8  ;;  %vm1351_vm1 = vcmp.le.f32.partialorder %v210_v20, 0.7853982 }
  0xb2   :  { %vm1086_vm4 = vcmp.lt.s32.totalorder %v1085_v6, 0  ;;  %vm305_vm5 = vc.u32 %v1294_v62, %v299_v26  ;;  %v182_v13 = vsel %vm1322_vm7, 0, %v180_v4  ;;  %v304_v16 = vadd.s32 %v299_v26, %v1294_v62 }
  0xb3   :  { %v164_v23 = vsel %vm1086_vm4, 0, %v1085_v6  ;;  %v307_v24 = vsel %vm305_vm5, %v306_v35, %v302_v58  ;;  %v199_v22 = vadd.s32 3, %v182_v13  ;;  %v1083_v31 = vadd.s32 4294967280, %v1333_v14 }
  0xb4   :  { %v165_v27 = vsub.s32 32, %v164_v23  ;;  %v169_v29 = vsub.s32 4294967266, %v164_v23  ;;  %v166_v32 = vshll.u32 %v157_v51, %v164_v23  ;;  %v308_v61 = vadd.s32 %v307_v24, %v303_v38  ;;  %v1315_v51 = vld [vmem:[%s1579_s0 + $0x8] sm:$0xff] }
  0xb5   :  { %991 = vrot.lane.b32.xlu1 %v1315_v51, %s1131_s3  ;;  %vm51_vm10 = vcmp.lt.s32.totalorder %v1333_v14, 16  ;;  %v200_v35 = vand.u32 3, %v199_v22 }
  0xb6   :  { %v167_v59 = vshrl.u32 %v149_v42, %v165_v27  ;;  %v170_v33 = vadd.s32 127, %v169_v29  ;;  %v309_v25 = vadd.s32 536870912, %v308_v61  ;;  %997 = vrot.lane.b32.xlu2 %v1315_v51, %s1132_s29  ;;  %v1341_v26 = vsel %vm51_vm10, %v1333_v14, %v1083_v31 }
  0xb7   :  { %vm201_vm11 = vcmp.lt.s32.totalorder %v200_v35, 2  ;;  %vm202_vm12 = vcmp.eq.s32.totalorder %v200_v35, 0  ;;  %vm205_vm13 = vcmp.eq.s32.totalorder %v200_v35, 2  ;;  %vm54_vm14 = vcmp.lt.s32.totalorder %v1341_v26, 15 }
  0xb8   :  { %v168_v39 = vor.u32 %v167_v59, %v166_v32  ;;  %v171_v41 = vshll.u32 %v170_v33, 23  ;;  %v1309_v9 = vshrl.u32 %v309_v25, 30 }
  0xba   :  { %v172_v44 = vor.u32 4788187, %v171_v41  ;;  %v175_v46 = vcvt.s32.f32 %v168_v39  ;;  %v311_v49 = vshll.u32 %v1309_v9, 30 }
  0xbc   :  { %v173_v45 = vand.u32 2147483647, %v172_v44  ;;  %v312_v52 = vsub.s32 %v308_v61, %v311_v49 }
  0xbe   :  { %v176_v48 = vmul.f32 %v175_v46, %v173_v45  ;;  %vm313_vm8 = vcmp.lt.s32.totalorder %v312_v52, 0  ;;  %v314_v57 = vsub.s32 0, %v312_v52 }
  0xc0   :  { %v177_v50 = vxor.u32 2147483648, %v176_v48  ;;  %v315_v63 = vsel %vm313_vm8, %v314_v57, %v312_v52 }
  0xc1   :  { %v316_v2 = vclz %v315_v63  ;;  %v334_v63 = vsub.s32 4, %v1309_v9 }
  0xc2   :  { %v178_v54 = vsel %vm57_vm6, %v177_v50, %v176_v48 }
  0xc3   :  { %v181_v56 = vsel %vm1322_vm7, %v1183_v7, %v178_v54  ;;  %v1088_v11 = vadd.s32 4294967294, %v316_v2  ;;  %vm353_vm7 = vweird.f32 %v1189_v17 }
  0xc4   :  { %v183_v60 = vmul.f32 %v181_v56, %v181_v56 }
  0xc5   :  { %vm1089_vm9 = vcmp.lt.s32.totalorder %v1088_v11, 0 }
  0xc6   :  { %v191_v1 = vmul.f32 -0.00019511016, %v183_v60  ;;  %v184_v3 = vmul.f32 -0.001358992, %v183_v60  ;;  %v319_v6 = vsel %vm1089_vm9, 0, %v1088_v11  ;;  %v335_v11 = vsel %vm212_vm0, %v334_v63, %v1309_v9 }
  0xc7   :  { %v320_v19 = vsub.s32 32, %v319_v6  ;;  %v324_v21 = vsub.s32 4294967266, %v319_v6  ;;  %v321_v23 = vshll.u32 %v312_v52, %v319_v6 }
  0xc8   :  { %v192_v10 = vadd.f32 0.008332121, %v191_v1  ;;  %v185_v12 = vadd.f32 0.041655596, %v184_v3 }
  0xc9   :  { %v322_v27 = vshrl.u32 %v304_v16, %v320_v19  ;;  %v325_v29 = vadd.s32 127, %v324_v21 }
  0xca   :  { %v193_v5 = vmul.f32 %v192_v10, %v183_v60  ;;  %v186_v18 = vmul.f32 %v185_v12, %v183_v60 }
  0xcb   :  { %v323_v59 = vor.u32 %v322_v27, %v321_v23  ;;  %v326_v33 = vshll.u32 %v325_v29, 23 }
  0xcc   :  { %v194_v15 = vadd.f32 -0.16666654, %v193_v5  ;;  %v187_v36 = vadd.f32 -0.4999988, %v186_v18 }
  0xcd   :  { %v327_v62 = vor.u32 4788187, %v326_v33  ;;  %v330_v44 = vcvt.s32.f32 %v323_v59 }
  0xce   :  { %v195_v42 = vmul.f32 %v194_v15, %v183_v60  ;;  %v188_v58 = vmul.f32 %v187_v36, %v183_v60  ;;  %v337_v15 = vsel %vm1351_vm1, 0, %v335_v11 }
  0xcf   :  { %v328_v61 = vand.u32 2147483647, %v327_v62  ;;  %v354_v36 = vadd.s32 3, %v337_v15 }
  0xd0   :  { %v196_v32 = vadd.f32 1.0, %v195_v42  ;;  %v189_v38 = vadd.f32 1.0, %v188_v58 }
  0xd1   :  { %v331_v25 = vmul.f32 %v330_v44, %v328_v61 }
  0xd2   :  { %v197_v39 = vmul.f32 %v196_v32, %v181_v56  ;;  %v206_v41 = vxor.u32 2147483648, %v189_v38 }
  0xd3   :  { %v332_v49 = vxor.u32 2147483648, %v331_v25 }
  0xd4   :  { %v203_v24 = vxor.u32 2147483648, %v197_v39  ;;  %v207_v46 = vsel %vm205_vm13, %v206_v41, %v197_v39 }
  0xd5   :  { %v333_v54 = vsel %vm212_vm0, %v332_v49, %v331_v25 }
  0xd6   :  { %v204_v45 = vsel %vm202_vm12, %v189_v38, %v203_v24  ;;  %v336_v56 = vsel %vm1351_vm1, %v1189_v17, %v333_v54  ;;  %v355_v24 = vand.u32 3, %v354_v36 }
  0xd7   :  { %v208_v48 = vsel %vm201_vm11, %v204_v45, %v207_v46  ;;  %v338_v57 = vmul.f32 %v336_v56, %v336_v56 }
  0xd8   :  { %v209_v50 = vsel %vm198_vm15, nan, %v208_v48  ;;  %vm356_vm8 = vcmp.lt.s32.totalorder %v355_v24, 2  ;;  %vm357_vm9 = vcmp.eq.s32.totalorder %v355_v24, 0  ;;  %vm360_vm11 = vcmp.eq.s32.totalorder %v355_v24, 2 }
  0xd9   :  { %v365_v52 = vsel %vm54_vm14, %v209_v50, %v1183_v7  ;;  %v346_v20 = vmul.f32 -0.00019511016, %v338_v57  ;;  %v339_v2 = vmul.f32 -0.001358992, %v338_v57 }
  0xda   :  { %v1357_v55 = vmul.f32 1.9332877, %v365_v52 }
  0xdb   :  { %v347_v3 = vadd.f32 0.008332121, %v346_v20  ;;  %v340_v10 = vadd.f32 0.041655596, %v339_v2 }
  0xdc   :  { %v369_v60 = vand.u32 2147483647, %v1357_v55  ;;  %v372_v7 = vand.u32 2139095040, %v1357_v55 }
  0xdd   :  { %v348_v12 = vmul.f32 %v347_v3, %v338_v57  ;;  %v341_v5 = vmul.f32 %v340_v10, %v338_v57 }
  0xde   :  { %v373_v1 = vshrl.u32 %v372_v7, 23  ;;  %v376_v8 = vand.u32 8388607, %v369_v60 }
  0xdf   :  { %v349_v18 = vadd.f32 -0.16666654, %v348_v12  ;;  %v342_v19 = vadd.f32 -0.4999988, %v341_v5 }
  0xe0   :  { %v1090_v4 = vadd.s32 4294967169, %v373_v1  ;;  %v377_v6 = vor.u32 8388608, %v376_v8 }
  0xe1   :  { %v350_v21 = vmul.f32 %v349_v18, %v338_v57  ;;  %v343_v58 = vmul.f32 %v342_v19, %v338_v57 }
  0xe2   :  { %v379_v13 = vadd.s32 1, %v1090_v4  ;;  %v1374_v27 = vshll.u32 %v377_v6, 8 }
  0xe3   :  { %v351_v9 = vadd.f32 1.0, %v350_v21  ;;  %v344_v52 = vadd.f32 1.0, %v343_v58 }
  0xe4   :  { %vm380_vm2 = vcmp.gt.s32.totalorder %v379_v13, 0  ;;  %v418_v50 = vand.u32 65535, %v1374_v27  ;;  %v419_v63 = vshrl.u32 %v1374_v27, 16 }
  0xe5   :  { %v381_v16 = vsel %vm380_vm2, %v379_v13, 0  ;;  %v352_v25 = vmul.f32 %v351_v9, %v336_v56  ;;  %v361_v3 = vxor.u32 2147483648, %v344_v52 }
  0xe6   :  { %v383_v22 = vand.u32 31, %v381_v16  ;;  %v1372_v42 = vshrl.u32 %v381_v16, 5 }
  0xe7   :  { %v358_v20 = vxor.u32 2147483648, %v352_v25 }
  0xe8   :  { %v384_v23 = vsub.s32 32, %v383_v22  ;;  %v386_v29 = vshll.u32 %v1125_v28, %v383_v22  ;;  %v389_v31 = vshll.u32 %v1126_v30, %v383_v22  ;;  %v392_v33 = vshll.u32 %v1127_v34, %v383_v22 }
  0xe9   :  { %v395_v35 = vshll.u32 %v1128_v37, %v383_v22  ;;  %v398_v62 = vshll.u32 %v1129_v40, %v383_v22  ;;  %vm401_vm3 = vcmp.lt.s32.totalorder %v1372_v42, 1  ;;  %vm404_vm4 = vcmp.lt.s32.totalorder %v1372_v42, 4 }
  0xea   :  { %v387_v32 = vshrl.u32 %v1126_v30, %v384_v23  ;;  %v390_v59 = vshrl.u32 %v1127_v34, %v384_v23  ;;  %v393_v38 = vshrl.u32 %v1128_v37, %v384_v23  ;;  %v396_v39 = vshrl.u32 %v1129_v40, %v384_v23 }
  0xeb   :  { %v399_v41 = vshrl.u32 %v1130_v43, %v384_v23  ;;  %vm403_vm5 = vcmp.lt.s32.totalorder %v1372_v42, 3  ;;  %vm402_vm6 = vcmp.lt.s32.totalorder %v1372_v42, 2  ;;  %v385_v5 = vshrl.u32 %v1125_v28, %v384_v23 }
  0xec   :  { %v1386_v61 = vor.u32 %v387_v32, %v386_v29  ;;  %v1388_v44 = vor.u32 %v390_v59, %v389_v31  ;;  %v394_v45 = vor.u32 %v393_v38, %v392_v33  ;;  %v397_v46 = vor.u32 %v396_v39, %v395_v35 }
  0xed   :  { %v400_v48 = vor.u32 %v399_v41, %v398_v62  ;;  %v359_v15 = vsel %vm357_vm9, %v344_v52, %v358_v20  ;;  %v362_v22 = vsel %vm360_vm11, %v361_v3, %v352_v25 }
  0xee   :  { %v409_v49 = vsel %vm401_vm3, %v1386_v61, %v1388_v44  ;;  %v410_v53 = vsel %vm404_vm4, %v397_v46, 920167782  ;;  %v413_v54 = vsel %vm401_vm3, %v1388_v44, %v394_v45  ;;  %v363_v59 = vsel %vm356_vm8, %v359_v15, %v362_v22 }
  0xef   :  { %v414_v56 = vsel %vm404_vm4, %v400_v48, 1326507024  ;;  %v411_v57 = vsel %vm403_vm5, %v394_v45, %v410_v53  ;;  %v364_v35 = vsel %vm353_vm7, nan, %v363_v59  ;;  %v406_v41 = vsel %vm404_vm4, %v394_v45, 2102212464 }
  0xf0   :  { %v415_v7 = vsel %vm403_vm5, %v397_v46, %v414_v56  ;;  %v412_v1 = vsel %vm402_vm6, %v409_v49, %v411_v57  ;;  %v366_v62 = vsel %vm54_vm14, %v364_v35, %v1189_v17  ;;  %v405_v52 = vsel %vm401_vm3, %v385_v5, %v1386_v61 }
  0xf1   :  { %v416_v2 = vsel %vm402_vm6, %v413_v54, %v415_v7  ;;  %v442_v10 = vand.u32 65535, %v412_v1  ;;  %v443_v11 = vshrl.u32 %v412_v1, 16  ;;  %v407_v17 = vsel %vm403_vm5, %v1388_v44, %v406_v41 }
  0xf2   :  { %v420_v4 = vand.u32 65535, %v416_v2  ;;  %v421_v8 = vshrl.u32 %v416_v2, 16  ;;  %v408_v61 = vsel %vm402_vm6, %v405_v52, %v407_v17 }
  0xf3   :  { %v445_v18 = vmul.u32 %v443_v11, %v418_v50  ;;  %v446_v6 = vmul.u32 %v442_v10, %v419_v63  ;;  %v444_v9 = vmul.u32 %v442_v10, %v418_v50  ;;  %v447_v29 = vmul.u32 %v443_v11, %v419_v63 }
  0xf4   :  { %v423_v12 = vmul.u32 %v421_v8, %v418_v50  ;;  %v424_v13 = vmul.u32 %v420_v4, %v419_v63  ;;  %v422_v16 = vmul.u32 %v420_v4, %v418_v50  ;;  %v425_v19 = vmul.u32 %v421_v8, %v419_v63 }
  0xf5   :  { %v448_v31 = vshll.u32 %v445_v18, 16  ;;  %v450_v32 = vshll.u32 %v446_v6, 16  ;;  %v1429_v50 = vmul.f32 1.9332877, %v366_v62  ;;  %v449_v53 = vshrl.u32 %v445_v18, 16 }
  0xf6   :  { %v426_v21 = vshll.u32 %v423_v12, 16  ;;  %v428_v36 = vshll.u32 %v424_v13, 16  ;;  %v427_v46 = vshrl.u32 %v423_v12, 16  ;;  %v429_v45 = vshrl.u32 %v424_v13, 16 }
  0xf7   :  { %vm452_vm13 = vc.u32 %v444_v9, %v448_v31  ;;  %v454_v23 = vadd.s32 %v448_v31, %v444_v9  ;;  %v526_v56 = vand.u32 2139095040, %v1429_v50  ;;  %v451_v57 = vshrl.u32 %v446_v6, 16 }
  0xf8   :  { %vm430_vm12 = vc.u32 %v422_v16, %v426_v21  ;;  %v432_v58 = vadd.s32 %v426_v21, %v422_v16  ;;  %v453_v39 = vsel %vm452_vm13, 1, %v1124_v0  ;;  %v462_v4 = vmul.u32 %v1374_v27, %v408_v61 }
  0xf9   :  { %v431_v33 = vsel %vm430_vm12, 1, %v1124_v0  ;;  %v455_v25 = vadd.s32 %v453_v39, %v447_v29  ;;  %vm456_vm0 = vc.u32 %v454_v23, %v450_v32  ;;  %v1440_v20 = vadd.s32 %v454_v23, %v450_v32 }
  0xfa   :  { %v433_v38 = vadd.s32 %v431_v33, %v425_v19  ;;  %vm434_vm15 = vc.u32 %v432_v58, %v428_v36  ;;  %v457_v49 = vsel %vm456_vm0, 1, %v1124_v0  ;;  %v527_v1 = vshrl.u32 %v526_v56, 23 }
  0xfb   :  { %v435_v24 = vsel %vm434_vm15, 1, %v1124_v0  ;;  %v459_v26 = vadd.s32 %v457_v49, %v455_v25  ;;  %v523_v12 = vand.u32 2147483647, %v1429_v50  ;;  %vm371_vm13 = vcmp.lt.s32.totalorder %v1357_v55, 0 }
  0xfc   :  { %v437_v48 = vadd.s32 %v435_v24, %v433_v38  ;;  %v1093_v3 = vadd.s32 4294967169, %v527_v1  ;;  %vm1516_vm15 = vcmp.le.f32.partialorder %v369_v60, 0.7853982 }
  0xfd   :  { %v460_v7 = vadd.s32 %v459_v26, %v449_v53  ;;  %v530_v42 = vand.u32 8388607, %v523_v12 }
  0xfe   :  { %v438_v54 = vadd.s32 %v437_v48, %v427_v46  ;;  %v533_v8 = vadd.s32 1, %v1093_v3 }
  0xff   :  { %v461_v2 = vadd.s32 %v460_v7, %v451_v57  ;;  %v531_v33 = vor.u32 8388608, %v530_v42 }
 0x100   :  { %v1438_v63 = vadd.s32 %v438_v54, %v429_v45  ;;  %vm534_vm1 = vcmp.gt.s32.totalorder %v533_v8, 0 }
 0x101   :  { %v465_v44 = vadd.s32 1, %v461_v2  ;;  %v535_v13 = vsel %vm534_vm1, %v533_v8, 0  ;;  %vm512_vm1 = vweird.f32 %v1357_v55 }
 0x102   :  { %vm464_vm14 = vc.u32 %v1438_v63, %v1440_v20  ;;  %v537_v18 = vand.u32 31, %v535_v13  ;;  %v1452_v16 = vshrl.u32 %v535_v13, 5 }
 0x103   :  { %v466_v10 = vsel %vm464_vm14, %v465_v44, %v461_v2  ;;  %v463_v2 = vadd.s32 %v1440_v20, %v1438_v63 }
 0x104   :  { %v467_v11 = vadd.s32 %v466_v10, %v462_v4  ;;  %v538_v15 = vsub.s32 32, %v537_v18  ;;  %v540_v19 = vshll.u32 %v1125_v28, %v537_v18  ;;  %v543_v27 = vshll.u32 %v1126_v30, %v537_v18 }
 0x105   :  { %v546_v36 = vshll.u32 %v1127_v34, %v537_v18  ;;  %v549_v9 = vshll.u32 %v1128_v37, %v537_v18  ;;  %v552_v35 = vshll.u32 %v1129_v40, %v537_v18  ;;  %vm555_vm3 = vcmp.lt.s32.totalorder %v1452_v16, 1 }
 0x106   :  { %v468_v5 = vadd.s32 536870912, %v467_v11  ;;  %v541_v22 = vshrl.u32 %v1126_v30, %v538_v15  ;;  %v544_v29 = vshrl.u32 %v1127_v34, %v538_v15  ;;  %v547_v31 = vshrl.u32 %v1128_v37, %v538_v15 }
 0x107   :  { %v550_v58 = vshrl.u32 %v1129_v40, %v538_v15  ;;  %v553_v32 = vshrl.u32 %v1130_v43, %v538_v15  ;;  %vm558_vm4 = vcmp.lt.s32.totalorder %v1452_v16, 4  ;;  %v1475_v43 = vshll.u32 %v531_v33, 8 }
 0x108   :  { %v1448_v6 = vshrl.u32 %v468_v5, 30  ;;  %v1464_v23 = vor.u32 %v541_v22, %v540_v19  ;;  %v1467_v38 = vor.u32 %v544_v29, %v543_v27  ;;  %v548_v30 = vor.u32 %v547_v31, %v546_v36 }
 0x109   :  { %v551_v39 = vor.u32 %v550_v58, %v549_v9  ;;  %v554_v41 = vor.u32 %v553_v32, %v552_v35  ;;  %vm557_vm5 = vcmp.lt.s32.totalorder %v1452_v16, 3  ;;  %vm556_vm6 = vcmp.lt.s32.totalorder %v1452_v16, 2 }
 0x10a   :  { %v470_v21 = vshll.u32 %v1448_v6, 30  ;;  %v563_v37 = vsel %vm555_vm3, %v1464_v23, %v1467_v38  ;;  %v567_v25 = vsel %vm555_vm3, %v1467_v38, %v548_v30  ;;  %v572_v17 = vand.u32 65535, %v1475_v43 }
 0x10b   :  { %v564_v24 = vsel %vm558_vm4, %v551_v39, 920167782  ;;  %v568_v48 = vsel %vm558_vm4, %v554_v41, 1326507024  ;;  %v573_v56 = vshrl.u32 %v1475_v43, 16  ;;  %v539_v8 = vshrl.u32 %v1125_v28, %v538_v15 }
 0x10c   :  { %v471_v59 = vsub.s32 %v467_v11, %v470_v21  ;;  %v565_v46 = vsel %vm557_vm5, %v548_v30, %v564_v24  ;;  %v569_v53 = vsel %vm557_vm5, %v551_v39, %v568_v48  ;;  %v560_v15 = vsel %vm558_vm4, %v548_v30, 2102212464 }
 0x10d   :  { %v566_v52 = vsel %vm556_vm6, %v563_v37, %v565_v46  ;;  %v570_v26 = vsel %vm556_vm6, %v567_v25, %v569_v53  ;;  %v559_v30 = vsel %vm555_vm3, %v539_v8, %v1464_v23  ;;  %v561_v48 = vsel %vm557_vm5, %v1467_v38, %v560_v15 }
 0x10e   :  { %vm472_vm2 = vcmp.lt.s32.totalorder %v471_v59, 0  ;;  %v473_v62 = vsub.s32 0, %v471_v59  ;;  %v596_v45 = vand.u32 65535, %v566_v52  ;;  %v597_v54 = vshrl.u32 %v566_v52, 16 }
 0x10f   :  { %v574_v57 = vand.u32 65535, %v570_v26  ;;  %v575_v7 = vshrl.u32 %v570_v26, 16 }
 0x110   :  { %v474_v34 = vsel %vm472_vm2, %v473_v62, %v471_v59  ;;  %v599_v61 = vmul.u32 %v597_v54, %v572_v17  ;;  %v600_v4 = vmul.u32 %v596_v45, %v573_v56  ;;  %v598_v13 = vmul.u32 %v596_v45, %v572_v17 }
 0x111   :  { %v475_v40 = vclz %v474_v34  ;;  %v577_v10 = vmul.u32 %v575_v7, %v572_v17  ;;  %v578_v11 = vmul.u32 %v574_v57, %v573_v56  ;;  %v576_v27 = vmul.u32 %v574_v57, %v572_v17 }
 0x112   :  { %v602_v19 = vshll.u32 %v599_v61, 16  ;;  %v579_v21 = vmul.u32 %v575_v7, %v573_v56  ;;  %v601_v36 = vmul.u32 %v597_v54, %v573_v56  ;;  %v604_v63 = vshll.u32 %v600_v4, 16 }
 0x113   :  { %v1091_v49 = vadd.s32 4294967294, %v475_v40  ;;  %v580_v22 = vshll.u32 %v577_v10, 16  ;;  %v582_v31 = vshll.u32 %v578_v11, 16  ;;  %v581_v37 = vshrl.u32 %v577_v10, 16 }
 0x114   :  { %vm606_vm9 = vc.u32 %v598_v13, %v602_v19  ;;  %v608_v58 = vadd.s32 %v602_v19, %v598_v13  ;;  %v603_v24 = vshrl.u32 %v599_v61, 16  ;;  %v605_v53 = vshrl.u32 %v600_v4, 16 }
 0x115   :  { %vm1092_vm7 = vcmp.lt.s32.totalorder %v1091_v49, 0  ;;  %vm584_vm8 = vc.u32 %v576_v27, %v580_v22  ;;  %v586_v20 = vadd.s32 %v580_v22, %v576_v27  ;;  %v562_v17 = vsel %vm556_vm6, %v559_v30, %v561_v48 }
 0x116   :  { %v478_v1 = vsel %vm1092_vm7, 0, %v1091_v49  ;;  %v585_v32 = vsel %vm584_vm8, 1, %v1124_v0  ;;  %vm610_vm12 = vc.u32 %v608_v58, %v604_v63  ;;  %v583_v49 = vshrl.u32 %v578_v11, 16 }
 0x117   :  { %v479_v3 = vsub.s32 32, %v478_v1  ;;  %v483_v44 = vsub.s32 4294967266, %v478_v1  ;;  %v480_v5 = vshll.u32 %v471_v59, %v478_v1  ;;  %v607_v59 = vsel %vm606_vm9, 1, %v1124_v0 }
 0x118   :  { %v587_v33 = vadd.s32 %v585_v32, %v579_v21  ;;  %vm588_vm11 = vc.u32 %v586_v20, %v582_v31  ;;  %v609_v35 = vadd.s32 %v607_v59, %v601_v36  ;;  %v611_v34 = vsel %vm610_vm12, 1, %v1124_v0 }
 0x119   :  { %v481_v18 = vshrl.u32 %v463_v2, %v479_v3  ;;  %v484_v42 = vadd.s32 127, %v483_v44  ;;  %v589_v41 = vsel %vm588_vm11, 1, %v1124_v0  ;;  %v612_v54 = vadd.s32 %v608_v58, %v604_v63 }
 0x11a   :  { %v591_v40 = vadd.s32 %v589_v41, %v587_v33  ;;  %v613_v25 = vadd.s32 %v611_v34, %v609_v35  ;;  %v493_v57 = vsub.s32 4, %v1448_v6  ;;  %v616_v61 = vmul.u32 %v1475_v43, %v562_v17 }
 0x11b   :  { %v482_v9 = vor.u32 %v481_v18, %v480_v5  ;;  %v485_v29 = vshll.u32 %v484_v42, 23  ;;  %vm1001_vm8 = vcmask 130048   ;;  %vm1013_vm11 = vcmask 261120  }
 0x11c   :  { %v592_v52 = vadd.s32 %v591_v40, %v581_v37  ;;  %v614_v26 = vadd.s32 %v613_v25, %v603_v24  ;;  %v494_v4 = vsel %vm371_vm13, %v493_v57, %v1448_v6  ;;  %v1133_v57 = vmov 1.0  }
 0x11d   :  { %v486_v28 = vor.u32 4788187, %v485_v29  ;;  %v489_v62 = vcvt.s32.f32 %v482_v9  ;;  %v496_v13 = vsel %vm1516_vm15, 0, %v494_v4  ;;  %vm525_vm12 = vcmp.lt.s32.totalorder %v1429_v50, 0 }
 0x11e   :  { %v593_v45 = vadd.s32 %v592_v52, %v583_v49  ;;  %v615_v56 = vadd.s32 %v614_v26, %v605_v53  ;;  %v821_v21 = vadd.s32 3, %v496_v13  ;;  %v513_v29 = vand.u32 3, %v496_v13 }
 0x11f   :  { %v487_v39 = vand.u32 2147483647, %v486_v28  ;;  %v990_v34 = vpop.permute.xlu1 %989 }
 0x120   :  { %vm618_vm0 = vc.u32 %v593_v45, %v612_v54  ;;  %v619_v16 = vadd.s32 1, %v615_v56  ;;  %v822_v20 = vand.u32 3, %v821_v21  ;;  %vm514_vm2 = vcmp.lt.s32.totalorder %v513_v29, 2 }
 0x121   :  { %v490_v46 = vmul.f32 %v489_v62, %v487_v39  ;;  %vm515_vm3 = vcmp.eq.s32.totalorder %v513_v29, 0  ;;  %vm518_vm4 = vcmp.eq.s32.totalorder %v513_v29, 2  ;;  %v996_v39 = vpop.permute.xlu2 %995  ;;  %v617_v48 = vadd.s32 %v612_v54, %v593_v45 }
 0x122   :  { %v620_v2 = vsel %vm618_vm0, %v619_v16, %v615_v56  ;;  %vm823_vm5 = vcmp.lt.s32.totalorder %v822_v20, 2  ;;  %vm824_vm6 = vcmp.eq.s32.totalorder %v822_v20, 0  ;;  %vm827_vm7 = vcmp.eq.s32.totalorder %v822_v20, 2 }
 0x123   :  { %v491_v0 = vxor.u32 2147483648, %v490_v46  ;;  %v621_v44 = vadd.s32 %v620_v2, %v616_v61  ;;  %v1002_v24 = vsel %vm1001_vm8, %v990_v34, %v996_v39 }
 0x125   :  { %v492_v38 = vsel %vm371_vm13, %v491_v0, %v490_v46  ;;  %v622_v11 = vadd.s32 536870912, %v621_v44 }
 0x126   :  { %v495_v7 = vsel %vm1516_vm15, %v1357_v55, %v492_v38 }
 0x127   :  { %v497_v1 = vmul.f32 %v495_v7, %v495_v7  ;;  %v1532_v42 = vshrl.u32 %v622_v11, 30 }
 0x129   :  { %v498_v3 = vmul.f32 -0.001358992, %v497_v1  ;;  %v505_v60 = vmul.f32 -0.00019511016, %v497_v1  ;;  %v624_v27 = vshll.u32 %v1532_v42, 30 }
 0x12b   :  { %v499_v8 = vadd.f32 0.041655596, %v498_v3  ;;  %v506_v10 = vadd.f32 0.008332121, %v505_v60  ;;  %v625_v9 = vsub.s32 %v621_v44, %v624_v27 }
 0x12d   :  { %v500_v5 = vmul.f32 %v499_v8, %v497_v1  ;;  %v507_v18 = vmul.f32 %v506_v10, %v497_v1  ;;  %vm626_vm14 = vcmp.lt.s32.totalorder %v625_v9, 0  ;;  %v627_v63 = vsub.s32 0, %v625_v9 }
 0x12f   :  { %v501_v19 = vadd.f32 -0.4999988, %v500_v5  ;;  %v508_v43 = vadd.f32 -0.16666654, %v507_v18  ;;  %v628_v15 = vsel %vm626_vm14, %v627_v63, %v625_v9 }
 0x130   :  { %v629_v32 = vclz %v628_v15 }
 0x131   :  { %v502_v22 = vmul.f32 %v501_v19, %v497_v1  ;;  %v509_v36 = vmul.f32 %v508_v43, %v497_v1 }
 0x132   :  { %v1094_v33 = vadd.s32 4294967294, %v629_v32 }
 0x133   :  { %v503_v6 = vadd.f32 1.0, %v502_v22  ;;  %v510_v31 = vadd.f32 1.0, %v509_v36 }
 0x134   :  { %vm1095_vm9 = vcmp.lt.s32.totalorder %v1094_v33, 0 }
 0x135   :  { %v511_v58 = vmul.f32 %v510_v31, %v495_v7  ;;  %v519_v28 = vxor.u32 2147483648, %v503_v6  ;;  %v632_v46 = vsel %vm1095_vm9, 0, %v1094_v33  ;;  %v1004_v7 = vsel %vm51_vm10, -1.0, %v1133_v57 }
 0x136   :  { %v633_v49 = vsub.s32 32, %v632_v46  ;;  %v637_v52 = vsub.s32 4294967266, %v632_v46  ;;  %v634_v0 = vshll.u32 %v625_v9, %v632_v46  ;;  %vm524_vm10 = vcmp.le.f32.partialorder %v523_v12, 0.7853982 }
 0x137   :  { %v516_v59 = vxor.u32 2147483648, %v511_v58  ;;  %v829_v41 = vsel %vm827_vm7, %v519_v28, %v511_v58  ;;  %v520_v37 = vsel %vm518_vm4, %v519_v28, %v511_v58  ;;  %v998_v58 = vpop.permute.xlu2 %997  ;;  %v992_v28 = vpop.permute.xlu1 %991 }
 0x138   :  { %v635_v17 = vshrl.u32 %v617_v48, %v633_v49  ;;  %v638_v56 = vadd.s32 127, %v637_v52  ;;  %v1003_v15 = vsel %vm1001_vm8, %v992_v28, %v998_v58 }
 0x139   :  { %v517_v35 = vsel %vm515_vm3, %v503_v6, %v516_v59  ;;  %v826_v62 = vsel %vm824_vm6, %v503_v6, %v516_v59  ;;  %vm666_vm3 = vweird.f32 %v1429_v50 }
 0x13a   :  { %v830_v40 = vsel %vm823_vm5, %v826_v62, %v829_v41  ;;  %v521_v25 = vsel %vm514_vm2, %v517_v35, %v520_v37  ;;  %v636_v23 = vor.u32 %v635_v17, %v634_v0  ;;  %v639_v38 = vshll.u32 %v638_v56, 23 }
 0x13b   :  { %v831_v30 = vsel %vm512_vm1, nan, %v830_v40  ;;  %v522_v26 = vsel %vm512_vm1, nan, %v521_v25 }
 0x13c   :  { %v1007_v53 = vmul.f32 %v1002_v24, %v831_v30  ;;  %v1005_v16 = vmul.f32 %v522_v26, %v1305_v47  ;;  %v640_v61 = vor.u32 4788187, %v639_v38  ;;  %v643_v2 = vcvt.s32.f32 %v636_v23 }
 0x13d   :  { %v647_v47 = vsub.s32 4, %v1532_v42  ;;  %v1134_v30 = vmov 32.0  }
 0x13e   :  { %v1009_v1 = vmul.f32 %v1007_v53, %v1004_v7  ;;  %v641_v54 = vand.u32 2147483647, %v640_v61  ;;  %1118 = vrcp.f32 %v1134_v30 }
 0x13f   :  { %v648_v11 = vsel %vm525_vm12, %v647_v47, %v1532_v42 }
 0x140   :  { %v1545_v45 = vadd.f32 %v1009_v1, %v1005_v16  ;;  %v644_v3 = vmul.f32 %v643_v2, %v641_v54  ;;  %v650_v18 = vsel %vm524_vm10, 0, %v648_v11 }
 0x141   :  { %v976_v22 = vadd.s32 3, %v650_v18  ;;  %v667_v6 = vand.u32 3, %v650_v18 }
 0x142   :  { %v1014_v55 = vsel %vm1013_vm11, %v1545_v45, 0.0  ;;  %v645_v60 = vxor.u32 2147483648, %v644_v3 }
 0x143   :  { %1015 = vadd.xlane.f32.xlu0 %v1014_v55  ;;  %v977_v31 = vand.u32 3, %v976_v22  ;;  %vm668_vm13 = vcmp.lt.s32.totalorder %v667_v6, 2  ;;  %vm669_vm15 = vcmp.eq.s32.totalorder %v667_v6, 0  ;;  %vm672_vm0 = vcmp.eq.s32.totalorder %v667_v6, 2 }
 0x144   :  { %v646_v14 = vsel %vm525_vm12, %v645_v60, %v644_v3  ;;  %v1119_v48 = vpop.eup %1118 }
 0x145   :  { %v649_v44 = vsel %vm524_vm10, %v1429_v50, %v646_v14  ;;  %vm978_vm14 = vcmp.lt.s32.totalorder %v977_v31, 2  ;;  %vm979_vm1 = vcmp.eq.s32.totalorder %v977_v31, 0  ;;  %vm982_vm2 = vcmp.eq.s32.totalorder %v977_v31, 2 }
 0x146   :  { %v651_v4 = vmul.f32 %v649_v44, %v649_v44  ;;  %v1021_v49 = vmul.f32 32.0, %v1119_v48  ;;  %vm1025_vm4 = vweird.f32 %v1119_v48 }
 0x148   :  { %v652_v8 = vmul.f32 -0.001358992, %v651_v4  ;;  %v659_v10 = vmul.f32 -0.00019511016, %v651_v4  ;;  %v1022_v52 = vsub.f32 1.0, %v1021_v49 }
 0x14a   :  { %v653_v13 = vadd.f32 0.041655596, %v652_v8  ;;  %v660_v5 = vadd.f32 0.008332121, %v659_v10  ;;  %v1023_v53 = vmul.f32 %v1119_v48, %v1022_v52  ;;  %v1117_v8 = vld [vmem:[%s1581_s5] ss:$0 sm:$0xff] }
 0x14c   :  { %v654_v19 = vmul.f32 %v653_v13, %v651_v4  ;;  %v661_v43 = vmul.f32 %v660_v5, %v651_v4  ;;  %v1024_v26 = vadd.f32 %v1119_v48, %v1023_v53 }
 0x14e   :  { %v655_v27 = vadd.f32 -0.4999988, %v654_v19  ;;  %v662_v21 = vadd.f32 -0.16666654, %v661_v43  ;;  %v1026_v50 = vsel %vm1025_vm4, %v1119_v48, %v1024_v26 }
 0x150   :  { %v656_v36 = vmul.f32 %v655_v27, %v651_v4  ;;  %v663_v12 = vmul.f32 %v662_v21, %v651_v4 }
 0x152   :  { %v657_v9 = vadd.f32 1.0, %v656_v36  ;;  %v664_v29 = vadd.f32 1.0, %v663_v12 }
 0x154   :  { %v665_v63 = vmul.f32 %v664_v29, %v649_v44  ;;  %v673_v20 = vxor.u32 2147483648, %v657_v9  ;;  %v1116_v44 = vld [vmem:[%s1580_s4] ss:$0 sm:$0xff] }
 0x156   :  { %v670_v42 = vxor.u32 2147483648, %v665_v63  ;;  %v674_v59 = vsel %vm672_vm0, %v673_v20, %v665_v63  ;;  %v984_v35 = vsel %vm982_vm2, %v673_v20, %v665_v63 }
 0x158   :  { %v671_v32 = vsel %vm669_vm15, %v657_v9, %v670_v42  ;;  %v981_v33 = vsel %vm979_vm1, %v657_v9, %v670_v42 }
 0x159   :  { %v675_v39 = vsel %vm668_vm13, %v671_v32, %v674_v59  ;;  %v985_v62 = vsel %vm978_vm14, %v981_v33, %v984_v35 }
 0x15a   :  { %v676_v41 = vsel %vm666_vm3, nan, %v675_v39  ;;  %v986_v34 = vsel %vm666_vm3, nan, %v985_v62 }
 0x15b   :  { %v1008_v37 = vmul.f32 %v1003_v15, %v986_v34  ;;  %v1006_v40 = vmul.f32 %v676_v41, %v1315_v51 }
 0x15d   :  { %v1010_v24 = vmul.f32 %v1008_v37, %v1004_v7 }
 0x15f   :  { %v1012_v25 = vadd.f32 %v1010_v24, %v1006_v40 }
 0x161   :  { %v1017_v46 = vsel %vm1013_vm11, %v1012_v25, 0.0 }
 0x162   :  { %1018 = vadd.xlane.f32.xlu1 %v1017_v46 }
 0x1b6   :  { %v1016_v0 = vpop.xlane.xlu0 %1015 }
 0x1b7   :  { %v1027_v17 = vmul.f32 %v1026_v50, %v1016_v0 }
 0x1b9   :  { %v1029_v56 = vsub.f32 %v1545_v45, %v1027_v17 }
 0x1bb   :  { %v1031_v23 = vmul.f32 %v1029_v56, %v1029_v56 }
 0x1bd   :  { %v1033_v51 = vsel %vm1013_vm11, %v1031_v23, 0.0 }
 0x1be   :  { %1034 = vadd.xlane.f32.xlu2 %v1033_v51 }
 0x1d5   :  { %v1019_v38 = vpop.xlane.xlu1 %1018 }
 0x1d6   :  { %v1028_v57 = vmul.f32 %v1026_v50, %v1019_v38 }
 0x1d8   :  { %v1030_v7 = vsub.f32 %v1012_v25, %v1028_v57 }
 0x1da   :  { %v1032_v16 = vmul.f32 %v1030_v7, %v1030_v7 }
 0x1dc   :  { %v1036_v1 = vsel %vm1013_vm11, %v1032_v16, 0.0 }
 0x1dd   :  { %1037 = vadd.xlane.f32.xlu2 %v1036_v1 }
 0x231   :  { %v1035_v61 = vpop.xlane.xlu2 %1034 }
 0x232   :  { %v1039_v54 = vmul.f32 %v1035_v61, %v1026_v50 }
 0x234   :  { %v1041_v2 = vadd.f32 1e-12, %v1039_v54 }
 0x236   :  { %1120 = vrsqrt.f32 %v1041_v2  ;;  %vm1049_vm6 = vweird.f32 %v1041_v2 }
 0x23c   :  { %v1121_v55 = vpop.eup %1120 }
 0x23d   :  { %v1044_v3 = vmul.f32 %v1121_v55, %v1041_v2  ;;  %vm1050_vm5 = vweird.f32 %v1121_v55 }
 0x23e   :  { %vm1051_vm7 = vmor %vm1049_vm6, %vm1050_vm5 }
 0x23f   :  { %v1045_v60 = vmul.f32 %v1121_v55, %v1044_v3 }
 0x241   :  { %v1046_v14 = vmul.f32 0.5, %v1045_v60 }
 0x243   :  { %v1047_v45 = vsub.f32 1.5, %v1046_v14 }
 0x245   :  { %v1048_v47 = vmul.f32 %v1121_v55, %v1047_v45 }
 0x247   :  { %v1052_v4 = vsel %vm1051_vm7, %v1121_v55, %v1048_v47 }
 0x248   :  { %v1063_v10 = vmul.f32 %v1052_v4, %v1029_v56 }
 0x24a   :  { %v1069_v11 = vmul.f32 %v1116_v44, %v1063_v10 }
 0x24c   :  { %v1075_v13 = vadd.f32 %v1117_v8, %v1069_v11 }
 0x24e   :  { %1077 = vst.msk [vmem:[%s1582_s6] sm:$0xff] %vm1013_vm11, %v1075_v13 }
 0x250   :  { %v1038_v5 = vpop.xlane.xlu2 %1037 }
 0x251   :  { %v1040_v18 = vmul.f32 %v1038_v5, %v1026_v50 }
 0x253   :  { %v1042_v19 = vadd.f32 1e-12, %v1040_v18 }
 0x255   :  { %1122 = vrsqrt.f32 %v1042_v19  ;;  %vm1059_vm9 = vweird.f32 %v1042_v19 }
 0x25b   :  { %v1123_v43 = vpop.eup %1122 }
 0x25c   :  { %v1054_v27 = vmul.f32 %v1123_v43, %v1042_v19  ;;  %vm1060_vm8 = vweird.f32 %v1123_v43 }
 0x25d   :  { %vm1061_vm12 = vmor %vm1059_vm9, %vm1060_vm8 }
 0x25e   :  { %v1055_v21 = vmul.f32 %v1123_v43, %v1054_v27 }
 0x260   :  { %v1056_v22 = vmul.f32 0.5, %v1055_v21 }
 0x262   :  { %v1057_v36 = vsub.f32 1.5, %v1056_v22 }
 0x264   :  { %v1058_v12 = vmul.f32 %v1123_v43, %v1057_v36 }
 0x266   :  { %v1062_v9 = vsel %vm1061_vm12, %v1123_v43, %v1058_v12 }
 0x267   :  { %v1064_v29 = vmul.f32 %v1062_v9, %v1030_v7 }
 0x269   :  { %v1070_v6 = vmul.f32 %v1116_v44, %v1064_v29 }
 0x26b   :  { %v1076_v31 = vadd.f32 %v1117_v8, %v1070_v6 }
 0x26d   :  { %1078 = vst.msk [vmem:[%s1582_s6 + $0x8] sm:$0xff] %vm1013_vm11, %v1076_v31 }

// kernel: _forward_impl.9
= control target key start
LH: loop header
LB: loop body
LE: loop exit
PB: predicated region body
PF: predicated region fallthrough
CT: control target
= control target key end

     0   :  { %s2003_s18 = smov 0   ;;  %s2005_s19 = smov 0   ;;  %s2450_s0 = inlined_call_operand.vmem [shape: f32[4,1,128], index: 0, kind: input, shape index: {}]   ;;  %s2451_s1 = inlined_call_operand.vmem [shape: s32[4,1,128], index: 1, kind: input, shape index: {}]   ;;  %s2452_s2 = inlined_call_operand.vmem [shape: f32[4,1,32], index: 2, kind: input, shape index: {}]   ;;  %s2453_s3 = inlined_call_operand.vmem [shape: f32[16,32], index: 3, kind: input, shape index: {}]   ;;  %s2454_s4 = inlined_call_operand.vmem [shape: f32[16,32], index: 4, kind: input, shape index: {}]   ;;  %s2455_s5 = inlined_call_operand.vmem [shape: f32[16,32], index: 5, kind: input, shape index: {}]   ;;  %s2456_s6 = inlined_call_operand.vmem [shape: f32[16,32], index: 6, kind: input, shape index: {}]   ;;  %s2457_s7 = inlined_call_operand.vmem [shape: f32[16,1], index: 7, kind: input, shape index: {}]   ;;  %s2458_s8 = inlined_call_operand.vmem [shape: f32[16,1], index: 8, kind: input, shape index: {}]   ;;  %s2459_s9 = inlined_call_operand.vmem [shape: f32[32,32], index: 9, kind: input, shape index: {}]   ;;  %s2460_s10 = inlined_call_operand.vmem [shape: f32[1,32], index: 10, kind: input, shape index: {}, may-alias: {10,12}]   ;;  %s2461_s11 = inlined_call_operand.vmem [shape: f32[32,32], index: 11, kind: input, shape index: {}]   ;;  %s2462_s12 = inlined_call_operand.vmem [shape: f32[1,32], index: 12, kind: input, shape index: {}, may-alias: {10,12}]   ;;  %s2463_s13 = inlined_call_operand.vmem [shape: f32[2,32], index: 13, kind: input, shape index: {}]   ;;  %s2464_s14 = inlined_call_operand.vmem [shape: f32[2,32], index: 14, kind: input, shape index: {}]   ;;  %s2465_s15 = inlined_call_operand.vmem [shape: f32[2,4,1,128], index: 15, kind: output, shape index: {}]  }
   0x1   :  { %s2007_s20 = smov 0   ;;  %s2009_s21 = smov 0  }
   0x2   :  { %s2011_s22 = smov 0  }
   0x3 LB: > { %2467 = sst [smem:[#allocation2_spill]] %s1906_s21  ;;  %s34_s23 = sadd.s32 1, %s1902_s20  ;;  %s1910_s22 = sphi %s2011_s22, %s25_s22   ;;  %s1906_s21 = sphi %s2009_s21, %s2476_s21   ;;  %s1902_s20 = sphi %s2007_s20, %s2478_s20   ;;  %s1898_s19 = sphi %s2005_s19, %s2474_s19   ;;  %s1894_s18 = sphi %s2003_s18, %s2477_s18  }
   0x4   : > { %s37_s24 = sadd.s32 1, %s1906_s21  ;;  %p35_p0 = scmp.ge.s32.totalorder %s34_s23, 4 }
   0x5   : > { %p1740_p1 = scmp.ge.s32.totalorder %s1910_s22, 1  ;;  %p519_p2 = scmp.lt.s32.totalorder %s1910_s22, 9 }
   0x6   : > { %s2480_s23 = smov (%p35_p0, %s34_s23), 0  ;;  %s2482_s24 = smov (!%p35_p0, %s37_s24), %s1906_s21 }
   0x7   : > { %2468 = sst [smem:[#allocation3_spill]] %s2480_s23  ;;  %p520_p3 = pnand %p1740_p1, %p519_p2 }
   0x8   : > { %p39_p4 = scmp.ge.s32.totalorder %s2482_s24, 2  ;;  %p597_p5 = scmp.lt.s32.totalorder (!%p520_p3), %s1894_s18, 3 }
   0x9   : > { %523 = sbr.rel (%p520_p3) target bundleno = 1185 (0x4a1), region = 80  ;;  %p606_p6 = scmp.lt.s32.totalorder (!%p520_p3), %s1898_s19, 1 }
   0xa   : > { %s2484_s24 = smov (%p39_p4, %s2482_s24), 0  ;;  %s1913_s16 = smov (!%p520_p3), 127  }
   0xb   : > { %2469 = sst [smem:[#allocation4_spill]] %s2484_s24  ;;  %s1752_s26 = sshll.u32 (!%p520_p3), %s1898_s19, 3 }
   0xe   : > { %s2486_s18 = smov (!%p597_p5, %s1894_s18), 3  ;;  %vm666_vm0 = vcmask 261120   ;;  %v1912_v7 = vmov 32.0   ;;  %v654_v24 = vld [vmem:[%s2459_s9 + $0x18] sm:$0xff]  ;;  %v653_v25 = vld [vmem:[%s2459_s9 + $0x10] sm:$0xff]  ;;  %v652_v26 = vld [vmem:[%s2459_s9 + $0x8] sm:$0xff] }
   0xf   : > { %s2039_s25 = scalar_select %p606_p6, %s1898_s19, 1  ;;  %1838 = vrcp.f32 %v1912_v7  ;;  %821 = vmatpush.msra.mxu2 %v654_v24  ;;  %718 = vmatpush.msra.mxu0 %v654_v24  ;;  %v651_v27 = vld [vmem:[%s2459_s9] sm:$0xff]  ;;  %v659_v33 = vld [vmem:[%s2461_s11 + $0x18] sm:$0xff]  ;;  %v658_v61 = vld [vmem:[%s2461_s11 + $0x10] sm:$0xff] }
  0x10   : > { %s605_s28 = scalar_lea.vmem %s2452_s2, %s2486_s18  ;;  %s602_s23 = scalar_lea.vmem %s2451_s1, %s2486_s18  ;;  %845 = vmatpush.msra.mxu3 %v659_v33  ;;  %745 = vmatpush.msra.mxu1 %v659_v33  ;;  %v2096_v42 = vld [vmem:[%s2463_s13] sm:$0x3]  ;;  %v657_v62 = vld [vmem:[%s2461_s11 + $0x8] sm:$0xff] }
  0x11   : > { %s2046_s29 = sshll.u32 %s2039_s25, 3  ;;  %v1835_v0 = vld [vmem:[%s605_s28] ss:$0 sm:$0xff]  ;;  %822 = vmatpush.msra.mxu2 %v653_v25  ;;  %719 = vmatpush.msra.mxu0 %v653_v25  ;;  %s599_s27 = scalar_lea.vmem %s2450_s0, %s2486_s18  ;;  %v696_v47 = vperm.slane %v2096_v42, 0 }
  0x12   : > { %s613_s17 = scalar_lea.vmem %s2454_s4, %s2046_s29  ;;  %s609_s21 = scalar_lea.vmem %s2453_s3, %s2046_s29  ;;  %v887_v31 = vld [vmem:[%s602_s23] sm:$0x1]  ;;  %846 = vmatpush.msra.mxu3 %v658_v61  ;;  %746 = vmatpush.msra.mxu1 %v658_v61  ;;  %v1916_v61 = vmov 683565275  }
  0x13   : > { %v780_v1 = vld [vmem:[%s613_s17] sm:$0xff]  ;;  %823 = vmatpush.msra.mxu2 %v652_v26  ;;  %720 = vmatpush.msra.mxu0 %v652_v26  ;;  %s1914_s17 = smov 126   ;;  %s625_s19 = scalar_lea.vmem %s2457_s7, %s2046_s29 }
  0x14   : > { %v781_v2 = vadd.f32 %v1835_v0, %v780_v1  ;;  %v661_v3 = vld [vmem:[%s609_s21] sm:$0xff]  ;;  %847 = vmatpush.msra.mxu3 %v657_v62  ;;  %747 = vmatpush.msra.mxu1 %v657_v62  ;;  %s629_s24 = scalar_lea.vmem %s2458_s8, %s2046_s29 }
  0x15   : > { %v665_v5 = vadd.f32 %v1835_v0, %v661_v3  ;;  %v1839_v8 = vpop.eup %1838  ;;  %824 = vmatpush.msra.mxu2 %v651_v27  ;;  %721 = vmatpush.msra.mxu0 %v651_v27  ;;  %v637_v32 = vld [vmem:[%s599_s27] sm:$0x1] }
  0x16   : > { %v782_v4 = vsel %vm666_vm0, %v781_v2, 0.0  ;;  %v671_v9 = vmul.f32 32.0, %v1839_v8  ;;  %vm675_vm1 = vweird.f32 %v1839_v8  ;;  %640 = vrot.lane.b32.xlu2 %v637_v32, %s1913_s16  ;;  %1764 = vpush %v637_v32  ;;  %v2101_v46 = vld [vmem:[%s2464_s14] sm:$0x3] }
  0x17   : > { %783 = vadd.xlane.f32.xlu0 %v782_v4  ;;  %v667_v6 = vsel %vm666_vm0, %v665_v5, 0.0  ;;  %v698_v50 = vperm.slane %v2101_v46, 0  ;;  %v656_v63 = vld [vmem:[%s2461_s11] sm:$0xff] }
  0x18   : > { %v672_v10 = vsub.f32 1.0, %v671_v9  ;;  %848 = vmatpush.msra.mxu3 %v656_v63  ;;  %748 = vmatpush.msra.mxu1 %v656_v63  ;;  %v1836_v3 = vld [vmem:[%s2460_s10] ss:$0 sm:$0xff]  ;;  %v1917_v63 = vmov 2475754826  }
  0x1a   : > { %v673_v11 = vmul.f32 %v1839_v8, %v672_v10  ;;  %v878_v10 = vlaneseq }
  0x1c   : > { %v674_v12 = vadd.f32 %v1839_v8, %v673_v11  ;;  %v879_v11 = vshrl.u32 %v878_v10, 7 }
  0x1e   : > { %v2058_v13 = vsel %vm675_vm1, %v1839_v8, %v674_v12  ;;  %644 = vrot.lane.b32.xlu2 %v637_v32, %s1914_s17  ;;  %v883_v12 = vstv %s1752_s26  ;;  %s617_s26 = scalar_lea.vmem %s2455_s5, %s2046_s29 }
  0x1f   : > { %668 = vadd.xlane.f32.xlu0 %v667_v6 }
  0x33   : > { %1233 = vrot.lane.b32.xlu0 %v887_v31, %s1913_s16 }
  0x47   : > { %s2129_s27 = spop %1764 }
  0x70   : > { %v641_v0 = vpop.permute.xlu2 %640 }
  0x71   : > { %1766 = vpush %v641_v0 }
  0x8a   : > { %v784_v14 = vpop.xlane.xlu0 %783 }
  0x8b   : > { %v785_v15 = vmul.f32 %v784_v14, %v2058_v13  ;;  %v884_v14 = vadd.s32 %v883_v12, %v879_v11 }
  0x8d   : > { %v786_v16 = vsub.f32 %v781_v2, %v785_v15  ;;  %v645_v2 = vpop.permute.xlu2 %644  ;;  %v2135_v15 = vand.u32 127, %v878_v10 }
  0x8e   : > { %1768 = vpush %v645_v2  ;;  %v1918_v2 = vmov 2131351028  }
  0x8f   : > { %v787_v17 = vmul.f32 %v786_v16, %v786_v16  ;;  %1770 = vpush %v887_v31 }
  0x91   : > { %v788_v18 = vsel %vm666_vm0, %v787_v17, 0.0 }
  0x92   : > { %789 = vadd.xlane.f32.xlu1 %v788_v18  ;;  %v669_v19 = vpop.xlane.xlu0 %668 }
  0x93   : > { %v677_v20 = vmul.f32 %v2058_v13, %v669_v19 }
  0x95   : > { %v2063_v21 = vsub.f32 %v665_v5, %v677_v20 }
  0x97   : > { %v679_v22 = vmul.f32 %v2063_v21, %v2063_v21 }
  0x99   : > { %v680_v23 = vsel %vm666_vm0, %v679_v22, 0.0 }
  0x9a   : > { %681 = vadd.xlane.f32.xlu1 %v680_v23 }
  0xa2   : > { %s2131_s28 = spop %1766 }
  0xa5   : > { %v1234_v1 = vpop.permute.xlu0 %1233 }
  0xa6   : > { %1772 = vpush %v1234_v1 }
  0xbf   : > { %s2133_s30 = spop %1768 }
  0xc0   : > { %s1771_s16 = spop %1770 }
  0xc1   : > { %v889_v27 = vstv %s1771_s16 }
  0xd7   : > { %s1773_s17 = spop %1772 }
  0xd8   : > { %v1236_v18 = vstv %s1773_s17 }
 0x105   : > { %v790_v28 = vpop.xlane.xlu1 %789 }
 0x106   : > { %v791_v29 = vmul.f32 %v790_v28, %v2058_v13 }
 0x108   : > { %v792_v30 = vadd.f32 1e-05, %v791_v29 }
 0x10a   : > { %1840 = vrsqrt.f32 %v792_v30  ;;  %vm799_vm3 = vweird.f32 %v792_v30 }
 0x10d   : > { %v682_v34 = vpop.xlane.xlu1 %681 }
 0x10e   : > { %v683_v35 = vmul.f32 %v682_v34, %v2058_v13 }
 0x110   : > { %v1841_v36 = vpop.eup %1840  ;;  %v684_v37 = vadd.f32 1e-05, %v683_v35 }
 0x111   : > { %v794_v38 = vmul.f32 %v1841_v36, %v792_v30  ;;  %vm800_vm2 = vweird.f32 %v1841_v36 }
 0x112   : > { %1842 = vrsqrt.f32 %v684_v37  ;;  %vm801_vm4 = vmor %vm799_vm3, %vm800_vm2  ;;  %vm691_vm6 = vweird.f32 %v684_v37 }
 0x113   : > { %v795_v39 = vmul.f32 %v1841_v36, %v794_v38 }
 0x115   : > { %v796_v40 = vmul.f32 0.5, %v795_v39 }
 0x117   : > { %v797_v41 = vsub.f32 1.5, %v796_v40 }
 0x118   : > { %v1843_v43 = vpop.eup %1842 }
 0x119   : > { %v798_v44 = vmul.f32 %v1841_v36, %v797_v41  ;;  %v686_v45 = vmul.f32 %v1843_v43, %v684_v37  ;;  %vm692_vm5 = vweird.f32 %v1843_v43 }
 0x11a   : > { %vm693_vm7 = vmor %vm691_vm6, %vm692_vm5 }
 0x11b   : > { %v802_v48 = vsel %vm801_vm4, %v1841_v36, %v798_v44  ;;  %v687_v49 = vmul.f32 %v1843_v43, %v686_v45 }
 0x11c   : > { %v803_v51 = vmul.f32 %v802_v48, %v786_v16  ;;  %v885_v16 = vmul.u32 32, %v884_v14  ;;  %v1920_v14 = vmov 1326507024  }
 0x11d   : > { %v688_v52 = vmul.f32 0.5, %v687_v49 }
 0x11e   : > { %v804_v53 = vmul.f32 %v803_v51, %v696_v47  ;;  %v886_v17 = vadd.s32 %v885_v16, %v2135_v15 }
 0x11f   : > { %v689_v54 = vsub.f32 1.5, %v688_v52 }
 0x120   : > { %v2105_v55 = vadd.f32 %v804_v53, %v698_v50  ;;  %v1237_v19 = vxor.u32 %v1236_v18, %v886_v17  ;;  %v890_v29 = vxor.u32 %v889_v27, %v886_v17 }
 0x121   : > { %v690_v56 = vmul.f32 %v1843_v43, %v689_v54 }
 0x122   : > { %1750 = vmatmul.msk.f32.vlgmr.msra.gmra.mxu2 %vm666_vm0, %v2105_v55  ;;  %v1238_v20 = vshrl.u32 %v1237_v19, 16  ;;  %v891_v31 = vshrl.u32 %v890_v29, 16 }
 0x123   : > { %v694_v57 = vsel %vm693_vm7, %v1843_v43, %v690_v56 }
 0x124   : > { %v695_v58 = vmul.f32 %v694_v57, %v2063_v21  ;;  %v1239_v21 = vxor.u32 %v1238_v20, %v1237_v19  ;;  %v892_v33 = vxor.u32 %v891_v31, %v890_v29  ;;  %v1915_v57 = vmov 2102212464   ;;  %v1837_v19 = vld [vmem:[%s2462_s12] ss:$0 sm:$0xff] }
 0x126   : > { %v697_v59 = vmul.f32 %v696_v47, %v695_v58  ;;  %v1240_v22 = vmul.u32 2146121005, %v1239_v21  ;;  %v893_v35 = vmul.u32 2146121005, %v892_v33 }
 0x128   : > { %v2110_v60 = vadd.f32 %v698_v50, %v697_v59  ;;  %v1241_v23 = vshrl.u32 %v1240_v22, 15  ;;  %v894_v37 = vshrl.u32 %v893_v35, 15 }
 0x12a   : > { %1748 = vmatmul.msk.f32.vlgmr.msra.gmra.mxu0 %vm666_vm0, %v2110_v60  ;;  %v1242_v24 = vxor.u32 %v1241_v23, %v1240_v22  ;;  %v895_v39 = vxor.u32 %v894_v37, %v893_v35 }
 0x12c   : > { %v1243_v25 = vmul.u32 2221713035, %v1242_v24  ;;  %v896_v41 = vmul.u32 2221713035, %v895_v39 }
 0x12e   : > { %v1244_v26 = vshrl.u32 %v1243_v25, 16  ;;  %v897_v44 = vshrl.u32 %v896_v41, 16 }
 0x130   : > { %v2138_v28 = vxor.u32 %v1244_v26, %v1243_v25  ;;  %v2144_v47 = vxor.u32 %v897_v44, %v896_v41 }
 0x132   : > { %v1249_v30 = vshrl.u32 %v2138_v28, 16  ;;  %v902_v48 = vshrl.u32 %v2144_v47, 16 }
 0x134   : > { %v1250_v32 = vcvt.s32.f32 %v1249_v30  ;;  %v903_v51 = vcvt.s32.f32 %v902_v48 }
 0x136   : > { %v1251_v34 = vmul.f32 1.5258789e-05, %v1250_v32  ;;  %v904_v53 = vmul.f32 1.5258789e-05, %v903_v51 }
 0x138   : > { %v2141_v36 = vmul.f32 6.2831855, %v1251_v34  ;;  %v2176_v17 = vmul.f32 6.2831855, %v904_v53 }
 0x13a   : > { %v1272_v38 = vand.u32 2139095040, %v2141_v36  ;;  %v1269_v56 = vand.u32 2147483647, %v2141_v36  ;;  %v925_v29 = vand.u32 2139095040, %v2176_v17 }
 0x13c   : > { %v1273_v40 = vshrl.u32 %v1272_v38, 23  ;;  %v1276_v59 = vand.u32 8388607, %v1269_v56  ;;  %v926_v53 = vshrl.u32 %v925_v29, 23 }
 0x13e   : > { %v1759_v43 = vadd.s32 4294967169, %v1273_v40 }
 0x140   : > { %v1279_v45 = vadd.s32 1, %v1759_v43 }
 0x142   : > { %vm1280_vm8 = vcmp.gt.s32.totalorder %v1279_v45, 0 }
 0x143   : > { %v1281_v49 = vsel %vm1280_vm8, %v1279_v45, 0 }
 0x144   : > { %v1283_v50 = vand.u32 31, %v1281_v49  ;;  %v2149_v54 = vshrl.u32 %v1281_v49, 5 }
 0x146   : > { %v2147_v52 = vsub.s32 32, %v1283_v50  ;;  %v1295_v58 = vshll.u32 %v1915_v57, %v1283_v50  ;;  %v1286_v62 = vshll.u32 %v1916_v61, %v1283_v50  ;;  %v1289_v1 = vshll.u32 %v1917_v63, %v1283_v50 }
 0x147   : > { %vm1301_vm9 = vcmp.lt.s32.totalorder %v2149_v54, 1  ;;  %vm1303_vm10 = vcmp.lt.s32.totalorder %v2149_v54, 3  ;;  %vm1304_vm11 = vcmp.lt.s32.totalorder %v2149_v54, 4  ;;  %vm1302_vm12 = vcmp.lt.s32.totalorder %v2149_v54, 2 }
 0x148   : > { %v1287_v0 = vshrl.u32 %v1917_v63, %v2147_v52  ;;  %v1299_v16 = vshrl.u32 %v1920_v14, %v2147_v52 }
 0x1a5   : > { %v826_v4 = vpop.f32.mrf.mxu2 }
 0x1a6   : > { %v827_v5 = vadd.f32 %v1836_v3, %v826_v4  ;;  %v1292_v4 = vshll.u32 %v1918_v2, %v1283_v50 }
 0x1a7   : > { %v723_v6 = vpop.f32.mrf.mxu0 }
 0x1a8   : > { %v829_v7 = vmax.f32 %v827_v5, 0.0  ;;  %v724_v8 = vadd.f32 %v1836_v3, %v723_v6  ;;  %v1290_v3 = vshrl.u32 %v1918_v2, %v2147_v52  ;;  %v1293_v5 = vshrl.u32 %v1915_v57, %v2147_v52 }
 0x1a9   : > { %v1277_v6 = vor.u32 8388608, %v1276_v59 }
 0x1aa   : > { %v726_v9 = vmax.f32 %v724_v8, 0.0  ;;  %1751 = vmatmul.msk.f32.vlgmr.msra.gmra.mxu3 %vm666_vm0, %v829_v7  ;;  %v2164_v7 = vor.u32 %v1287_v0, %v1286_v62  ;;  %v1919_v8 = vmov 920167782   ;;  %v2169_v11 = vor.u32 %v1290_v3, %v1289_v1 }
 0x1ab   : > { %v1298_v10 = vshll.u32 %v1919_v8, %v1283_v50  ;;  %v2171_v12 = vor.u32 %v1293_v5, %v1292_v4  ;;  %v2188_v22 = vshll.u32 %v1277_v6, 8 }
 0x1ac   : > { %1749 = vmatmul.msk.f32.vlgmr.msra.gmra.mxu1 %vm666_vm0, %v726_v9  ;;  %v1296_v9 = vshrl.u32 %v1919_v8, %v2147_v52  ;;  %v1309_v21 = vsel %vm1301_vm9, %v2164_v7, %v2169_v11 }
 0x1ad   : > { %v1300_v20 = vor.u32 %v1299_v16, %v1298_v10  ;;  %v1313_v24 = vsel %vm1301_vm9, %v2169_v11, %v2171_v12  ;;  %v1318_v27 = vand.u32 65535, %v2188_v22  ;;  %v1319_v33 = vshrl.u32 %v2188_v22, 16 }
 0x1ae   : > { %v1297_v18 = vor.u32 %v1296_v9, %v1295_v58  ;;  %v1753_v9 = vadd.s32 4294967169, %v926_v53  ;;  %v1921_v16 = vmov 0  }
 0x1af   : > { %v1314_v26 = vsel %vm1304_vm11, %v1300_v20, 1326507024 }
 0x1b0   : > { %v1310_v23 = vsel %vm1304_vm11, %v1297_v18, 920167782  ;;  %v1315_v32 = vsel %vm1303_vm10, %v1297_v18, %v1314_v26 }
 0x1b1   : > { %v1311_v25 = vsel %vm1303_vm10, %v2171_v12, %v1310_v23  ;;  %v1316_v35 = vsel %vm1302_vm12, %v1313_v24, %v1315_v32  ;;  %v1285_v23 = vshrl.u32 %v1916_v61, %v2147_v52 }
 0x1b2   : > { %v1312_v31 = vsel %vm1302_vm12, %v1309_v21, %v1311_v25  ;;  %v1320_v39 = vand.u32 65535, %v1316_v35  ;;  %v1321_v40 = vshrl.u32 %v1316_v35, 16 }
 0x1b3   : > { %v1342_v37 = vand.u32 65535, %v1312_v31  ;;  %v1343_v38 = vshrl.u32 %v1312_v31, 16  ;;  %v932_v31 = vadd.s32 1, %v1753_v9  ;;  %v1305_v32 = vsel %vm1301_vm9, %v1285_v23, %v2164_v7 }
 0x1b4   : > { %v1322_v48 = vmul.u32 %v1320_v39, %v1318_v27  ;;  %v1323_v49 = vmul.u32 %v1321_v40, %v1318_v27  ;;  %v1324_v50 = vmul.u32 %v1320_v39, %v1319_v33  ;;  %v1325_v62 = vmul.u32 %v1321_v40, %v1319_v33 }
 0x1b5   : > { %v1344_v43 = vmul.u32 %v1342_v37, %v1318_v27  ;;  %v1345_v44 = vmul.u32 %v1343_v38, %v1318_v27  ;;  %v1346_v51 = vmul.u32 %v1342_v37, %v1319_v33  ;;  %v1347_v4 = vmul.u32 %v1343_v38, %v1319_v33 }
 0x1b6   : > { %v1326_v0 = vshll.u32 %v1323_v49, 16  ;;  %v1328_v1 = vshll.u32 %v1324_v50, 16  ;;  %v1327_v20 = vshrl.u32 %v1323_v49, 16  ;;  %v1306_v27 = vsel %vm1304_vm11, %v2171_v12, 2102212464 }
 0x1b7   : > { %v1348_v3 = vshll.u32 %v1345_v44, 16  ;;  %v1350_v6 = vshll.u32 %v1346_v51, 16  ;;  %v1349_v25 = vshrl.u32 %v1345_v44, 16  ;;  %v1329_v29 = vshrl.u32 %v1324_v50, 16 }
 0x1b8   : > { %vm1330_vm13 = vc.u32 %v1322_v48, %v1326_v0  ;;  %v1332_v5 = vadd.s32 %v1326_v0, %v1322_v48  ;;  %v1307_v52 = vsel %vm1303_vm10, %v2169_v11, %v1306_v27  ;;  %v1351_v37 = vshrl.u32 %v1346_v51, 16 }
 0x1b9   : > { %vm1352_vm14 = vc.u32 %v1344_v43, %v1348_v3  ;;  %v1331_v18 = vsel %vm1330_vm13, 1, %v1921_v16  ;;  %v1308_v39 = vsel %vm1302_vm12, %v1305_v32, %v1307_v52  ;;  %vm933_vm2 = vcmp.gt.s32.totalorder %v932_v31, 0 }
 0x1ba   : > { %v1333_v21 = vadd.s32 %v1331_v18, %v1325_v62  ;;  %vm1334_vm15 = vc.u32 %v1332_v5, %v1328_v1  ;;  %v1362_v11 = vmul.u32 %v2188_v22, %v1308_v39  ;;  %v922_v22 = vand.u32 2147483647, %v2176_v17 }
 0x1bb   : > { %v1335_v24 = vsel %vm1334_vm15, 1, %v1921_v16  ;;  %vm1271_vm15 = vcmp.lt.s32.totalorder %v2141_v36, 0 }
 0x1bc   : > { %v929_v5 = vand.u32 8388607, %v922_v22 }
 0x229   : > { %v750_v30 = vpop.f32.mrf.mxu1 }
 0x22a   : > { %v751_v34 = vadd.f32 %v1837_v19, %v750_v30  ;;  %v1337_v30 = vadd.s32 %v1335_v24, %v1333_v21 }
 0x22c   : > { %v2211_v41 = vadd.f32 %v751_v34, %v2110_v60  ;;  %v1246_v34 = vand.u32 65535, %v2138_v28  ;;  %v1338_v35 = vadd.s32 %v1337_v30, %v1327_v20  ;;  %v934_v28 = vsel %vm933_vm2, %v932_v31, 0 }
 0x22d   : > { %v850_v45 = vpop.f32.mrf.mxu3  ;;  %v936_v50 = vand.u32 31, %v934_v28  ;;  %v2251_v0 = vshrl.u32 %v934_v28, 5 }
 0x22e   : > { %v851_v58 = vadd.f32 %v1837_v19, %v850_v45  ;;  %v754_v59 = vsel %vm666_vm0, %v2211_v41, 0.0  ;;  %v1353_v19 = vsel %vm1352_vm14, 1, %v1921_v16  ;;  %v2240_v40 = vadd.s32 %v1338_v35, %v1329_v29 }
 0x22f   : > { %755 = vadd.xlane.f32.xlu1 %v754_v59  ;;  %v1355_v26 = vadd.s32 %v1353_v19, %v1347_v4  ;;  %v1247_v7 = vcvt.s32.f32 %v1246_v34  ;;  %v948_v1 = vshll.u32 %v1915_v57, %v936_v50  ;;  %v945_v19 = vshll.u32 %v1918_v2, %v936_v50 }
 0x230   : > { %v2216_v60 = vadd.f32 %v851_v58, %v2105_v55  ;;  %v1354_v55 = vadd.s32 %v1348_v3, %v1344_v43  ;;  %v2245_v58 = vsub.s32 32, %v936_v50  ;;  %v951_v24 = vshll.u32 %v1919_v8, %v936_v50 }
 0x231   : > { %v1248_v48 = vmul.f32 1.5258789e-05, %v1247_v7  ;;  %vm954_vm4 = vcmp.lt.s32.totalorder %v2251_v0, 1  ;;  %vm956_vm5 = vcmp.lt.s32.totalorder %v2251_v0, 3  ;;  %vm955_vm6 = vcmp.lt.s32.totalorder %v2251_v0, 2 }
 0x232   : > { %v854_v10 = vsel %vm666_vm0, %v2216_v60, 0.0  ;;  %vm1356_vm1 = vc.u32 %v1354_v55, %v1350_v6  ;;  %v2236_v12 = vadd.s32 %v1354_v55, %v1350_v6  ;;  %v949_v3 = vshrl.u32 %v1919_v8, %v2245_v58 }
 0x233   : > { %855 = vadd.xlane.f32.xlu2 %v854_v10  ;;  %v1357_v33 = vsel %vm1356_vm1, 1, %v1921_v16  ;;  %v1252_v54 = vsub.f32 1.0, %v1248_v48  ;;  %v939_v6 = vshll.u32 %v1916_v61, %v936_v50  ;;  %v940_v9 = vshrl.u32 %v1917_v63, %v2245_v58 }
 0x234   : > { %v1359_v38 = vadd.s32 %v1357_v33, %v1355_v26  ;;  %vm1364_vm3 = vc.u32 %v2240_v40, %v2236_v12  ;;  %v942_v10 = vshll.u32 %v1917_v63, %v936_v50  ;;  %v943_v18 = vshrl.u32 %v1918_v2, %v2245_v58 }
 0x235   : > { %1844 = vlog2.f32 %v1252_v54  ;;  %v946_v20 = vshrl.u32 %v1915_v57, %v2245_v58  ;;  %v950_v21 = vor.u32 %v949_v3, %v948_v1  ;;  %v930_v55 = vor.u32 8388608, %v929_v5 }
 0x236   : > { %v1360_v43 = vadd.s32 %v1359_v38, %v1349_v25  ;;  %v2269_v23 = vor.u32 %v940_v9, %v939_v6  ;;  %v952_v25 = vshrl.u32 %v1920_v14, %v2245_v58  ;;  %v2274_v26 = vor.u32 %v943_v18, %v942_v10 }
 0x237   : > { %v2276_v63 = vor.u32 %v946_v20, %v945_v19  ;;  %vm957_vm7 = vcmp.lt.s32.totalorder %v2251_v0, 4  ;;  %v2282_v57 = vshll.u32 %v930_v55, 8  ;;  %vm2343_vm1 = vcmp.le.f32.partialorder %v1269_v56, 0.7853982 }
 0x238   : > { %v1361_v44 = vadd.s32 %v1360_v43, %v1351_v37  ;;  %v953_v27 = vor.u32 %v952_v25, %v951_v24  ;;  %v962_v8 = vsel %vm954_vm4, %v2269_v23, %v2274_v26  ;;  %v963_v14 = vsel %vm957_vm7, %v950_v21, 920167782 }
 0x239   : > { %v966_v29 = vsel %vm954_vm4, %v2274_v26, %v2276_v63  ;;  %v964_v30 = vsel %vm956_vm5, %v2276_v63, %v963_v14  ;;  %v971_v32 = vand.u32 65535, %v2282_v57  ;;  %v972_v37 = vshrl.u32 %v2282_v57, 16 }
 0x23a   : > { %v1365_v45 = vadd.s32 1, %v1361_v44  ;;  %v967_v31 = vsel %vm957_vm7, %v953_v27, 1326507024  ;;  %v965_v52 = vsel %vm955_vm6, %v962_v8, %v964_v30  ;;  %v1363_v30 = vadd.s32 %v2236_v12, %v2240_v40 }
 0x23b   : > { %v1845_v2 = vpop.eup %1844  ;;  %v968_v33 = vsel %vm956_vm5, %v950_v21, %v967_v31  ;;  %v995_v38 = vand.u32 65535, %v965_v52  ;;  %v996_v39 = vshrl.u32 %v965_v52, 16  ;;  %v938_v31 = vshrl.u32 %v1916_v61, %v2245_v58 }
 0x23c   : > { %v1366_v49 = vsel %vm1364_vm3, %v1365_v45, %v1361_v44  ;;  %v969_v35 = vsel %vm955_vm6, %v966_v29, %v968_v33  ;;  %v1254_v43 = vmul.f32 0.6931472, %v1845_v2 }
 0x23d   : > { %v1367_v51 = vadd.s32 %v1366_v49, %v1362_v11  ;;  %v973_v7 = vand.u32 65535, %v969_v35  ;;  %v974_v44 = vshrl.u32 %v969_v35, 16  ;;  %v997_v28 = vmul.u32 %v995_v38, %v971_v32 }
 0x23e   : > { %v998_v45 = vmul.u32 %v996_v39, %v971_v32  ;;  %v999_v48 = vmul.u32 %v995_v38, %v972_v37  ;;  %v1000_v54 = vmul.u32 %v996_v39, %v972_v37  ;;  %v2310_v10 = vmul.f32 -2.0, %v1254_v43 }
 0x23f   : > { %v1368_v53 = vadd.s32 536870912, %v1367_v51  ;;  %v975_v50 = vmul.u32 %v973_v7, %v971_v32  ;;  %v978_v5 = vmul.u32 %v974_v44, %v972_v37 }
 0x240   : > { %v1003_v1 = vshll.u32 %v999_v48, 16  ;;  %v1002_v55 = vshrl.u32 %v998_v45, 16  ;;  %v1004_v14 = vshrl.u32 %v999_v48, 16  ;;  %1846 = vrsqrt.f32 %v2310_v10 }
 0x241   : > { %v2247_v59 = vshrl.u32 %v1368_v53, 30  ;;  %v977_v53 = vmul.u32 %v973_v7, %v972_v37  ;;  %v958_v37 = vsel %vm954_vm4, %v938_v31, %v2269_v23  ;;  %vm1263_vm4 = vcmp.eq.f32.partialorder %v2310_v10, inf }
 0x243   : > { %v1370_v62 = vshll.u32 %v2247_v59, 30  ;;  %v981_v9 = vshll.u32 %v977_v53, 16 }
 0x245   : > { %v2256_v4 = vsub.s32 %v1367_v51, %v1370_v62  ;;  %v976_v51 = vmul.u32 %v974_v44, %v971_v32  ;;  %v1001_v62 = vshll.u32 %v998_v45, 16  ;;  %v982_v32 = vshrl.u32 %v977_v53, 16 }
 0x246   : > { %v1847_v45 = vpop.eup %1846 }
 0x247   : > { %vm1372_vm8 = vcmp.lt.s32.totalorder %v2256_v4, 0  ;;  %v1373_v34 = vsub.s32 0, %v2256_v4  ;;  %v979_v6 = vshll.u32 %v976_v51, 16  ;;  %vm1005_vm9 = vc.u32 %v997_v28, %v1001_v62 }
 0x248   : > { %v1007_v18 = vadd.s32 %v1001_v62, %v997_v28  ;;  %v1006_v20 = vsel %vm1005_vm9, 1, %v1921_v16  ;;  %v980_v25 = vshrl.u32 %v976_v51, 16  ;;  %vm1412_vm9 = vweird.f32 %v2141_v36 }
 0x249   : > { %v1374_v11 = vsel %vm1372_vm8, %v1373_v34, %v2256_v4  ;;  %vm983_vm10 = vc.u32 %v975_v50, %v979_v6  ;;  %v985_v19 = vadd.s32 %v979_v6, %v975_v50  ;;  %v1008_v24 = vadd.s32 %v1006_v20, %v1000_v54 }
 0x24a   : > { %v1375_v49 = vclz %v1374_v11  ;;  %v984_v21 = vsel %vm983_vm10, 1, %v1921_v16  ;;  %vm1009_vm12 = vc.u32 %v1007_v18, %v1003_v1  ;;  %v959_v34 = vsel %vm957_vm7, %v2276_v63, 2102212464 }
 0x24b   : > { %v986_v2 = vadd.s32 %v984_v21, %v978_v5  ;;  %vm987_vm13 = vc.u32 %v985_v19, %v981_v9  ;;  %v1010_v27 = vsel %vm1009_vm12, 1, %v1921_v16  ;;  %v960_v61 = vsel %vm956_vm5, %v2274_v26, %v959_v34 }
 0x24c   : > { %v1760_v3 = vadd.s32 4294967294, %v1375_v49  ;;  %v988_v8 = vsel %vm987_vm13, 1, %v1921_v16  ;;  %v1012_v29 = vadd.s32 %v1010_v27, %v1008_v24  ;;  %v1011_v40 = vadd.s32 %v1007_v18, %v1003_v1 }
 0x24d   : > { %v990_v52 = vadd.s32 %v988_v8, %v986_v2  ;;  %v961_v58 = vsel %vm955_vm6, %v958_v37, %v960_v61  ;;  %v899_v26 = vand.u32 65535, %v2144_v47  ;;  %vm1265_vm6 = vcmp.eq.f32.partialorder %v2310_v10, 0.0 }
 0x24e   : > { %vm1761_vm11 = vcmp.lt.s32.totalorder %v1760_v3, 0  ;;  %v1013_v35 = vadd.s32 %v1012_v29, %v1002_v55  ;;  %v1015_v7 = vmul.u32 %v2282_v57, %v961_v58  ;;  %v1393_v55 = vsub.s32 4, %v2247_v59 }
 0x24f   : > { %v1378_v33 = vsel %vm1761_vm11, 0, %v1760_v3  ;;  %v991_v12 = vadd.s32 %v990_v52, %v980_v25  ;;  %v900_v54 = vcvt.s32.f32 %v899_v26  ;;  %v1430_v47 = vstv %s2131_s28 }
 0x250   : > { %v1379_v16 = vsub.s32 32, %v1378_v33  ;;  %v1014_v38 = vadd.s32 %v1013_v35, %v1004_v14  ;;  %v1380_v63 = vshll.u32 %v2256_v4, %v1378_v33  ;;  %v1383_v44 = vsub.s32 4294967266, %v1378_v33 }
 0x251   : > { %v992_v43 = vadd.s32 %v991_v12, %v982_v32  ;;  %v1257_v4 = vmul.f32 %v1847_v45, %v2310_v10  ;;  %v901_v6 = vmul.f32 1.5258789e-05, %v900_v54  ;;  %v1394_v31 = vsel %vm1271_vm15, %v1393_v55, %v2247_v59 }
 0x252   : > { %v1381_v39 = vshrl.u32 %v1363_v30, %v1379_v16  ;;  %v1018_v11 = vadd.s32 1, %v1014_v38  ;;  %v1384_v28 = vadd.s32 127, %v1383_v44  ;;  %v1396_v34 = vsel %vm2343_vm1, 0, %v1394_v31 }
 0x253   : > { %vm1017_vm14 = vc.u32 %v992_v43, %v1011_v40  ;;  %v1258_v5 = vmul.f32 %v1847_v45, %v1257_v4  ;;  %v905_v25 = vsub.f32 1.0, %v901_v6  ;;  %v1016_v37 = vadd.s32 %v1011_v40, %v992_v43 }
 0x254   : > { %v1382_v23 = vor.u32 %v1381_v39, %v1380_v63  ;;  %v1019_v48 = vsel %vm1017_vm14, %v1018_v11, %v1014_v38  ;;  %v1385_v50 = vshll.u32 %v1384_v28, 23  ;;  %v1413_v59 = vand.u32 3, %v1396_v34 }
 0x255   : > { %v1020_v49 = vadd.s32 %v1019_v48, %v1015_v7  ;;  %v1259_v21 = vmul.f32 0.5, %v1258_v5  ;;  %1848 = vlog2.f32 %v905_v25  ;;  %vm924_vm10 = vcmp.lt.s32.totalorder %v2176_v17, 0 }
 0x256   : > { %v1386_v51 = vor.u32 4788187, %v1385_v50  ;;  %v1389_v53 = vcvt.s32.f32 %v1382_v23  ;;  %vm1418_vm5 = vcmp.eq.s32.totalorder %v1413_v59, 2  ;;  %vm1415_vm7 = vcmp.eq.s32.totalorder %v1413_v59, 0 }
 0x257   : > { %v1021_v0 = vadd.s32 536870912, %v1020_v49  ;;  %v1260_v30 = vsub.f32 1.5, %v1259_v21  ;;  %vm1414_vm8 = vcmp.lt.s32.totalorder %v1413_v59, 2  ;;  %vm2372_vm11 = vcmp.le.f32.partialorder %v922_v22, 0.7853982 }
 0x258   : > { %v1387_v57 = vand.u32 2147483647, %v1386_v51  ;;  %v1266_v51 = vand.u32 2147483648, %v2310_v10  ;;  %v1432_v55 = vstv %s2133_s30  ;;  %s621_s30 = scalar_lea.vmem %s2456_s6, %s2046_s29 }
 0x259   : > { %v2337_v62 = vshrl.u32 %v1021_v0, 30  ;;  %v1261_v58 = vmul.f32 %v1847_v45, %v1260_v30 }
 0x25a   : > { %v1390_v3 = vmul.f32 %v1389_v53, %v1387_v57 }
 0x25b   : > { %v1023_v1 = vshll.u32 %v2337_v62, 30  ;;  %v1849_v11 = vpop.eup %1848 }
 0x25c   : > { %v1391_v18 = vxor.u32 2147483648, %v1390_v3  ;;  %v907_v50 = vmul.f32 0.6931472, %v1849_v11 }
 0x25d   : > { %v1024_v9 = vsub.s32 %v1020_v49, %v1023_v1  ;;  %v1262_v49 = vmul.f32 %v1261_v58, %v2310_v10 }
 0x25e   : > { %v1392_v20 = vsel %vm1271_vm15, %v1391_v18, %v1390_v3  ;;  %v908_v5 = vmul.f32 -2.0, %v907_v50 }
 0x25f   : > { %vm1025_vm2 = vcmp.lt.s32.totalorder %v1024_v9, 0  ;;  %v1026_v19 = vsub.s32 0, %v1024_v9  ;;  %v1395_v24 = vsel %vm2343_vm1, %v2141_v36, %v1392_v20  ;;  %v1264_v57 = vsel %vm1263_vm4, %v2310_v10, %v1262_v49 }
 0x260   : > { %v1397_v27 = vmul.f32 %v1395_v24, %v1395_v24  ;;  %v1267_v18 = vsel %vm1265_vm6, %v1266_v51, %v1264_v57  ;;  %1850 = vrsqrt.f32 %v908_v5  ;;  %vm916_vm15 = vcmp.eq.f32.partialorder %v908_v5, inf }
 0x261   : > { %v1027_v2 = vsel %vm1025_vm2, %v1026_v19, %v1024_v9  ;;  %vm918_vm2 = vcmp.eq.f32.partialorder %v908_v5, 0.0 }
 0x262   : > { %v1028_v56 = vclz %v1027_v2  ;;  %v1398_v8 = vmul.f32 -0.001358992, %v1397_v27  ;;  %v1405_v14 = vmul.f32 -0.00019511016, %v1397_v27 }
 0x264   : > { %v1754_v29 = vadd.s32 4294967294, %v1028_v56  ;;  %v1399_v32 = vadd.f32 0.041655596, %v1398_v8  ;;  %v1406_v52 = vadd.f32 0.008332121, %v1405_v14 }
 0x266   : > { %vm1755_vm3 = vcmp.lt.s32.totalorder %v1754_v29, 0  ;;  %v1400_v35 = vmul.f32 %v1399_v32, %v1397_v27  ;;  %v1407_v16 = vmul.f32 %v1406_v52, %v1397_v27  ;;  %v1851_v30 = vpop.eup %1850 }
 0x267   : > { %v1031_v33 = vsel %vm1755_vm3, 0, %v1754_v29  ;;  %v910_v52 = vmul.f32 %v1851_v30, %v908_v5  ;;  %vm1065_vm3 = vweird.f32 %v2176_v17 }
 0x268   : > { %v1032_v61 = vsub.s32 32, %v1031_v33  ;;  %v1036_v12 = vsub.s32 4294967266, %v1031_v33  ;;  %v1401_v38 = vadd.f32 -0.4999988, %v1400_v35  ;;  %v1408_v63 = vadd.f32 -0.16666654, %v1407_v16 }
 0x269   : > { %v1033_v39 = vshll.u32 %v1024_v9, %v1031_v33  ;;  %v1429_v9 = vld [vmem:[%s617_s26] sm:$0xff]  ;;  %v911_v35 = vmul.f32 %v1851_v30, %v910_v52  ;;  %v1046_v16 = vsub.s32 4, %v2337_v62 }
 0x26a   : > { %v1034_v7 = vshrl.u32 %v1016_v37, %v1032_v61  ;;  %v1037_v44 = vadd.s32 127, %v1036_v12  ;;  %v1402_v23 = vmul.f32 %v1401_v38, %v1397_v27  ;;  %v1409_v28 = vmul.f32 %v1408_v63, %v1397_v27 }
 0x26b   : > { %v1431_v25 = vmul.f32 %v1430_v47, %v1429_v9  ;;  %v912_v12 = vmul.f32 0.5, %v911_v35  ;;  %v1047_v58 = vsel %vm924_vm10, %v1046_v16, %v2337_v62  ;;  %v919_v62 = vand.u32 2147483648, %v908_v5 }
 0x26c   : > { %v1035_v48 = vor.u32 %v1034_v7, %v1033_v39  ;;  %v1038_v26 = vshll.u32 %v1037_v44, 23  ;;  %v1403_v40 = vadd.f32 1.0, %v1402_v23  ;;  %v1410_v43 = vadd.f32 1.0, %v1409_v28 }
 0x26d   : > { %v1049_v38 = vsel %vm2372_vm11, 0, %v1047_v58  ;;  %v913_v7 = vsub.f32 1.5, %v912_v12  ;;  %v776_v16 = vperm.slane %v2096_v42, 1 }
 0x26e   : > { %v1039_v45 = vor.u32 4788187, %v1038_v26  ;;  %v1042_v0 = vcvt.s32.f32 %v1035_v48  ;;  %v1411_v53 = vmul.f32 %v1410_v43, %v1395_v24  ;;  %v1419_v4 = vxor.u32 2147483648, %v1403_v40 }
 0x26f   : > { %v1221_v44 = vadd.s32 3, %v1049_v38  ;;  %v914_v23 = vmul.f32 %v1851_v30, %v913_v7  ;;  %v1066_v28 = vand.u32 3, %v1049_v38 }
 0x270   : > { %v1040_v54 = vand.u32 2147483647, %v1039_v45  ;;  %v1416_v1 = vxor.u32 2147483648, %v1411_v53  ;;  %v1420_v3 = vsel %vm1418_vm5, %v1419_v4, %v1411_v53 }
 0x271   : > { %v1222_v48 = vand.u32 3, %v1221_v44  ;;  %vm1068_vm12 = vcmp.eq.s32.totalorder %v1066_v28, 0  ;;  %vm1071_vm13 = vcmp.eq.s32.totalorder %v1066_v28, 2  ;;  %vm1067_vm1 = vcmp.lt.s32.totalorder %v1066_v28, 2  ;;  %v1435_v44 = vld [vmem:[%s621_s30] sm:$0xff]  ;;  %s1747_s30 = sshll.u32 %s2039_s25, 2 }
 0x272   : > { %v1043_v6 = vmul.f32 %v1042_v0, %v1040_v54  ;;  %v1417_v19 = vsel %vm1415_vm7, %v1403_v40, %v1416_v1  ;;  %v915_v40 = vmul.f32 %v914_v23, %v908_v5  ;;  %v1424_v54 = vstv %s2129_s27  ;;  %s635_s16 = sadd.s32 %s1747_s30, %s2486_s18 }
 0x273   : > { %v1421_v21 = vsel %vm1414_vm8, %v1417_v19, %v1420_v3  ;;  %vm1224_vm14 = vcmp.eq.s32.totalorder %v1222_v48, 0  ;;  %vm1223_vm4 = vcmp.lt.s32.totalorder %v1222_v48, 2  ;;  %vm1227_vm5 = vcmp.eq.s32.totalorder %v1222_v48, 2  ;;  %s636_s23 = scalar_lea.vmem %s2465_s15, %s635_s16 }
 0x274   : > { %v1044_v10 = vxor.u32 2147483648, %v1043_v6  ;;  %v1422_v24 = vsel %vm1412_vm9, nan, %v1421_v21  ;;  %v917_v50 = vsel %vm916_vm15, %v908_v5, %v915_v40  ;;  %vm1558_vm15 = vcmp.eq.s32.totalorder %v2135_v15, 1 }
 0x275   : > { %v1423_v2 = vmul.f32 %v1422_v24, %v1267_v18  ;;  %v920_v0 = vsel %vm918_vm2, %v919_v62, %v917_v50  ;;  %vm1566_vm2 = vcmp.eq.s32.totalorder %v2135_v15, 3 }
 0x276   : > { %v1045_v36 = vsel %vm924_vm10, %v1044_v10, %v1043_v6 }
 0x277   : > { %v1048_v27 = vsel %vm2372_vm11, %v2176_v17, %v1045_v36  ;;  %v1433_v8 = vmul.f32 %v1432_v55, %v1423_v2 }
 0x278   : > { %v1050_v56 = vmul.f32 %v1048_v27, %v1048_v27 }
 0x279   : > { %v2382_v29 = vadd.f32 %v1433_v8, %v1431_v25 }
 0x27a   : > { %v1051_v22 = vmul.f32 -0.001358992, %v1050_v56  ;;  %v1058_v14 = vmul.f32 -0.00019511016, %v1050_v56 }
 0x27c   : > { %v1052_v31 = vadd.f32 0.041655596, %v1051_v22  ;;  %v1059_v32 = vadd.f32 0.008332121, %v1058_v14 }
 0x27e   : > { %v1053_v33 = vmul.f32 %v1052_v31, %v1050_v56  ;;  %v1060_v34 = vmul.f32 %v1059_v32, %v1050_v56 }
 0x280   : > { %v1054_v37 = vadd.f32 -0.4999988, %v1053_v33  ;;  %v1061_v61 = vadd.f32 -0.16666654, %v1060_v34 }
 0x282   : > { %v1055_v63 = vmul.f32 %v1054_v37, %v1050_v56  ;;  %v1062_v39 = vmul.f32 %v1061_v61, %v1050_v56 }
 0x284   : > { %v1056_v59 = vadd.f32 1.0, %v1055_v63  ;;  %v1063_v11 = vadd.f32 1.0, %v1062_v39 }
 0x286   : > { %v1064_v26 = vmul.f32 %v1063_v11, %v1048_v27  ;;  %v1072_v49 = vxor.u32 2147483648, %v1056_v59 }
 0x288   : > { %v1069_v43 = vxor.u32 2147483648, %v1064_v26  ;;  %v1073_v45 = vsel %vm1071_vm13, %v1072_v49, %v1064_v26  ;;  %v1229_v1 = vsel %vm1227_vm5, %v1072_v49, %v1064_v26 }
 0x28a   : > { %v1070_v51 = vsel %vm1068_vm12, %v1056_v59, %v1069_v43  ;;  %v1226_v53 = vsel %vm1224_vm14, %v1056_v59, %v1069_v43  ;;  %vm1555_vm14 = vcmp.eq.s32.totalorder %v2135_v15, 0 }
 0x28b   : > { %v1074_v4 = vsel %vm1067_vm1, %v1070_v51, %v1073_v45  ;;  %v1230_v6 = vsel %vm1223_vm4, %v1226_v53, %v1229_v1  ;;  %vm1562_vm1 = vcmp.eq.s32.totalorder %v2135_v15, 2 }
 0x28c   : > { %v1075_v57 = vsel %vm1065_vm3, nan, %v1074_v4  ;;  %v1231_v9 = vsel %vm1065_vm3, nan, %v1230_v6  ;;  %vm1570_vm3 = vcmp.eq.s32.totalorder %v2135_v15, 4 }
 0x28d   : > { %v1076_v3 = vmul.f32 %v1075_v57, %v920_v0  ;;  %v1232_v18 = vmul.f32 %v1231_v9, %v920_v0 }
 0x28f   : > { %v1425_v47 = vmul.f32 %v1424_v54, %v1076_v3  ;;  %v1427_v19 = vmul.f32 %v1424_v54, %v1232_v18 }
 0x2a2   : > { %v756_v20 = vpop.xlane.xlu1 %755 }
 0x2a3   : > { %v757_v5 = vmul.f32 %v756_v20, %v2058_v13 }
 0x2a5   : > { %v758_v17 = vsub.f32 %v2211_v41, %v757_v5  ;;  %v1436_v5 = vld [vmem:[%s625_s19] sm:$0xff] }
 0x2a6   : > { %v856_v10 = vpop.xlane.xlu2 %855 }
 0x2a7   : > { %v857_v21 = vmul.f32 %v856_v10, %v2058_v13  ;;  %v759_v55 = vmul.f32 %v758_v17, %v758_v17 }
 0x2a9   : > { %v858_v24 = vsub.f32 %v2216_v60, %v857_v21  ;;  %v760_v25 = vsel %vm666_vm0, %v759_v55, 0.0 }
 0x2aa   : > { %761 = vadd.xlane.f32.xlu1 %v760_v25 }
 0x2ab   : > { %v859_v36 = vmul.f32 %v858_v24, %v858_v24 }
 0x2ad   : > { %v860_v2 = vsel %vm666_vm0, %v859_v36, 0.0 }
 0x2b2   : > { %861 = vadd.xlane.f32.xlu1 %v860_v2 }
 0x31d   : > { %v762_v27 = vpop.xlane.xlu1 %761 }
 0x31e   : > { %v763_v56 = vmul.f32 %v762_v27, %v2058_v13 }
 0x320   : > { %v764_v8 = vadd.f32 1e-05, %v763_v56 }
 0x322   : > { %1852 = vrsqrt.f32 %v764_v8  ;;  %vm771_vm7 = vweird.f32 %v764_v8 }
 0x325   : > { %v862_v22 = vpop.xlane.xlu1 %861 }
 0x326   : > { %v863_v41 = vmul.f32 %v862_v22, %v2058_v13  ;;  %v778_v13 = vperm.slane %v2101_v46, 1 }
 0x328   : > { %v1853_v14 = vpop.eup %1852  ;;  %v864_v30 = vadd.f32 1e-05, %v863_v41 }
 0x329   : > { %v766_v31 = vmul.f32 %v1853_v14, %v764_v8  ;;  %vm772_vm6 = vweird.f32 %v1853_v14 }
 0x32a   : > { %1854 = vrsqrt.f32 %v864_v30  ;;  %vm773_vm8 = vmor %vm771_vm7, %vm772_vm6  ;;  %vm871_vm10 = vweird.f32 %v864_v30 }
 0x32b   : > { %v767_v60 = vmul.f32 %v1853_v14, %v766_v31 }
 0x32d   : > { %v768_v32 = vmul.f32 0.5, %v767_v60 }
 0x32f   : > { %v769_v52 = vsub.f32 1.5, %v768_v32 }
 0x330   : > { %v1855_v33 = vpop.eup %1854 }
 0x331   : > { %v770_v34 = vmul.f32 %v1853_v14, %v769_v52  ;;  %v866_v35 = vmul.f32 %v1855_v33, %v864_v30  ;;  %vm872_vm9 = vweird.f32 %v1855_v33 }
 0x332   : > { %vm873_vm11 = vmor %vm871_vm10, %vm872_vm9 }
 0x333   : > { %v774_v37 = vsel %vm773_vm8, %v1853_v14, %v770_v34  ;;  %v867_v61 = vmul.f32 %v1855_v33, %v866_v35 }
 0x334   : > { %v775_v12 = vmul.f32 %v774_v37, %v758_v17 }
 0x335   : > { %v868_v58 = vmul.f32 0.5, %v867_v61 }
 0x336   : > { %v777_v38 = vmul.f32 %v776_v16, %v775_v12 }
 0x337   : > { %v869_v63 = vsub.f32 1.5, %v868_v58 }
 0x338   : > { %v779_v39 = vadd.f32 %v778_v13, %v777_v38 }
 0x339   : > { %v870_v7 = vmul.f32 %v1855_v33, %v869_v63 }
 0x33a   : > { %v1426_v42 = vadd.f32 %v1425_v47, %v779_v39 }
 0x33b   : > { %v874_v59 = vsel %vm873_vm11, %v1855_v33, %v870_v7 }
 0x33c   : > { %v875_v11 = vmul.f32 %v874_v59, %v858_v24  ;;  %v1442_v23 = vmul.f32 %v1435_v44, %v1426_v42  ;;  %v1438_v46 = vmul.f32 %v2382_v29, %v1426_v42 }
 0x33e   : > { %v1443_v28 = vsel %vm666_vm0, %v1442_v23, 0.0  ;;  %v1439_v48 = vsel %vm666_vm0, %v1438_v46, 0.0  ;;  %v876_v26 = vmul.f32 %v875_v11, %v776_v16 }
 0x33f   : > { %1444 = vadd.xlane.f32.xlu1 %v1443_v28  ;;  %1440 = vadd.xlane.f32.xlu0 %v1439_v48  ;;  %v1437_v48 = vld [vmem:[%s629_s24] sm:$0xff] }
 0x340   : > { %v877_v49 = vadd.f32 %v876_v26, %v778_v13 }
 0x342   : > { %v1428_v40 = vadd.f32 %v1427_v19, %v877_v49 }
 0x344   : > { %v1496_v62 = vmul.f32 %v2382_v29, %v1428_v40  ;;  %v1500_v50 = vmul.f32 %v1435_v44, %v1428_v40  ;;  %v1922_v29 = vmov 0.0  }
 0x346   : > { %v1497_v43 = vsel %vm666_vm0, %v1496_v62, 0.0  ;;  %v1501_v45 = vsel %vm666_vm0, %v1500_v50, 0.0  ;;  %vm1472_vm0 = vcmask 7168  }
 0x347   : > { %1498 = vadd.xlane.f32.xlu1 %v1497_v43  ;;  %v1535_v30 = vsel %vm1472_vm0, %v1436_v5, 0.0  ;;  %v1545_v62 = vsel %vm1472_vm0, %v1437_v48, 0.0 }
 0x34f   : > { %1502 = vadd.xlane.f32.xlu1 %v1501_v45 }
 0x3b2   : > { %v1445_v0 = vpop.xlane.xlu1 %1444  ;;  %v1441_v51 = vpop.xlane.xlu0 %1440 }
 0x3b3   : > { %v1457_v53 = vand.u32 2147483647, %v1445_v0  ;;  %v1446_v4 = vsub.f32 0.0, %v1441_v51  ;;  %v1467_v54 = vsub.f32 %v1441_v51, %v1445_v0  ;;  %v1456_v35 = vmax.f32 %v1445_v0, 0.0 }
 0x3b5   : > { %v1458_v57 = vsub.f32 0.0, %v1457_v53  ;;  %v1448_v1 = vand.u32 2147483647, %v1446_v4  ;;  %vm1468_vm12 = vcmp.gt.f32.partialorder %v1467_v54, 0.0  ;;  %vm1469_vm13 = vcmp.lt.f32.partialorder %v1467_v54, 0.0 }
 0x3b6   : > { %v1470_v9 = vsel %vm1469_vm13, -1.0, %v1922_v29  ;;  %v1447_v16 = vmax.f32 %v1446_v4, 0.0 }
 0x3b7   : > { %v1459_v3 = vmul.f32 1.442695, %v1458_v57  ;;  %v1449_v6 = vsub.f32 0.0, %v1448_v1  ;;  %v1471_v47 = vsel %vm1468_vm12, 1.0, %v1470_v9 }
 0x3b8   : > { %v1483_v19 = vadd.f32 1.0, %v1471_v47 }
 0x3b9   : > { %1856 = vpow2.f32 %v1459_v3  ;;  %v1450_v18 = vmul.f32 1.442695, %v1449_v6 }
 0x3ba   : > { %v1499_v20 = vpop.xlane.xlu1 %1498  ;;  %v1484_v17 = vmul.f32 0.5, %v1483_v19 }
 0x3bb   : > { %1858 = vpow2.f32 %v1450_v18  ;;  %v1504_v10 = vsub.f32 0.0, %v1499_v20 }
 0x3bc   : > { %v1485_v55 = vmul.f32 %v1484_v17, %v1436_v5 }
 0x3bd   : > { %v1506_v21 = vand.u32 2147483647, %v1504_v10  ;;  %v1505_v59 = vmax.f32 %v1504_v10, 0.0 }
 0x3be   : > { %v1486_v36 = vsel %vm1472_vm0, %v1485_v55, 0.0 }
 0x3bf   : > { %v1857_v24 = vpop.eup %1856  ;;  %v1507_v25 = vsub.f32 0.0, %v1506_v21  ;;  %1487 = vadd.xlane.f32.xlu1 %v1486_v36 }
 0x3c0   : > { %v1461_v2 = vadd.f32 1.0, %v1857_v24 }
 0x3c1   : > { %v1859_v27 = vpop.eup %1858  ;;  %v1508_v56 = vmul.f32 1.442695, %v1507_v25 }
 0x3c2   : > { %1860 = vlog2.f32 %v1461_v2  ;;  %v1452_v8 = vadd.f32 1.0, %v1859_v27  ;;  %v1503_v22 = vpop.xlane.xlu1 %1502 }
 0x3c3   : > { %1862 = vpow2.f32 %v1508_v56  ;;  %v1515_v41 = vand.u32 2147483647, %v1503_v22  ;;  %v1514_v11 = vmax.f32 %v1503_v22, 0.0 }
 0x3c4   : > { %1864 = vlog2.f32 %v1452_v8 }
 0x3c5   : > { %v1516_v14 = vsub.f32 0.0, %v1515_v41 }
 0x3c7   : > { %v1517_v31 = vmul.f32 1.442695, %v1516_v14  ;;  %1536 = vadd.xlane.f32.xlu1 %v1535_v30 }
 0x3c8   : > { %v1861_v60 = vpop.eup %1860 }
 0x3c9   : > { %v1863_v32 = vpop.eup %1862  ;;  %v1463_v52 = vmul.f32 0.6931472, %v1861_v60  ;;  %1866 = vpow2.f32 %v1517_v31 }
 0x3ca   : > { %v1865_v33 = vpop.eup %1864  ;;  %v1510_v34 = vadd.f32 1.0, %v1863_v32 }
 0x3cb   : > { %v1454_v37 = vmul.f32 0.6931472, %v1865_v33  ;;  %v1464_v61 = vadd.f32 %v1463_v52, %v1456_v35 }
 0x3cc   : > { %1868 = vlog2.f32 %v1510_v34 }
 0x3cd   : > { %v1455_v13 = vadd.f32 %v1454_v37, %v1447_v16 }
 0x3cf   : > { %v1867_v12 = vpop.eup %1866  ;;  %v1465_v58 = vadd.f32 %v1464_v61, %v1455_v13 }
 0x3d0   : > { %v1519_v38 = vadd.f32 1.0, %v1867_v12 }
 0x3d1   : > { %v1466_v63 = vmul.f32 %v1465_v58, %v1436_v5 }
 0x3d2   : > { %1870 = vlog2.f32 %v1519_v38  ;;  %v1869_v7 = vpop.eup %1868 }
 0x3d3   : > { %v1473_v39 = vsel %vm1472_vm0, %v1466_v63, 0.0  ;;  %v1512_v44 = vmul.f32 0.6931472, %v1869_v7 }
 0x3d4   : > { %1474 = vadd.xlane.f32.xlu2 %v1473_v39 }
 0x3d5   : > { %v1513_v46 = vadd.f32 %v1512_v44, %v1505_v59 }
 0x3d8   : > { %v1871_v42 = vpop.eup %1870 }
 0x3d9   : > { %v1521_v23 = vmul.f32 0.6931472, %v1871_v42 }
 0x3db   : > { %v1522_v28 = vadd.f32 %v1521_v23, %v1514_v11 }
 0x3dd   : > { %v1523_v26 = vadd.f32 %v1522_v28, %v1513_v46 }
 0x3df   : > { %v1524_v49 = vmul.f32 %v1523_v26, %v1437_v48 }
 0x3e1   : > { %v1525_v40 = vsel %vm1472_vm0, %v1524_v49, 0.0 }
 0x3e2   : > { %1526 = vadd.xlane.f32.xlu2 %v1525_v40 }
 0x3ea   : > { %1546 = vadd.xlane.f32.xlu2 %v1545_v62 }
 0x432   : > { %v1488_v43 = vpop.xlane.xlu1 %1487 }
 0x433   : > { %v1489_v50 = vrot.slane %v1488_v43, 4 }
 0x435   : > { %v1490_v45 = vadd.f32 %v1489_v50, %v1488_v43 }
 0x437   : > { %v1491_v0 = vrot.slane %v1490_v45, 2 }
 0x439   : > { %v1492_v57 = vadd.f32 %v1491_v0, %v1490_v45 }
 0x43a   : > { %v1537_v54 = vpop.xlane.xlu1 %1536 }
 0x43b   : > { %v1538_v3 = vrot.slane %v1537_v54, 4  ;;  %v1493_v29 = vrot.slane %v1492_v57, 1 }
 0x43d   : > { %v1539_v47 = vadd.f32 %v1538_v3, %v1537_v54  ;;  %v1494_v19 = vadd.f32 %v1493_v29, %v1492_v57 }
 0x43f   : > { %v1540_v20 = vrot.slane %v1539_v47, 2 }
 0x441   : > { %v1541_v21 = vadd.f32 %v1540_v20, %v1539_v47 }
 0x443   : > { %v1542_v36 = vrot.slane %v1541_v21, 1 }
 0x445   : > { %v1543_v22 = vadd.f32 %v1542_v36, %v1541_v21 }
 0x447   : > { %v1475_v51 = vpop.xlane.xlu2 %1474 }
 0x448   : > { %v1476_v53 = vrot.slane %v1475_v51, 4 }
 0x44a   : > { %v1477_v4 = vadd.f32 %v1476_v53, %v1475_v51 }
 0x44c   : > { %v1478_v1 = vrot.slane %v1477_v4, 2 }
 0x44e   : > { %v1479_v6 = vadd.f32 %v1478_v1, %v1477_v4 }
 0x450   : > { %v1480_v9 = vrot.slane %v1479_v6, 1 }
 0x452   : > { %v1481_v18 = vadd.f32 %v1480_v9, %v1479_v6 }
 0x454   : > { %1774 = vpush %v1481_v18 }
 0x455   : > { %1776 = vpush %v1494_v19  ;;  %v1527_v5 = vpop.xlane.xlu2 %1526 }
 0x456   : > { %v1528_v17 = vrot.slane %v1527_v5, 4 }
 0x458   : > { %v1529_v10 = vadd.f32 %v1528_v17, %v1527_v5 }
 0x45a   : > { %v1530_v55 = vrot.slane %v1529_v10, 2 }
 0x45c   : > { %v1531_v24 = vadd.f32 %v1530_v55, %v1529_v10 }
 0x45d   : > { %v1547_v25 = vpop.xlane.xlu2 %1546 }
 0x45e   : > { %v1548_v2 = vrot.slane %v1547_v25, 4  ;;  %v1532_v27 = vrot.slane %v1531_v24, 1 }
 0x460   : > { %v1549_v56 = vadd.f32 %v1548_v2, %v1547_v25  ;;  %v1533_v8 = vadd.f32 %v1532_v27, %v1531_v24 }
 0x462   : > { %v1550_v41 = vrot.slane %v1549_v56, 2  ;;  %1778 = vpush %v1533_v8 }
 0x463   : > { %1780 = vpush %v1543_v22 }
 0x464   : > { %v1551_v14 = vadd.f32 %v1550_v41, %v1549_v56 }
 0x466   : > { %v1552_v30 = vrot.slane %v1551_v14, 1 }
 0x468   : > { %v1553_v31 = vadd.f32 %v1552_v30, %v1551_v14 }
 0x46a   : > { %1782 = vpush %v1553_v31 }
 0x485   : > { %s1775_s29 = spop %1774 }
 0x486   : > { %s1777_s26 = spop %1776  ;;  %v1556_v60 = vstv %s1775_s29 }
 0x487   : > { %v1563_v32 = vstv %s1777_s26  ;;  %v1557_v33 = vsel %vm1555_vm14, %v1556_v60, 0.0 }
 0x488   : > { %v1564_v16 = vsel %vm1562_vm1, %v1563_v32, 0.0 }
 0x493   : > { %s1779_s27 = spop %1778 }
 0x494   : > { %s1781_s28 = spop %1780  ;;  %v1567_v37 = vstv %s1779_s27 }
 0x495   : > { %v1559_v52 = vstv %s1781_s28  ;;  %v1568_v13 = vsel %vm1566_vm2, %v1567_v37, 0.0 }
 0x496   : > { %v1560_v34 = vsel %vm1558_vm15, %v1559_v52, 0.0 }
 0x497   : > { %v1561_v35 = vadd.f32 %v1560_v34, %v1557_v33 }
 0x499   : > { %v1565_v61 = vadd.f32 %v1564_v16, %v1561_v35 }
 0x49b   : > { %s1783_s17 = spop %1782  ;;  %v1569_v12 = vadd.f32 %v1568_v13, %v1565_v61 }
 0x49c   : > { %v1571_v58 = vstv %s1783_s17 }
 0x49d   : > { %v1572_v38 = vsel %vm1570_vm3, %v1571_v58, 0.0 }
 0x49e   : > { %v1573_v63 = vadd.f32 %v1572_v38, %v1569_v12 }
 0x4a0   : > { %1574 = vst [vmem:[%s636_s23] sm:$0x1] %v1573_v63 }
 0x4a1 PF: > { %s25_s22 = sadd.s32 1, %s1910_s22   ;;  %s2474_s19 = sld [smem:[#allocation2_spill]] }
 0x4a2   : > { %p22_p7 = scmp.ge.s32.totalorder %s25_s22, 10   ;;  %s2475_s25 = sld [smem:[#allocation3_spill]] }
 0x4a3   : > { %s2476_s21 = sld [smem:[#allocation4_spill]]  ;;  %s2477_s18 = smov %s1902_s20 }
 0x4a4   :  { %24 = sbr.rel (!%p22_p7) target bundleno = 3 (0x3), region = 134 }
 0x4a8   : > { %s2478_s20 = smov %s2475_s25 }

// kernel: _forward_impl.8
= control target key start
LH: loop header
LB: loop body
LE: loop exit
PB: predicated region body
PF: predicated region fallthrough
CT: control target
= control target key end

     0   :  { %v1046_v0 = vmov 0   ;;  %v1047_v28 = vmov 683565275   ;;  %v1048_v30 = vmov 2475754826   ;;  %s1054_s23 = smov 16   ;;  %s1465_s1 = inlined_call_operand.vmem [shape: f32[16,1], index: 1, kind: input, shape index: {}]   ;;  %s1466_s2 = inlined_call_operand.vmem [shape: f32[1,32], index: 2, kind: input, shape index: {}]   ;;  %s1467_s3 = inlined_call_operand.vmem [shape: f32[1,32], index: 3, kind: input, shape index: {}]   ;;  %s1468_s0 = inlined_call_operand.vmem [shape: f32[16,32], index: 0, kind: input, shape index: {}]   ;;  %s1469_s4 = inlined_call_operand.vmem [shape: f32[16,32], index: 4, kind: output, shape index: {}]  }
   0x1   :  { %1043 = vset.pattern.permute.xlu0 %v1046_v0  ;;  %v19_v1 = vld [vmem:[%s1465_s1] sm:$0xff]  ;;  %v20_v2 = vld [vmem:[%s1465_s1 + $0x8] sm:$0xff]  ;;  %v1049_v34 = vmov 2131351028   ;;  %v1050_v37 = vmov 2102212464  }
   0x2   :  { %25 = vperm.xlu0 %1043, %v19_v1   ;;  %v1044_v3 = vld [vmem:[%s1466_s2] ss:$0 sm:$0xff]  ;;  %v1051_v40 = vmov 920167782   ;;  %v1052_v43 = vmov 1326507024  }
   0x3   :  { %v1045_v4 = vld [vmem:[%s1467_s3] ss:$0 sm:$0xff]  ;;  %s1053_s3 = smov 112  }
   0xa   :  { %30 = vperm.xlu0 %1043, %v20_v2  }
  0x74   :  { %v26_v5 = vpop.permute.xlu0 %25 }
  0x75   :  { %v36_v6 = vmul.f32 %v1044_v3, %v26_v5 }
  0x77   :  { %v1094_v7 = vadd.f32 %v1045_v4, %v36_v6 }
  0x79   :  { %v49_v8 = vand.u32 2147483647, %v1094_v7  ;;  %v52_v9 = vand.u32 2139095040, %v1094_v7 }
  0x7b   :  { %v53_v10 = vshrl.u32 %v52_v9, 23  ;;  %v56_v11 = vand.u32 8388607, %v49_v8 }
  0x7c   :  { %v31_v12 = vpop.permute.xlu0 %30 }
  0x7d   :  { %v1015_v13 = vadd.s32 4294967169, %v53_v10  ;;  %v57_v14 = vor.u32 8388608, %v56_v11  ;;  %v37_v15 = vmul.f32 %v1044_v3, %v31_v12 }
  0x7f   :  { %v59_v16 = vadd.s32 1, %v1015_v13  ;;  %v1100_v17 = vadd.f32 %v1045_v4, %v37_v15  ;;  %v1102_v18 = vshll.u32 %v57_v14, 8 }
  0x81   :  { %vm60_vm0 = vcmp.gt.s32.totalorder %v59_v16, 0  ;;  %v204_v20 = vand.u32 2147483647, %v1100_v17  ;;  %v207_v21 = vand.u32 2139095040, %v1100_v17  ;;  %v98_v24 = vand.u32 65535, %v1102_v18 }
  0x82   :  { %v61_v19 = vsel %vm60_vm0, %v59_v16, 0  ;;  %v99_v25 = vshrl.u32 %v1102_v18, 16 }
  0x83   :  { %v63_v22 = vand.u32 31, %v61_v19  ;;  %v208_v26 = vshrl.u32 %v207_v21, 23  ;;  %v62_v27 = vshrl.u32 %v61_v19, 5  ;;  %v1112_v32 = vand.u32 8388607, %v204_v20 }
  0x85   :  { %v64_v23 = vsub.s32 32, %v63_v22  ;;  %v66_v29 = vshll.u32 %v1047_v28, %v63_v22  ;;  %v69_v31 = vshll.u32 %v1048_v30, %v63_v22  ;;  %v72_v36 = vshll.u32 %v1049_v34, %v63_v22 }
  0x86   :  { %v75_v39 = vshll.u32 %v1050_v37, %v63_v22  ;;  %v78_v42 = vshll.u32 %v1051_v40, %v63_v22  ;;  %v1018_v48 = vadd.s32 4294967169, %v208_v26  ;;  %vm81_vm1 = vcmp.lt.s32.totalorder %v62_v27, 1 }
  0x87   :  { %v67_v33 = vshrl.u32 %v1048_v30, %v64_v23  ;;  %v70_v35 = vshrl.u32 %v1049_v34, %v64_v23  ;;  %v73_v38 = vshrl.u32 %v1050_v37, %v64_v23  ;;  %v76_v41 = vshrl.u32 %v1051_v40, %v64_v23 }
  0x88   :  { %v79_v44 = vshrl.u32 %v1052_v43, %v64_v23  ;;  %vm84_vm2 = vcmp.lt.s32.totalorder %v62_v27, 4  ;;  %v65_v51 = vshrl.u32 %v1047_v28, %v64_v23  ;;  %vm83_vm3 = vcmp.lt.s32.totalorder %v62_v27, 3 }
  0x89   :  { %v68_v45 = vor.u32 %v67_v33, %v66_v29  ;;  %v71_v46 = vor.u32 %v70_v35, %v69_v31  ;;  %v74_v47 = vor.u32 %v73_v38, %v72_v36  ;;  %v77_v49 = vor.u32 %v76_v41, %v75_v39 }
  0x8a   :  { %v80_v50 = vor.u32 %v79_v44, %v78_v42  ;;  %v214_v57 = vadd.s32 1, %v1018_v48  ;;  %vm82_vm4 = vcmp.lt.s32.totalorder %v62_v27, 2  ;;  %v212_v5 = vor.u32 8388608, %v1112_v32 }
  0x8b   :  { %v86_v52 = vsel %vm84_vm2, %v74_v47, 2102212464  ;;  %v89_v53 = vsel %vm81_vm1, %v68_v45, %v71_v46  ;;  %v93_v54 = vsel %vm81_vm1, %v71_v46, %v74_v47  ;;  %v90_v55 = vsel %vm84_vm2, %v77_v49, 920167782 }
  0x8c   :  { %v94_v56 = vsel %vm84_vm2, %v80_v50, 1326507024  ;;  %v85_v58 = vsel %vm81_vm1, %v65_v51, %v68_v45  ;;  %v91_v59 = vsel %vm83_vm3, %v74_v47, %v90_v55  ;;  %v87_v61 = vsel %vm83_vm3, %v71_v46, %v86_v52 }
  0x8d   :  { %v95_v60 = vsel %vm83_vm3, %v77_v49, %v94_v56  ;;  %v92_v62 = vsel %vm82_vm4, %v89_v53, %v91_v59  ;;  %vm215_vm5 = vcmp.gt.s32.totalorder %v214_v57, 0  ;;  %v1124_v6 = vsel %vm82_vm4, %v85_v58, %v87_v61 }
  0x8e   :  { %v96_v63 = vsel %vm82_vm4, %v93_v54, %v95_v60  ;;  %v122_v3 = vand.u32 65535, %v92_v62  ;;  %v123_v4 = vshrl.u32 %v92_v62, 16  ;;  %v216_v11 = vsel %vm215_vm5, %v214_v57, 0 }
  0x8f   :  { %v100_v1 = vand.u32 65535, %v96_v63  ;;  %v101_v2 = vshrl.u32 %v96_v63, 16  ;;  %v218_v33 = vand.u32 31, %v216_v11  ;;  %v1131_v44 = vshrl.u32 %v216_v11, 5 }
  0x90   :  { %v125_v14 = vmul.u32 %v123_v4, %v98_v24  ;;  %v126_v15 = vmul.u32 %v122_v3, %v99_v25  ;;  %v124_v21 = vmul.u32 %v122_v3, %v98_v24  ;;  %v127_v22 = vmul.u32 %v123_v4, %v99_v25 }
  0x91   :  { %v103_v9 = vmul.u32 %v101_v2, %v98_v24  ;;  %v104_v10 = vmul.u32 %v100_v1, %v99_v25  ;;  %v102_v12 = vmul.u32 %v100_v1, %v98_v24  ;;  %v105_v13 = vmul.u32 %v101_v2, %v99_v25 }
  0x92   :  { %v128_v27 = vshll.u32 %v125_v14, 16  ;;  %v129_v29 = vshrl.u32 %v125_v14, 16  ;;  %v130_v32 = vshll.u32 %v126_v15, 16  ;;  %v131_v36 = vshrl.u32 %v126_v15, 16 }
  0x93   :  { %v106_v16 = vshll.u32 %v103_v9, 16  ;;  %v107_v19 = vshrl.u32 %v103_v9, 16  ;;  %v108_v23 = vshll.u32 %v104_v10, 16  ;;  %v109_v26 = vshrl.u32 %v104_v10, 16 }
  0x94   :  { %vm132_vm7 = vc.u32 %v124_v21, %v128_v27  ;;  %v134_v38 = vadd.s32 %v128_v27, %v124_v21  ;;  %v1128_v42 = vsub.s32 32, %v218_v33  ;;  %v221_v48 = vshll.u32 %v1047_v28, %v218_v33 }
  0x95   :  { %vm110_vm6 = vc.u32 %v102_v12, %v106_v16  ;;  %v112_v31 = vadd.s32 %v106_v16, %v102_v12  ;;  %v133_v41 = vsel %vm132_vm7, 1, %v1046_v0  ;;  %v224_v51 = vshll.u32 %v1048_v30, %v218_v33 }
  0x96   :  { %v111_v35 = vsel %vm110_vm6, 1, %v1046_v0  ;;  %v135_v25 = vadd.s32 %v133_v41, %v127_v22  ;;  %vm136_vm9 = vc.u32 %v134_v38, %v130_v32  ;;  %v1134_v47 = vadd.s32 %v134_v38, %v130_v32 }
  0x97   :  { %v113_v39 = vadd.s32 %v111_v35, %v105_v13  ;;  %vm114_vm8 = vc.u32 %v112_v31, %v108_v23  ;;  %v137_v46 = vsel %vm136_vm9, 1, %v1046_v0  ;;  %v222_v50 = vshrl.u32 %v1048_v30, %v1128_v42 }
  0x98   :  { %v115_v24 = vsel %vm114_vm8, 1, %v1046_v0  ;;  %v139_v49 = vadd.s32 %v137_v46, %v135_v25  ;;  %v225_v52 = vshrl.u32 %v1049_v34, %v1128_v42  ;;  %v227_v54 = vshll.u32 %v1049_v34, %v218_v33 }
  0x99   :  { %v117_v45 = vadd.s32 %v115_v24, %v113_v39  ;;  %v228_v55 = vshrl.u32 %v1050_v37, %v1128_v42  ;;  %v230_v56 = vshll.u32 %v1050_v37, %v218_v33  ;;  %v1146_v58 = vor.u32 %v222_v50, %v221_v48 }
  0x9a   :  { %v140_v57 = vadd.s32 %v139_v49, %v129_v29  ;;  %v1148_v59 = vor.u32 %v225_v52, %v224_v51  ;;  %v231_v60 = vshrl.u32 %v1051_v40, %v1128_v42  ;;  %v233_v63 = vshll.u32 %v1051_v40, %v218_v33 }
  0x9b   :  { %v118_v53 = vadd.s32 %v117_v45, %v107_v19  ;;  %v229_v62 = vor.u32 %v228_v55, %v227_v54  ;;  %v234_v1 = vshrl.u32 %v1052_v43, %v1128_v42  ;;  %vm236_vm11 = vcmp.lt.s32.totalorder %v1131_v44, 1 }
  0x9c   :  { %v141_v2 = vadd.s32 %v140_v57, %v131_v36  ;;  %v232_v3 = vor.u32 %v231_v60, %v230_v56  ;;  %v1160_v9 = vshll.u32 %v212_v5, 8  ;;  %v142_v10 = vmul.u32 %v1102_v18, %v1124_v6 }
  0x9d   :  { %v1152_v61 = vadd.s32 %v118_v53, %v109_v26  ;;  %v235_v4 = vor.u32 %v234_v1, %v233_v63  ;;  %vm239_vm12 = vcmp.lt.s32.totalorder %v1131_v44, 4  ;;  %v244_v12 = vsel %vm236_vm11, %v1146_v58, %v1148_v59 }
  0x9e   :  { %v145_v11 = vadd.s32 1, %v141_v2  ;;  %vm238_vm13 = vcmp.lt.s32.totalorder %v1131_v44, 3  ;;  %v245_v13 = vsel %vm239_vm12, %v232_v3, 920167782  ;;  %v248_v5 = vsel %vm236_vm11, %v1148_v59, %v229_v62 }
  0x9f   :  { %vm144_vm10 = vc.u32 %v1152_v61, %v1134_v47  ;;  %v249_v18 = vsel %vm239_vm12, %v235_v4, 1326507024  ;;  %vm237_vm14 = vcmp.lt.s32.totalorder %v1131_v44, 2  ;;  %v246_v14 = vsel %vm238_vm13, %v229_v62, %v245_v13 }
  0xa0   :  { %v146_v6 = vsel %vm144_vm10, %v145_v11, %v141_v2  ;;  %v250_v15 = vsel %vm238_vm13, %v232_v3, %v249_v18  ;;  %v247_v19 = vsel %vm237_vm14, %v244_v12, %v246_v14  ;;  %v253_v22 = vand.u32 65535, %v1160_v9 }
  0xa1   :  { %v147_v16 = vadd.s32 %v146_v6, %v142_v10  ;;  %v251_v21 = vsel %vm237_vm14, %v248_v5, %v250_v15  ;;  %v254_v23 = vshrl.u32 %v1160_v9, 16  ;;  %v278_v29 = vshrl.u32 %v247_v19, 16 }
  0xa2   :  { %v255_v26 = vand.u32 65535, %v251_v21  ;;  %v256_v27 = vshrl.u32 %v251_v21, 16  ;;  %v277_v32 = vand.u32 65535, %v247_v19  ;;  %v241_v11 = vsel %vm239_vm12, %v229_v62, 2102212464 }
  0xa3   :  { %v148_v31 = vadd.s32 536870912, %v147_v16  ;;  %v280_v38 = vmul.u32 %v278_v29, %v253_v22  ;;  %v282_v57 = vmul.u32 %v278_v29, %v254_v23  ;;  %v220_v13 = vshrl.u32 %v1047_v28, %v1128_v42 }
  0xa4   :  { %v258_v33 = vmul.u32 %v256_v27, %v253_v22  ;;  %v259_v35 = vmul.u32 %v255_v26, %v254_v23  ;;  %v257_v39 = vmul.u32 %v255_v26, %v253_v22  ;;  %v260_v25 = vmul.u32 %v256_v27, %v254_v23 }
  0xa5   :  { %v1188_v36 = vshrl.u32 %v148_v31, 30  ;;  %v279_v45 = vmul.u32 %v277_v32, %v253_v22  ;;  %v283_v46 = vshll.u32 %v280_v38, 16  ;;  %v281_v50 = vmul.u32 %v277_v32, %v254_v23 }
  0xa6   :  { %v261_v41 = vshll.u32 %v258_v33, 16  ;;  %v263_v48 = vshll.u32 %v259_v35, 16  ;;  %v262_v53 = vshrl.u32 %v258_v33, 16  ;;  %v264_v5 = vshrl.u32 %v259_v35, 16 }
  0xa7   :  { %v150_v24 = vshll.u32 %v1188_v36, 30  ;;  %vm287_vm1 = vc.u32 %v279_v45, %v283_v46  ;;  %v285_v63 = vshll.u32 %v281_v50, 16  ;;  %v289_v2 = vadd.s32 %v283_v46, %v279_v45 }
  0xa8   :  { %vm265_vm15 = vc.u32 %v257_v39, %v261_v41  ;;  %v267_v49 = vadd.s32 %v261_v41, %v257_v39  ;;  %v288_v1 = vsel %vm287_vm1, 1, %v1046_v0  ;;  %v284_v14 = vshrl.u32 %v280_v38, 16 }
  0xa9   :  { %v151_v51 = vsub.s32 %v147_v16, %v150_v24  ;;  %v266_v52 = vsel %vm265_vm15, 1, %v1046_v0  ;;  %v290_v4 = vadd.s32 %v288_v1, %v282_v57  ;;  %vm291_vm3 = vc.u32 %v289_v2, %v285_v63 }
  0xaa   :  { %v268_v54 = vadd.s32 %v266_v52, %v260_v25  ;;  %vm269_vm0 = vc.u32 %v267_v49, %v263_v48  ;;  %v292_v18 = vsel %vm291_vm3, 1, %v1046_v0  ;;  %v240_v16 = vsel %vm236_vm11, %v220_v13, %v1146_v58 }
  0xab   :  { %vm152_vm2 = vcmp.lt.s32.totalorder %v151_v51, 0  ;;  %v153_v55 = vsub.s32 0, %v151_v51  ;;  %v270_v56 = vsel %vm269_vm0, 1, %v1046_v0  ;;  %v294_v15 = vadd.s32 %v292_v18, %v290_v4 }
  0xac   :  { %v272_v60 = vadd.s32 %v270_v56, %v268_v54  ;;  %v242_v19 = vsel %vm238_vm13, %v1148_v59, %v241_v11  ;;  %v286_v21 = vshrl.u32 %v281_v50, 16  ;;  %v143_v42 = vadd.s32 %v1134_v47, %v1152_v61  ;;  %v1216_v47 = vld [vmem:[%s1468_s0] sm:$0xff] }
  0xad   :  { %v154_v3 = vsel %vm152_vm2, %v153_v55, %v151_v51  ;;  %v295_v22 = vadd.s32 %v294_v15, %v284_v14  ;;  %v293_v26 = vadd.s32 %v289_v2, %v285_v63  ;;  %v243_v31 = vsel %vm237_vm14, %v240_v16, %v242_v19  ;;  %983 = vrot.lane.b32.xlu1 %v1216_v47, %s1053_s3 }
  0xae   :  { %v155_v10 = vclz %v154_v3  ;;  %v273_v12 = vadd.s32 %v272_v60, %v262_v53  ;;  %v297_v38 = vmul.u32 %v1160_v9, %v243_v31  ;;  %989 = vrot.lane.b32.xlu2 %v1216_v47, %s1054_s23  ;;  %vm51_vm6 = vcmp.lt.s32.totalorder %v1094_v7, 0 }
  0xaf   :  { %v296_v58 = vadd.s32 %v295_v22, %v286_v21  ;;  %vm1233_vm7 = vcmp.le.f32.partialorder %v49_v8, 0.7853982  ;;  %v173_v55 = vsub.s32 4, %v1188_v36  ;;  %v43_v8 = vlaneseq }
  0xb0   :  { %v1016_v6 = vadd.s32 4294967294, %v155_v10  ;;  %v1205_v62 = vadd.s32 %v273_v12, %v264_v5  ;;  %vm192_vm15 = vweird.f32 %v1094_v7  ;;  %vm206_vm0 = vcmp.lt.s32.totalorder %v1100_v17, 0 }
  0xb1   :  { %v300_v35 = vadd.s32 1, %v296_v58  ;;  %v174_v4 = vsel %vm51_vm6, %v173_v55, %v1188_v36  ;;  %v1244_v14 = vand.u32 127, %v43_v8  ;;  %vm1262_vm1 = vcmp.le.f32.partialorder %v204_v20, 0.7853982 }
  0xb2   :  { %vm1017_vm4 = vcmp.lt.s32.totalorder %v1016_v6, 0  ;;  %vm299_vm5 = vc.u32 %v1205_v62, %v293_v26  ;;  %v176_v13 = vsel %vm1233_vm7, 0, %v174_v4  ;;  %v298_v16 = vadd.s32 %v293_v26, %v1205_v62 }
  0xb3   :  { %v158_v23 = vsel %vm1017_vm4, 0, %v1016_v6  ;;  %v301_v24 = vsel %vm299_vm5, %v300_v35, %v296_v58  ;;  %v193_v22 = vadd.s32 3, %v176_v13  ;;  %v1014_v31 = vadd.s32 4294967280, %v1244_v14 }
  0xb4   :  { %v159_v27 = vsub.s32 32, %v158_v23  ;;  %v163_v29 = vsub.s32 4294967266, %v158_v23  ;;  %v160_v32 = vshll.u32 %v151_v51, %v158_v23  ;;  %v302_v61 = vadd.s32 %v301_v24, %v297_v38  ;;  %v1226_v51 = vld [vmem:[%s1468_s0 + $0x8] sm:$0xff] }
  0xb5   :  { %985 = vrot.lane.b32.xlu1 %v1226_v51, %s1053_s3  ;;  %vm45_vm10 = vcmp.lt.s32.totalorder %v1244_v14, 16  ;;  %v194_v35 = vand.u32 3, %v193_v22 }
  0xb6   :  { %v161_v59 = vshrl.u32 %v143_v42, %v159_v27  ;;  %v164_v33 = vadd.s32 127, %v163_v29  ;;  %v303_v25 = vadd.s32 536870912, %v302_v61  ;;  %991 = vrot.lane.b32.xlu2 %v1226_v51, %s1054_s23  ;;  %v1252_v26 = vsel %vm45_vm10, %v1244_v14, %v1014_v31 }
  0xb7   :  { %vm195_vm11 = vcmp.lt.s32.totalorder %v194_v35, 2  ;;  %vm196_vm12 = vcmp.eq.s32.totalorder %v194_v35, 0  ;;  %vm199_vm13 = vcmp.eq.s32.totalorder %v194_v35, 2  ;;  %vm48_vm14 = vcmp.lt.s32.totalorder %v1252_v26, 15 }
  0xb8   :  { %v162_v39 = vor.u32 %v161_v59, %v160_v32  ;;  %v165_v41 = vshll.u32 %v164_v33, 23  ;;  %v1220_v9 = vshrl.u32 %v303_v25, 30 }
  0xba   :  { %v166_v44 = vor.u32 4788187, %v165_v41  ;;  %v169_v46 = vcvt.s32.f32 %v162_v39  ;;  %v305_v49 = vshll.u32 %v1220_v9, 30 }
  0xbc   :  { %v167_v45 = vand.u32 2147483647, %v166_v44  ;;  %v306_v52 = vsub.s32 %v302_v61, %v305_v49 }
  0xbe   :  { %v170_v48 = vmul.f32 %v169_v46, %v167_v45  ;;  %vm307_vm8 = vcmp.lt.s32.totalorder %v306_v52, 0  ;;  %v308_v57 = vsub.s32 0, %v306_v52 }
  0xc0   :  { %v171_v50 = vxor.u32 2147483648, %v170_v48  ;;  %v309_v63 = vsel %vm307_vm8, %v308_v57, %v306_v52 }
  0xc1   :  { %v310_v2 = vclz %v309_v63  ;;  %v328_v63 = vsub.s32 4, %v1220_v9 }
  0xc2   :  { %v172_v54 = vsel %vm51_vm6, %v171_v50, %v170_v48 }
  0xc3   :  { %v175_v56 = vsel %vm1233_vm7, %v1094_v7, %v172_v54  ;;  %v1019_v11 = vadd.s32 4294967294, %v310_v2  ;;  %vm347_vm7 = vweird.f32 %v1100_v17 }
  0xc4   :  { %v177_v60 = vmul.f32 %v175_v56, %v175_v56 }
  0xc5   :  { %vm1020_vm9 = vcmp.lt.s32.totalorder %v1019_v11, 0 }
  0xc6   :  { %v185_v1 = vmul.f32 -0.00019511016, %v177_v60  ;;  %v178_v3 = vmul.f32 -0.001358992, %v177_v60  ;;  %v313_v6 = vsel %vm1020_vm9, 0, %v1019_v11  ;;  %v329_v11 = vsel %vm206_vm0, %v328_v63, %v1220_v9 }
  0xc7   :  { %v314_v19 = vsub.s32 32, %v313_v6  ;;  %v318_v21 = vsub.s32 4294967266, %v313_v6  ;;  %v315_v23 = vshll.u32 %v306_v52, %v313_v6 }
  0xc8   :  { %v186_v10 = vadd.f32 0.008332121, %v185_v1  ;;  %v179_v12 = vadd.f32 0.041655596, %v178_v3 }
  0xc9   :  { %v316_v27 = vshrl.u32 %v298_v16, %v314_v19  ;;  %v319_v29 = vadd.s32 127, %v318_v21 }
  0xca   :  { %v187_v5 = vmul.f32 %v186_v10, %v177_v60  ;;  %v180_v18 = vmul.f32 %v179_v12, %v177_v60 }
  0xcb   :  { %v317_v59 = vor.u32 %v316_v27, %v315_v23  ;;  %v320_v33 = vshll.u32 %v319_v29, 23 }
  0xcc   :  { %v188_v15 = vadd.f32 -0.16666654, %v187_v5  ;;  %v181_v36 = vadd.f32 -0.4999988, %v180_v18 }
  0xcd   :  { %v321_v62 = vor.u32 4788187, %v320_v33  ;;  %v324_v44 = vcvt.s32.f32 %v317_v59 }
  0xce   :  { %v189_v42 = vmul.f32 %v188_v15, %v177_v60  ;;  %v182_v58 = vmul.f32 %v181_v36, %v177_v60  ;;  %v331_v15 = vsel %vm1262_vm1, 0, %v329_v11 }
  0xcf   :  { %v322_v61 = vand.u32 2147483647, %v321_v62  ;;  %v348_v36 = vadd.s32 3, %v331_v15 }
  0xd0   :  { %v190_v32 = vadd.f32 1.0, %v189_v42  ;;  %v183_v38 = vadd.f32 1.0, %v182_v58 }
  0xd1   :  { %v325_v25 = vmul.f32 %v324_v44, %v322_v61 }
  0xd2   :  { %v191_v39 = vmul.f32 %v190_v32, %v175_v56  ;;  %v200_v41 = vxor.u32 2147483648, %v183_v38 }
  0xd3   :  { %v326_v49 = vxor.u32 2147483648, %v325_v25 }
  0xd4   :  { %v197_v24 = vxor.u32 2147483648, %v191_v39  ;;  %v201_v46 = vsel %vm199_vm13, %v200_v41, %v191_v39 }
  0xd5   :  { %v327_v54 = vsel %vm206_vm0, %v326_v49, %v325_v25 }
  0xd6   :  { %v198_v45 = vsel %vm196_vm12, %v183_v38, %v197_v24  ;;  %v330_v56 = vsel %vm1262_vm1, %v1100_v17, %v327_v54  ;;  %v349_v24 = vand.u32 3, %v348_v36 }
  0xd7   :  { %v202_v48 = vsel %vm195_vm11, %v198_v45, %v201_v46  ;;  %v332_v57 = vmul.f32 %v330_v56, %v330_v56 }
  0xd8   :  { %v203_v50 = vsel %vm192_vm15, nan, %v202_v48  ;;  %vm350_vm8 = vcmp.lt.s32.totalorder %v349_v24, 2  ;;  %vm351_vm9 = vcmp.eq.s32.totalorder %v349_v24, 0  ;;  %vm354_vm11 = vcmp.eq.s32.totalorder %v349_v24, 2 }
  0xd9   :  { %v359_v52 = vsel %vm48_vm14, %v203_v50, %v1094_v7  ;;  %v340_v20 = vmul.f32 -0.00019511016, %v332_v57  ;;  %v333_v2 = vmul.f32 -0.001358992, %v332_v57 }
  0xda   :  { %v1268_v55 = vmul.f32 1.9332877, %v359_v52 }
  0xdb   :  { %v341_v3 = vadd.f32 0.008332121, %v340_v20  ;;  %v334_v10 = vadd.f32 0.041655596, %v333_v2 }
  0xdc   :  { %v363_v60 = vand.u32 2147483647, %v1268_v55  ;;  %v366_v7 = vand.u32 2139095040, %v1268_v55 }
  0xdd   :  { %v342_v12 = vmul.f32 %v341_v3, %v332_v57  ;;  %v335_v5 = vmul.f32 %v334_v10, %v332_v57 }
  0xde   :  { %v367_v1 = vshrl.u32 %v366_v7, 23  ;;  %v370_v8 = vand.u32 8388607, %v363_v60 }
  0xdf   :  { %v343_v18 = vadd.f32 -0.16666654, %v342_v12  ;;  %v336_v19 = vadd.f32 -0.4999988, %v335_v5 }
  0xe0   :  { %v1021_v4 = vadd.s32 4294967169, %v367_v1  ;;  %v371_v6 = vor.u32 8388608, %v370_v8 }
  0xe1   :  { %v344_v21 = vmul.f32 %v343_v18, %v332_v57  ;;  %v337_v58 = vmul.f32 %v336_v19, %v332_v57 }
  0xe2   :  { %v373_v13 = vadd.s32 1, %v1021_v4  ;;  %v1285_v27 = vshll.u32 %v371_v6, 8 }
  0xe3   :  { %v345_v9 = vadd.f32 1.0, %v344_v21  ;;  %v338_v52 = vadd.f32 1.0, %v337_v58 }
  0xe4   :  { %vm374_vm2 = vcmp.gt.s32.totalorder %v373_v13, 0  ;;  %v412_v50 = vand.u32 65535, %v1285_v27  ;;  %v413_v63 = vshrl.u32 %v1285_v27, 16 }
  0xe5   :  { %v375_v16 = vsel %vm374_vm2, %v373_v13, 0  ;;  %v346_v25 = vmul.f32 %v345_v9, %v330_v56  ;;  %v355_v3 = vxor.u32 2147483648, %v338_v52 }
  0xe6   :  { %v377_v22 = vand.u32 31, %v375_v16  ;;  %v1283_v42 = vshrl.u32 %v375_v16, 5 }
  0xe7   :  { %v352_v20 = vxor.u32 2147483648, %v346_v25 }
  0xe8   :  { %v378_v23 = vsub.s32 32, %v377_v22  ;;  %v380_v29 = vshll.u32 %v1047_v28, %v377_v22  ;;  %v383_v31 = vshll.u32 %v1048_v30, %v377_v22  ;;  %v386_v33 = vshll.u32 %v1049_v34, %v377_v22 }
  0xe9   :  { %v389_v35 = vshll.u32 %v1050_v37, %v377_v22  ;;  %v392_v62 = vshll.u32 %v1051_v40, %v377_v22  ;;  %vm395_vm3 = vcmp.lt.s32.totalorder %v1283_v42, 1  ;;  %vm398_vm4 = vcmp.lt.s32.totalorder %v1283_v42, 4 }
  0xea   :  { %v381_v32 = vshrl.u32 %v1048_v30, %v378_v23  ;;  %v384_v59 = vshrl.u32 %v1049_v34, %v378_v23  ;;  %v387_v38 = vshrl.u32 %v1050_v37, %v378_v23  ;;  %v390_v39 = vshrl.u32 %v1051_v40, %v378_v23 }
  0xeb   :  { %v393_v41 = vshrl.u32 %v1052_v43, %v378_v23  ;;  %vm397_vm5 = vcmp.lt.s32.totalorder %v1283_v42, 3  ;;  %vm396_vm6 = vcmp.lt.s32.totalorder %v1283_v42, 2  ;;  %v379_v5 = vshrl.u32 %v1047_v28, %v378_v23 }
  0xec   :  { %v1297_v61 = vor.u32 %v381_v32, %v380_v29  ;;  %v1299_v44 = vor.u32 %v384_v59, %v383_v31  ;;  %v388_v45 = vor.u32 %v387_v38, %v386_v33  ;;  %v391_v46 = vor.u32 %v390_v39, %v389_v35 }
  0xed   :  { %v394_v48 = vor.u32 %v393_v41, %v392_v62  ;;  %v353_v15 = vsel %vm351_vm9, %v338_v52, %v352_v20  ;;  %v356_v22 = vsel %vm354_vm11, %v355_v3, %v346_v25 }
  0xee   :  { %v403_v49 = vsel %vm395_vm3, %v1297_v61, %v1299_v44  ;;  %v404_v53 = vsel %vm398_vm4, %v391_v46, 920167782  ;;  %v407_v54 = vsel %vm395_vm3, %v1299_v44, %v388_v45  ;;  %v357_v59 = vsel %vm350_vm8, %v353_v15, %v356_v22 }
  0xef   :  { %v408_v56 = vsel %vm398_vm4, %v394_v48, 1326507024  ;;  %v405_v57 = vsel %vm397_vm5, %v388_v45, %v404_v53  ;;  %v358_v35 = vsel %vm347_vm7, nan, %v357_v59  ;;  %v400_v41 = vsel %vm398_vm4, %v388_v45, 2102212464 }
  0xf0   :  { %v409_v7 = vsel %vm397_vm5, %v391_v46, %v408_v56  ;;  %v406_v1 = vsel %vm396_vm6, %v403_v49, %v405_v57  ;;  %v360_v62 = vsel %vm48_vm14, %v358_v35, %v1100_v17  ;;  %v399_v52 = vsel %vm395_vm3, %v379_v5, %v1297_v61 }
  0xf1   :  { %v410_v2 = vsel %vm396_vm6, %v407_v54, %v409_v7  ;;  %v436_v10 = vand.u32 65535, %v406_v1  ;;  %v437_v11 = vshrl.u32 %v406_v1, 16  ;;  %v401_v17 = vsel %vm397_vm5, %v1299_v44, %v400_v41 }
  0xf2   :  { %v414_v4 = vand.u32 65535, %v410_v2  ;;  %v415_v8 = vshrl.u32 %v410_v2, 16  ;;  %v402_v61 = vsel %vm396_vm6, %v399_v52, %v401_v17 }
  0xf3   :  { %v439_v18 = vmul.u32 %v437_v11, %v412_v50  ;;  %v440_v6 = vmul.u32 %v436_v10, %v413_v63  ;;  %v438_v9 = vmul.u32 %v436_v10, %v412_v50  ;;  %v441_v29 = vmul.u32 %v437_v11, %v413_v63 }
  0xf4   :  { %v417_v12 = vmul.u32 %v415_v8, %v412_v50  ;;  %v418_v13 = vmul.u32 %v414_v4, %v413_v63  ;;  %v416_v16 = vmul.u32 %v414_v4, %v412_v50  ;;  %v419_v19 = vmul.u32 %v415_v8, %v413_v63 }
  0xf5   :  { %v442_v31 = vshll.u32 %v439_v18, 16  ;;  %v444_v32 = vshll.u32 %v440_v6, 16  ;;  %v1340_v50 = vmul.f32 1.9332877, %v360_v62  ;;  %v443_v53 = vshrl.u32 %v439_v18, 16 }
  0xf6   :  { %v420_v21 = vshll.u32 %v417_v12, 16  ;;  %v422_v36 = vshll.u32 %v418_v13, 16  ;;  %v421_v46 = vshrl.u32 %v417_v12, 16  ;;  %v423_v45 = vshrl.u32 %v418_v13, 16 }
  0xf7   :  { %vm446_vm13 = vc.u32 %v438_v9, %v442_v31  ;;  %v448_v23 = vadd.s32 %v442_v31, %v438_v9  ;;  %v520_v56 = vand.u32 2139095040, %v1340_v50  ;;  %v445_v57 = vshrl.u32 %v440_v6, 16 }
  0xf8   :  { %vm424_vm12 = vc.u32 %v416_v16, %v420_v21  ;;  %v426_v58 = vadd.s32 %v420_v21, %v416_v16  ;;  %v447_v39 = vsel %vm446_vm13, 1, %v1046_v0  ;;  %v456_v4 = vmul.u32 %v1285_v27, %v402_v61 }
  0xf9   :  { %v425_v33 = vsel %vm424_vm12, 1, %v1046_v0  ;;  %v449_v25 = vadd.s32 %v447_v39, %v441_v29  ;;  %vm450_vm0 = vc.u32 %v448_v23, %v444_v32  ;;  %v1351_v20 = vadd.s32 %v448_v23, %v444_v32 }
  0xfa   :  { %v427_v38 = vadd.s32 %v425_v33, %v419_v19  ;;  %vm428_vm15 = vc.u32 %v426_v58, %v422_v36  ;;  %v451_v49 = vsel %vm450_vm0, 1, %v1046_v0  ;;  %v521_v1 = vshrl.u32 %v520_v56, 23 }
  0xfb   :  { %v429_v24 = vsel %vm428_vm15, 1, %v1046_v0  ;;  %v453_v26 = vadd.s32 %v451_v49, %v449_v25  ;;  %v517_v12 = vand.u32 2147483647, %v1340_v50  ;;  %vm365_vm13 = vcmp.lt.s32.totalorder %v1268_v55, 0 }
  0xfc   :  { %v431_v48 = vadd.s32 %v429_v24, %v427_v38  ;;  %v1024_v3 = vadd.s32 4294967169, %v521_v1  ;;  %vm364_vm15 = vcmp.le.f32.partialorder %v363_v60, 0.7853982 }
  0xfd   :  { %v454_v7 = vadd.s32 %v453_v26, %v443_v53  ;;  %v524_v42 = vand.u32 8388607, %v517_v12 }
  0xfe   :  { %v432_v54 = vadd.s32 %v431_v48, %v421_v46  ;;  %v527_v8 = vadd.s32 1, %v1024_v3 }
  0xff   :  { %v455_v2 = vadd.s32 %v454_v7, %v445_v57  ;;  %v525_v33 = vor.u32 8388608, %v524_v42 }
 0x100   :  { %v1349_v63 = vadd.s32 %v432_v54, %v423_v45  ;;  %vm528_vm1 = vcmp.gt.s32.totalorder %v527_v8, 0 }
 0x101   :  { %v459_v44 = vadd.s32 1, %v455_v2  ;;  %v529_v13 = vsel %vm528_vm1, %v527_v8, 0  ;;  %vm506_vm1 = vweird.f32 %v1268_v55 }
 0x102   :  { %vm458_vm14 = vc.u32 %v1349_v63, %v1351_v20  ;;  %v531_v18 = vand.u32 31, %v529_v13  ;;  %v1363_v16 = vshrl.u32 %v529_v13, 5 }
 0x103   :  { %v460_v10 = vsel %vm458_vm14, %v459_v44, %v455_v2  ;;  %v457_v2 = vadd.s32 %v1351_v20, %v1349_v63 }
 0x104   :  { %v461_v11 = vadd.s32 %v460_v10, %v456_v4  ;;  %v532_v15 = vsub.s32 32, %v531_v18  ;;  %v534_v19 = vshll.u32 %v1047_v28, %v531_v18  ;;  %v537_v27 = vshll.u32 %v1048_v30, %v531_v18 }
 0x105   :  { %v540_v36 = vshll.u32 %v1049_v34, %v531_v18  ;;  %v543_v9 = vshll.u32 %v1050_v37, %v531_v18  ;;  %v546_v35 = vshll.u32 %v1051_v40, %v531_v18  ;;  %vm549_vm3 = vcmp.lt.s32.totalorder %v1363_v16, 1 }
 0x106   :  { %v462_v5 = vadd.s32 536870912, %v461_v11  ;;  %v535_v22 = vshrl.u32 %v1048_v30, %v532_v15  ;;  %v538_v29 = vshrl.u32 %v1049_v34, %v532_v15  ;;  %v541_v31 = vshrl.u32 %v1050_v37, %v532_v15 }
 0x107   :  { %v544_v58 = vshrl.u32 %v1051_v40, %v532_v15  ;;  %v547_v32 = vshrl.u32 %v1052_v43, %v532_v15  ;;  %vm552_vm4 = vcmp.lt.s32.totalorder %v1363_v16, 4  ;;  %v1386_v43 = vshll.u32 %v525_v33, 8 }
 0x108   :  { %v1359_v6 = vshrl.u32 %v462_v5, 30  ;;  %v1375_v23 = vor.u32 %v535_v22, %v534_v19  ;;  %v1378_v38 = vor.u32 %v538_v29, %v537_v27  ;;  %v542_v30 = vor.u32 %v541_v31, %v540_v36 }
 0x109   :  { %v545_v39 = vor.u32 %v544_v58, %v543_v9  ;;  %v548_v41 = vor.u32 %v547_v32, %v546_v35  ;;  %vm551_vm5 = vcmp.lt.s32.totalorder %v1363_v16, 3  ;;  %vm550_vm6 = vcmp.lt.s32.totalorder %v1363_v16, 2 }
 0x10a   :  { %v464_v21 = vshll.u32 %v1359_v6, 30  ;;  %v557_v37 = vsel %vm549_vm3, %v1375_v23, %v1378_v38  ;;  %v561_v25 = vsel %vm549_vm3, %v1378_v38, %v542_v30  ;;  %v566_v17 = vand.u32 65535, %v1386_v43 }
 0x10b   :  { %v558_v24 = vsel %vm552_vm4, %v545_v39, 920167782  ;;  %v562_v48 = vsel %vm552_vm4, %v548_v41, 1326507024  ;;  %v567_v56 = vshrl.u32 %v1386_v43, 16  ;;  %v533_v8 = vshrl.u32 %v1047_v28, %v532_v15 }
 0x10c   :  { %v465_v59 = vsub.s32 %v461_v11, %v464_v21  ;;  %v559_v46 = vsel %vm551_vm5, %v542_v30, %v558_v24  ;;  %v563_v53 = vsel %vm551_vm5, %v545_v39, %v562_v48  ;;  %v554_v15 = vsel %vm552_vm4, %v542_v30, 2102212464 }
 0x10d   :  { %v560_v52 = vsel %vm550_vm6, %v557_v37, %v559_v46  ;;  %v564_v26 = vsel %vm550_vm6, %v561_v25, %v563_v53  ;;  %v553_v30 = vsel %vm549_vm3, %v533_v8, %v1375_v23  ;;  %v555_v48 = vsel %vm551_vm5, %v1378_v38, %v554_v15 }
 0x10e   :  { %vm466_vm2 = vcmp.lt.s32.totalorder %v465_v59, 0  ;;  %v467_v62 = vsub.s32 0, %v465_v59  ;;  %v590_v45 = vand.u32 65535, %v560_v52  ;;  %v591_v54 = vshrl.u32 %v560_v52, 16 }
 0x10f   :  { %v568_v57 = vand.u32 65535, %v564_v26  ;;  %v569_v7 = vshrl.u32 %v564_v26, 16 }
 0x110   :  { %v468_v34 = vsel %vm466_vm2, %v467_v62, %v465_v59  ;;  %v593_v61 = vmul.u32 %v591_v54, %v566_v17  ;;  %v594_v4 = vmul.u32 %v590_v45, %v567_v56  ;;  %v592_v13 = vmul.u32 %v590_v45, %v566_v17 }
 0x111   :  { %v469_v40 = vclz %v468_v34  ;;  %v571_v10 = vmul.u32 %v569_v7, %v566_v17  ;;  %v572_v11 = vmul.u32 %v568_v57, %v567_v56  ;;  %v570_v27 = vmul.u32 %v568_v57, %v566_v17 }
 0x112   :  { %v596_v19 = vshll.u32 %v593_v61, 16  ;;  %v573_v21 = vmul.u32 %v569_v7, %v567_v56  ;;  %v595_v36 = vmul.u32 %v591_v54, %v567_v56  ;;  %v598_v63 = vshll.u32 %v594_v4, 16 }
 0x113   :  { %v1022_v49 = vadd.s32 4294967294, %v469_v40  ;;  %v574_v22 = vshll.u32 %v571_v10, 16  ;;  %v576_v31 = vshll.u32 %v572_v11, 16  ;;  %v575_v37 = vshrl.u32 %v571_v10, 16 }
 0x114   :  { %vm600_vm9 = vc.u32 %v592_v13, %v596_v19  ;;  %v602_v58 = vadd.s32 %v596_v19, %v592_v13  ;;  %v597_v24 = vshrl.u32 %v593_v61, 16  ;;  %v599_v53 = vshrl.u32 %v594_v4, 16 }
 0x115   :  { %vm1023_vm7 = vcmp.lt.s32.totalorder %v1022_v49, 0  ;;  %vm578_vm8 = vc.u32 %v570_v27, %v574_v22  ;;  %v580_v20 = vadd.s32 %v574_v22, %v570_v27  ;;  %v487_v17 = vsub.s32 4, %v1359_v6 }
 0x116   :  { %v472_v1 = vsel %vm1023_vm7, 0, %v1022_v49  ;;  %v579_v32 = vsel %vm578_vm8, 1, %v1046_v0  ;;  %vm604_vm12 = vc.u32 %v602_v58, %v598_v63  ;;  %v577_v49 = vshrl.u32 %v572_v11, 16 }
 0x117   :  { %v473_v3 = vsub.s32 32, %v472_v1  ;;  %v477_v44 = vsub.s32 4294967266, %v472_v1  ;;  %v474_v5 = vshll.u32 %v465_v59, %v472_v1  ;;  %v601_v59 = vsel %vm600_vm9, 1, %v1046_v0 }
 0x118   :  { %v581_v33 = vadd.s32 %v579_v32, %v573_v21  ;;  %vm582_vm11 = vc.u32 %v580_v20, %v576_v31  ;;  %v603_v35 = vadd.s32 %v601_v59, %v595_v36  ;;  %v605_v34 = vsel %vm604_vm12, 1, %v1046_v0 }
 0x119   :  { %v475_v18 = vshrl.u32 %v457_v2, %v473_v3  ;;  %v478_v42 = vadd.s32 127, %v477_v44  ;;  %v583_v41 = vsel %vm582_vm11, 1, %v1046_v0  ;;  %v556_v45 = vsel %vm550_vm6, %v553_v30, %v555_v48 }
 0x11a   :  { %v585_v40 = vadd.s32 %v583_v41, %v581_v33  ;;  %v607_v25 = vadd.s32 %v605_v34, %v603_v35  ;;  %v606_v56 = vadd.s32 %v602_v58, %v598_v63  ;;  %v610_v61 = vmul.u32 %v1386_v43, %v556_v45 }
 0x11b   :  { %v476_v9 = vor.u32 %v475_v18, %v474_v5  ;;  %v479_v29 = vshll.u32 %v478_v42, 23  ;;  %v488_v2 = vsel %vm365_vm13, %v487_v17, %v1359_v6  ;;  %vm995_vm8 = vcmask 130048  }
 0x11c   :  { %v586_v52 = vadd.s32 %v585_v40, %v575_v37  ;;  %v608_v26 = vadd.s32 %v607_v25, %v597_v24  ;;  %v490_v8 = vsel %vm364_vm15, 0, %v488_v2  ;;  %vm1007_vm11 = vcmask 261120  }
 0x11d   :  { %v480_v28 = vor.u32 4788187, %v479_v29  ;;  %v483_v62 = vcvt.s32.f32 %v476_v9  ;;  %v815_v42 = vadd.s32 3, %v490_v8  ;;  %v507_v36 = vand.u32 3, %v490_v8 }
 0x11e   :  { %v587_v54 = vadd.s32 %v586_v52, %v577_v49  ;;  %v609_v57 = vadd.s32 %v608_v26, %v599_v53  ;;  %v1055_v53 = vmov 1.0   ;;  %vm518_vm12 = vcmp.le.f32.partialorder %v517_v12, 0.7853982 }
 0x11f   :  { %v481_v39 = vand.u32 2147483647, %v480_v28  ;;  %v816_v9 = vand.u32 3, %v815_v42  ;;  %vm508_vm2 = vcmp.lt.s32.totalorder %v507_v36, 2  ;;  %vm509_vm3 = vcmp.eq.s32.totalorder %v507_v36, 0  ;;  %v984_v34 = vpop.permute.xlu1 %983 }
 0x120   :  { %vm612_vm0 = vc.u32 %v587_v54, %v606_v56  ;;  %v613_v7 = vadd.s32 1, %v609_v57  ;;  %vm512_vm4 = vcmp.eq.s32.totalorder %v507_v36, 2  ;;  %v611_v48 = vadd.s32 %v606_v56, %v587_v54 }
 0x121   :  { %v484_v46 = vmul.f32 %v483_v62, %v481_v39  ;;  %vm817_vm5 = vcmp.lt.s32.totalorder %v816_v9, 2  ;;  %vm818_vm6 = vcmp.eq.s32.totalorder %v816_v9, 0  ;;  %vm821_vm7 = vcmp.eq.s32.totalorder %v816_v9, 2  ;;  %v990_v39 = vpop.permute.xlu2 %989 }
 0x122   :  { %v614_v3 = vsel %vm612_vm0, %v613_v7, %v609_v57  ;;  %v996_v24 = vsel %vm995_vm8, %v984_v34, %v990_v39  ;;  %v1443_v26 = vsel %vm45_vm10, -1.0, %v1055_v53  ;;  %vm519_vm10 = vcmp.lt.s32.totalorder %v1340_v50, 0 }
 0x123   :  { %v485_v0 = vxor.u32 2147483648, %v484_v46  ;;  %v615_v4 = vadd.s32 %v614_v3, %v610_v61 }
 0x125   :  { %v486_v23 = vsel %vm365_vm13, %v485_v0, %v484_v46  ;;  %v616_v13 = vadd.s32 536870912, %v615_v4 }
 0x126   :  { %v489_v38 = vsel %vm364_vm15, %v1268_v55, %v486_v23 }
 0x127   :  { %v491_v1 = vmul.f32 %v489_v38, %v489_v38  ;;  %v1431_v18 = vshrl.u32 %v616_v13, 30 }
 0x129   :  { %v492_v44 = vmul.f32 -0.001358992, %v491_v1  ;;  %v499_v16 = vmul.f32 -0.00019511016, %v491_v1  ;;  %v618_v21 = vshll.u32 %v1431_v18, 30  ;;  %v641_v3 = vsub.s32 4, %v1431_v18 }
 0x12b   :  { %v493_v10 = vadd.f32 0.041655596, %v492_v44  ;;  %v500_v11 = vadd.f32 0.008332121, %v499_v16  ;;  %v619_v6 = vsub.s32 %v615_v4, %v618_v21 }
 0x12d   :  { %v494_v5 = vmul.f32 %v493_v10, %v491_v1  ;;  %v501_v60 = vmul.f32 %v500_v11, %v491_v1  ;;  %vm620_vm14 = vcmp.lt.s32.totalorder %v619_v6, 0  ;;  %v621_v63 = vsub.s32 0, %v619_v6 }
 0x12e   :  { %v642_v10 = vsel %vm519_vm10, %v641_v3, %v1431_v18 }
 0x12f   :  { %v495_v19 = vadd.f32 -0.4999988, %v494_v5  ;;  %v502_v27 = vadd.f32 -0.16666654, %v501_v60  ;;  %v622_v28 = vsel %vm620_vm14, %v621_v63, %v619_v6  ;;  %v644_v5 = vsel %vm518_vm12, 0, %v642_v10  ;;  %v992_v63 = vpop.permute.xlu2 %991 }
 0x130   :  { %v623_v15 = vclz %v622_v28  ;;  %v970_v21 = vadd.s32 3, %v644_v5  ;;  %v661_v36 = vand.u32 3, %v644_v5 }
 0x131   :  { %v496_v43 = vmul.f32 %v495_v19, %v491_v1  ;;  %v503_v22 = vmul.f32 %v502_v27, %v491_v1 }
 0x132   :  { %v1025_v33 = vadd.s32 4294967294, %v623_v15  ;;  %v971_v9 = vand.u32 3, %v970_v21  ;;  %vm662_vm13 = vcmp.lt.s32.totalorder %v661_v36, 2  ;;  %vm663_vm15 = vcmp.eq.s32.totalorder %v661_v36, 0 }
 0x133   :  { %v497_v29 = vadd.f32 1.0, %v496_v43  ;;  %v504_v31 = vadd.f32 1.0, %v503_v22  ;;  %vm666_vm0 = vcmp.eq.s32.totalorder %v661_v36, 2 }
 0x134   :  { %vm1026_vm9 = vcmp.lt.s32.totalorder %v1025_v33, 0  ;;  %vm972_vm14 = vcmp.lt.s32.totalorder %v971_v9, 2 }
 0x135   :  { %v505_v20 = vmul.f32 %v504_v31, %v489_v38  ;;  %v513_v58 = vxor.u32 2147483648, %v497_v29  ;;  %v626_v25 = vsel %vm1026_vm9, 0, %v1025_v33 }
 0x136   :  { %v627_v49 = vsub.s32 32, %v626_v25  ;;  %v631_v52 = vsub.s32 4294967266, %v626_v25  ;;  %v628_v17 = vshll.u32 %v619_v6, %v626_v25 }
 0x137   :  { %v510_v32 = vxor.u32 2147483648, %v505_v20  ;;  %v514_v59 = vsel %vm512_vm4, %v513_v58, %v505_v20  ;;  %v823_v41 = vsel %vm821_vm7, %v513_v58, %v505_v20  ;;  %v986_v20 = vpop.permute.xlu1 %985 }
 0x138   :  { %v629_v45 = vshrl.u32 %v611_v48, %v627_v49  ;;  %v632_v57 = vadd.s32 127, %v631_v52  ;;  %v997_v58 = vsel %vm995_vm8, %v986_v20, %v992_v63 }
 0x139   :  { %v511_v35 = vsel %vm509_vm3, %v497_v29, %v510_v32  ;;  %v820_v62 = vsel %vm818_vm6, %v497_v29, %v510_v32  ;;  %vm660_vm3 = vweird.f32 %v1340_v50 }
 0x13a   :  { %v515_v37 = vsel %vm508_vm2, %v511_v35, %v514_v59  ;;  %v824_v40 = vsel %vm817_vm5, %v820_v62, %v823_v41  ;;  %v630_v7 = vor.u32 %v629_v45, %v628_v17  ;;  %v633_v1 = vshll.u32 %v632_v57, 23 }
 0x13b   :  { %v825_v46 = vsel %vm506_vm1, nan, %v824_v40  ;;  %v516_v30 = vsel %vm506_vm1, nan, %v515_v37  ;;  %vm973_vm1 = vcmp.eq.s32.totalorder %v971_v9, 0  ;;  %vm976_vm2 = vcmp.eq.s32.totalorder %v971_v9, 2 }
 0x13c   :  { %v1001_v0 = vmul.f32 %v996_v24, %v825_v46  ;;  %v999_v23 = vmul.f32 %v516_v30, %v1216_v47  ;;  %v634_v54 = vor.u32 4788187, %v633_v1  ;;  %v637_v56 = vcvt.s32.f32 %v630_v7 }
 0x13e   :  { %v1003_v38 = vmul.f32 %v1001_v0, %v1443_v26  ;;  %v635_v14 = vand.u32 2147483647, %v634_v54 }
 0x140   :  { %v1005_v55 = vadd.f32 %v1003_v38, %v999_v23  ;;  %v638_v61 = vmul.f32 %v637_v56, %v635_v14 }
 0x142   :  { %1008 = vst.msk [vmem:[%s1469_s4] sm:$0xff] %vm1007_vm11, %v1005_v55  ;;  %v639_v2 = vxor.u32 2147483648, %v638_v61 }
 0x144   :  { %v640_v47 = vsel %vm519_vm10, %v639_v2, %v638_v61 }
 0x145   :  { %v643_v44 = vsel %vm518_vm12, %v1340_v50, %v640_v47 }
 0x146   :  { %v645_v16 = vmul.f32 %v643_v44, %v643_v44 }
 0x148   :  { %v646_v4 = vmul.f32 -0.001358992, %v645_v16  ;;  %v653_v8 = vmul.f32 -0.00019511016, %v645_v16 }
 0x14a   :  { %v647_v11 = vadd.f32 0.041655596, %v646_v4  ;;  %v654_v13 = vadd.f32 0.008332121, %v653_v8 }
 0x14c   :  { %v648_v60 = vmul.f32 %v647_v11, %v645_v16  ;;  %v655_v42 = vmul.f32 %v654_v13, %v645_v16 }
 0x14e   :  { %v649_v19 = vadd.f32 -0.4999988, %v648_v60  ;;  %v656_v27 = vadd.f32 -0.16666654, %v655_v42 }
 0x150   :  { %v650_v43 = vmul.f32 %v649_v19, %v645_v16  ;;  %v657_v12 = vmul.f32 %v656_v27, %v645_v16 }
 0x152   :  { %v651_v22 = vadd.f32 1.0, %v650_v43  ;;  %v658_v6 = vadd.f32 1.0, %v657_v12 }
 0x154   :  { %v659_v29 = vmul.f32 %v658_v6, %v643_v44  ;;  %v667_v31 = vxor.u32 2147483648, %v651_v22 }
 0x156   :  { %v664_v18 = vxor.u32 2147483648, %v659_v29  ;;  %v668_v15 = vsel %vm666_vm0, %v667_v31, %v659_v29  ;;  %v978_v59 = vsel %vm976_vm2, %v667_v31, %v659_v29 }
 0x158   :  { %v665_v28 = vsel %vm663_vm15, %v651_v22, %v664_v18  ;;  %v975_v32 = vsel %vm973_vm1, %v651_v22, %v664_v18 }
 0x159   :  { %v669_v33 = vsel %vm662_vm13, %v665_v28, %v668_v15  ;;  %v979_v35 = vsel %vm972_vm14, %v975_v32, %v978_v59 }
 0x15a   :  { %v670_v39 = vsel %vm660_vm3, nan, %v669_v33  ;;  %v980_v62 = vsel %vm660_vm3, nan, %v979_v35 }
 0x15b   :  { %v1002_v41 = vmul.f32 %v997_v58, %v980_v62  ;;  %v1000_v34 = vmul.f32 %v670_v39, %v1226_v51 }
 0x15d   :  { %v1004_v37 = vmul.f32 %v1002_v41, %v1443_v26 }
 0x15f   :  { %v1006_v40 = vadd.f32 %v1004_v37, %v1000_v34 }
 0x161   :  { %1009 = vst.msk [vmem:[%s1469_s4 + $0x8] sm:$0xff] %vm1007_vm11, %v1006_v40 }

// kernel: _forward_impl.7
= control target key start
LH: loop header
LB: loop body
LE: loop exit
PB: predicated region body
PF: predicated region fallthrough
CT: control target
= control target key end

     0   :  { %s2336_s24 = smov 0   ;;  %s2966_s0 = inlined_call_operand.vmem [shape: f32[16,2,32], index: 0, kind: input, shape index: {}]   ;;  %s2967_s1 = inlined_call_operand.vmem [shape: f32[32,96], index: 1, kind: input, shape index: {}]   ;;  %s2968_s2 = inlined_call_operand.vmem [shape: f32[1,96], index: 2, kind: input, shape index: {}]   ;;  %s2969_s3 = inlined_call_operand.vmem [shape: f32[32,32], index: 3, kind: input, shape index: {}]   ;;  %s2970_s4 = inlined_call_operand.vmem [shape: f32[1,32], index: 4, kind: input, shape index: {}, may-alias: {4,6}]   ;;  %s2971_s5 = inlined_call_operand.vmem [shape: f32[1,32], index: 5, kind: input, shape index: {}]   ;;  %s2972_s6 = inlined_call_operand.vmem [shape: f32[1,32], index: 6, kind: input, shape index: {}, may-alias: {4,6}]   ;;  %s2973_s7 = inlined_call_operand.vmem [shape: f32[16,2,32], index: 7, kind: output, shape index: {}]  }
   0x1 LB: > { %s2101_s25 = sadd.s32 4294967295, %s2287_s24   ;;  %p2105_p0 = scmp.ge.s32.totalorder %s2287_s24, 1  ;;  %s2287_s24 = sphi %s2336_s24, %s17_s24  }
   0x2   : > { %p238_p1 = scmp.lt.s32.totalorder %s2287_s24, 3 }
   0x4   : > { %p239_p2 = pnand %p2105_p0, %p238_p1 }
   0x5   : > { %s2106_s30 = sshll.u32 (!%p239_p2), %s2101_s25, 3  ;;  %s2289_s18 = smov (!%p239_p2), 96  }
   0x6   : > { %242 = sbr.rel (%p239_p2) target bundleno = 1862 (0x746), region = 48  ;;  %p271_p3 = scmp.lt.s32.totalorder (!%p239_p2), %s2106_s30, 15 }
   0x7   : > { %s2290_s19 = smov (!%p239_p2), 64   ;;  %s2291_s20 = smov (!%p239_p2), 112  }
   0x8   : > { %s2292_s21 = smov (!%p239_p2), 80   ;;  %s2293_s22 = smov (!%p239_p2), 48  }
   0x9   : > { %s2294_s23 = smov (!%p239_p2), 16  }
   0xb   : > { %v293_v0 = vld [vmem:[%s2967_s1 + $0x18] sm:$0xff]  ;;  %v292_v1 = vld [vmem:[%s2967_s1 + $0x10] sm:$0xff]  ;;  %v291_v2 = vld [vmem:[%s2967_s1 + $0x8] sm:$0xff]  ;;  %s2977_s30 = smov (!%p271_p3, %s2106_s30), 15  ;;  %vm323_vm0 = vcmask 261120   ;;  %vm363_vm1 = vcmask 130048  }
   0xc   : > { %340 = vmatpush.msra.mxu0 %v293_v0  ;;  %v290_v3 = vld [vmem:[%s2967_s1] sm:$0xff]  ;;  %s2107_s12 = sshll.u32 %s2977_s30, 1  ;;  %vm793_vm2 = vcmask 1041408   ;;  %vm592_vm3 = vcmask 9216   ;;  %vm789_vm8 = vcmask 15360  }
   0xd   : > { %s274_s15 = scalar_lea.vmem %s2966_s0, %s2107_s12  ;;  %v2195_v14 = vld [vmem:[%s2968_s2] ss:$0 sm:$0xff] }
   0xe   : > { %341 = vmatpush.msra.mxu0 %v292_v1  ;;  %v2364_v4 = vld [vmem:[%s274_s15] sm:$0x3]  ;;  %v2366_v5 = vld [vmem:[%s274_s15 + $0x2] sm:$0x3]  ;;  %v2368_v6 = vld [vmem:[%s274_s15 + $0x4] sm:$0x3] }
   0xf   : > { %v2370_v7 = vld [vmem:[%s274_s15 + $0x6] sm:$0x3]  ;;  %306 = vst [vmem:[#allocation1] ss:$4 sm:$0xff] %v2364_v4  ;;  %v2374_v8 = vld [vmem:[%s274_s15 + $0x8] sm:$0x3] }
  0x10   : > { %342 = vmatpush.msra.mxu0 %v291_v2  ;;  %308 = vst [vmem:[#allocation1 + $0x1] ss:$4 sm:$0xff] %v2366_v5  ;;  %v2377_v9 = vld [vmem:[%s274_s15 + $0xa] sm:$0x3]  ;;  %v2380_v10 = vld [vmem:[%s274_s15 + $0xc] sm:$0x3] }
  0x11   : > { %310 = vst [vmem:[#allocation1 + $0x2] ss:$4 sm:$0xff] %v2368_v6  ;;  %v2382_v11 = vld [vmem:[%s274_s15 + $0xe] sm:$0x3] }
  0x12   : > { %343 = vmatpush.msra.mxu0 %v290_v3  ;;  %312 = vst [vmem:[#allocation1 + $0x3] ss:$4 sm:$0xff] %v2370_v7 }
  0x13   : > { %314 = vst [vmem:[#allocation1 + $0x20] ss:$4 sm:$0xff] %v2374_v8 }
  0x14   : > { %316 = vst [vmem:[#allocation1 + $0x21] ss:$4 sm:$0xff] %v2377_v9 }
  0x15   : > { %318 = vst [vmem:[#allocation1 + $0x22] ss:$4 sm:$0xff] %v2380_v10 }
  0x16   : > { %320 = vst [vmem:[#allocation1 + $0x23] ss:$4 sm:$0xff] %v2382_v11 }
  0x19   : > { %v321_v12 = vld.sshfl [vmem:[#allocation1] sm:$0xff pattern:$0x73625140] }
  0x1a   : > { %2110 = vmatmul.msk.f32.vlgmr.msra.gmra.mxu0 %vm323_vm0, %v321_v12 }
  0x1d   : > { %v322_v13 = vld.sshfl [vmem:[#allocation1 + $0x20] sm:$0xff pattern:$0x73625140] }
  0x22   : > { %2111 = vmatmul.msk.f32.gmra.mxu0 %vm323_vm0, %v322_v13 }
  0x97   : > { %v345_v15 = vpop.f32.mrf.mxu0 }
  0x98   : > { %v2393_v16 = vadd.f32 %v2195_v14, %v345_v15 }
  0x9a   : > { %359 = vst [vmem:[#allocation1] ss:$4 sm:$0xff] %v2393_v16  ;;  %v2397_v17 = vrot.slane %v2393_v16, 2  ;;  %v2401_v19 = vrot.slane %v2393_v16, 4  ;;  %v2405_v21 = vrot.slane %v2393_v16, 6 }
  0x9f   : > { %v348_v23 = vpop.f32.mrf.mxu0 }
  0xa0   : > { %v2408_v24 = vadd.f32 %v2195_v14, %v348_v23 }
  0xa1   : > { %v360_v18 = vld.sshfl [vmem:[#allocation1] sm:$0xff pattern:$0x73625140] }
  0xa2   : > { %388 = vst [vmem:[#allocation1] ss:$4 sm:$0xff] %v2397_v17  ;;  %v2412_v26 = vrot.slane %v2408_v24, 2  ;;  %v2416_v28 = vrot.slane %v2408_v24, 4  ;;  %v2420_v30 = vrot.slane %v2408_v24, 6 }
  0xa9   : > { %v389_v20 = vld.sshfl [vmem:[#allocation1] sm:$0xff pattern:$0x73625140] }
  0xaa   : > { %416 = vst [vmem:[#allocation1] ss:$4 sm:$0xff] %v2401_v19  ;;  %390 = vrot.lane.b32.xlu0 %v389_v20, %s2289_s18 }
  0xb1   : > { %v417_v22 = vld.sshfl [vmem:[#allocation1] sm:$0xff pattern:$0x73625140] }
  0xb2   : > { %444 = vst [vmem:[#allocation1] ss:$4 sm:$0xff] %v2405_v21  ;;  %361 = vrot.lane.b32.xlu0 %v360_v18, %s2289_s18 }
  0xb9   : > { %v445_v25 = vld.sshfl [vmem:[#allocation1] sm:$0xff pattern:$0x73625140] }
  0xba   : > { %472 = vst [vmem:[#allocation1] ss:$4 sm:$0xff] %v2408_v24 }
  0xc1   : > { %v473_v27 = vld.sshfl [vmem:[#allocation1] sm:$0xff pattern:$0x73625140] }
  0xc2   : > { %500 = vst [vmem:[#allocation1] ss:$4 sm:$0xff] %v2412_v26  ;;  %474 = vrot.lane.b32.xlu1 %v473_v27, %s2289_s18 }
  0xc9   : > { %v501_v29 = vld.sshfl [vmem:[#allocation1] sm:$0xff pattern:$0x73625140] }
  0xca   : > { %528 = vst [vmem:[#allocation1] ss:$4 sm:$0xff] %v2416_v28  ;;  %446 = vrot.lane.b32.xlu1 %v445_v25, %s2289_s18  ;;  %502 = vrot.lane.b32.xlu0 %v501_v29, %s2289_s18 }
  0xd1   : > { %v529_v31 = vld.sshfl [vmem:[#allocation1] sm:$0xff pattern:$0x73625140] }
  0xd2   : > { %556 = vst [vmem:[#allocation1] ss:$4 sm:$0xff] %v2420_v30  ;;  %530 = vrot.lane.b32.xlu1 %v529_v31, %s2289_s18 }
  0xd9   : > { %v557_v32 = vld.sshfl [vmem:[#allocation1] sm:$0xff pattern:$0x73625140] }
  0xda   : > { %785 = vst [vmem:[#allocation1] ss:$4 sm:$0xff] %v2393_v16  ;;  %558 = vrot.lane.b32.xlu2 %v557_v32, %s2289_s18 }
  0xe1   : > { %v786_v33 = vld.sshfl [vmem:[#allocation1] sm:$0xff pattern:$0x73625140] }
  0xe2   : > { %816 = vst [vmem:[#allocation1] ss:$4 sm:$0xff] %v2397_v17  ;;  %418 = vrot.lane.b32.xlu2 %v417_v22, %s2289_s18  ;;  %787 = vrot.lane.b32.xlu0 %v786_v33, %s2290_s19 }
  0xe9   : > { %v817_v34 = vld.sshfl [vmem:[#allocation1] sm:$0xff pattern:$0x73625140] }
  0xea   : > { %845 = vst [vmem:[#allocation1] ss:$4 sm:$0xff] %v2401_v19  ;;  %818 = vrot.lane.b32.xlu1 %v817_v34, %s2290_s19 }
  0xf1   : > { %v846_v35 = vld.sshfl [vmem:[#allocation1] sm:$0xff pattern:$0x73625140] }
  0xf2   : > { %874 = vst [vmem:[#allocation1] ss:$4 sm:$0xff] %v2405_v21  ;;  %847 = vrot.lane.b32.xlu0 %v846_v35, %s2290_s19 }
  0xf9   : > { %v875_v36 = vld.sshfl [vmem:[#allocation1] sm:$0xff pattern:$0x73625140] }
  0xfa   : > { %903 = vst [vmem:[#allocation1] ss:$4 sm:$0xff] %v2408_v24  ;;  %876 = vrot.lane.b32.xlu1 %v875_v36, %s2290_s19 }
 0x101   : > { %v904_v37 = vld.sshfl [vmem:[#allocation1] sm:$0xff pattern:$0x73625140] }
 0x102   : > { %932 = vst [vmem:[#allocation1] ss:$4 sm:$0xff] %v2412_v26  ;;  %905 = vrot.lane.b32.xlu0 %v904_v37, %s2290_s19 }
 0x109   : > { %v933_v38 = vld.sshfl [vmem:[#allocation1] sm:$0xff pattern:$0x73625140] }
 0x10a   : > { %961 = vst [vmem:[#allocation1] ss:$4 sm:$0xff] %v2416_v28  ;;  %934 = vrot.lane.b32.xlu2 %v933_v38, %s2290_s19 }
 0x111   : > { %v962_v39 = vld.sshfl [vmem:[#allocation1] sm:$0xff pattern:$0x73625140] }
 0x112   : > { %990 = vst [vmem:[#allocation1] ss:$4 sm:$0xff] %v2420_v30  ;;  %963 = vrot.lane.b32.xlu1 %v962_v39, %s2290_s19 }
 0x119   : > { %v991_v40 = vld.sshfl [vmem:[#allocation1] sm:$0xff pattern:$0x73625140] }
 0x11a   : > { %992 = vrot.lane.b32.xlu2 %v991_v40, %s2290_s19  ;;  %1019 = vst [vmem:[#allocation1] ss:$4 sm:$0xff] %v2393_v16 }
 0x11c   : > { %v391_v41 = vpop.permute.xlu0 %390 }
 0x11d   : > { %2114 = vmatpush.xpose.msk.msra.mxu2 %vm363_vm1, %v391_v41 }
 0x120   : > { %2115 = vmatmul.msk.f32.vlgmr.msra.gmra.mxu2 %vm363_vm1, %v2397_v17 }
 0x121   : > { %v1020_v42 = vld.sshfl [vmem:[#allocation1] sm:$0xff pattern:$0x73625140] }
 0x122   : > { %1021 = vrot.lane.b32.xlu1 %v1020_v42, %s2291_s20  ;;  %1023 = vst [vmem:[#allocation1] ss:$4 sm:$0xff] %v2393_v16 }
 0x124   : > { %v362_v43 = vpop.permute.xlu0 %361 }
 0x125   : > { %2112 = vmatpush.xpose.msk.msra.mxu1 %vm363_vm1, %v362_v43 }
 0x128   : > { %2113 = vmatmul.msk.f32.vlgmr.msra.gmra.mxu1 %vm363_vm1, %v2393_v16 }
 0x129   : > { %v1024_v44 = vld.sshfl [vmem:[#allocation1] sm:$0xff pattern:$0x73625140] }
 0x12a   : > { %1025 = vrot.lane.b32.xlu1 %v1024_v44, %s2292_s21  ;;  %1051 = vst [vmem:[#allocation1] ss:$4 sm:$0xff] %v2397_v17 }
 0x131   : > { %v2442_v45 = vld.sshfl [vmem:[#allocation1] sm:$0xff pattern:$0x73625140] }
 0x132   : > { %1055 = vst [vmem:[#allocation1] ss:$4 sm:$0xff] %v2397_v17 }
 0x134   : > { %v475_v46 = vpop.permute.xlu1 %474  ;;  %v559_v47 = vpop.permute.xlu2 %558 }
 0x135   : > { %2120 = vmatpush.xpose.msk.msrb.mxu2 %vm363_vm1, %v475_v46 }
 0x138   : > { %2121 = vmatmul.msk.f32.vlgmr.msrb.gmra.mxu2 %vm363_vm1, %v2408_v24 }
 0x139   : > { %2126 = vmatpush.xpose.msk.msra.mxu2 %vm363_vm1, %v559_v47  ;;  %v2449_v48 = vld.sshfl [vmem:[#allocation1] sm:$0xff pattern:$0x73625140] }
 0x13a   : > { %1083 = vst [vmem:[#allocation1] ss:$4 sm:$0xff] %v2401_v19 }
 0x13c   : > { %v447_v49 = vpop.permute.xlu1 %446  ;;  %v503_v50 = vpop.permute.xlu0 %502 }
 0x13d   : > { %v419_v51 = vpop.permute.xlu2 %418  ;;  %2118 = vmatpush.xpose.msk.msrb.mxu1 %vm363_vm1, %v447_v49  ;;  %2122 = vmatpush.xpose.msk.msra.mxu3 %vm363_vm1, %v503_v50 }
 0x13e   : > { %2116 = vmatpush.xpose.msk.msrb.mxu0 %vm363_vm1, %v419_v51 }
 0x140   : > { %2119 = vmatmul.msk.f32.vlgmr.msrb.gmra.mxu1 %vm363_vm1, %v2405_v21  ;;  %2123 = vmatmul.msk.f32.vlgmr.msra.gmra.mxu3 %vm363_vm1, %v2412_v26 }
 0x141   : > { %2117 = vmatmul.msk.f32.vlgmr.msrb.gmra.mxu0 %vm363_vm1, %v2401_v19  ;;  %2127 = vmatmul.msk.f32.vlgmr.msra.gmra.mxu2 %vm363_vm1, %v2420_v30  ;;  %v2463_v52 = vld.sshfl [vmem:[#allocation1] sm:$0xff pattern:$0x73625140] }
 0x142   : > { %1087 = vst [vmem:[#allocation1] ss:$4 sm:$0xff] %v2401_v19 }
 0x144   : > { %v531_v53 = vpop.permute.xlu1 %530 }
 0x145   : > { %2124 = vmatpush.xpose.msk.msra.mxu1 %vm363_vm1, %v531_v53 }
 0x148   : > { %2125 = vmatmul.msk.f32.vlgmr.msra.gmra.mxu1 %vm363_vm1, %v2416_v28 }
 0x149   : > { %v2469_v54 = vld.sshfl [vmem:[#allocation1] sm:$0xff pattern:$0x73625140] }
 0x14a   : > { %1115 = vst [vmem:[#allocation1] ss:$4 sm:$0xff] %v2405_v21 }
 0x151   : > { %v1116_v55 = vld.sshfl [vmem:[#allocation1] sm:$0xff pattern:$0x73625140] }
 0x152   : > { %1117 = vrot.lane.b32.xlu0 %v1116_v55, %s2291_s20  ;;  %1119 = vst [vmem:[#allocation1] ss:$4 sm:$0xff] %v2405_v21 }
 0x154   : > { %v788_v56 = vpop.permute.xlu0 %787 }
 0x155   : > { %2128 = vmatpush.msk.msrb.mxu3 %vm793_vm2, %v788_v56 }
 0x159   : > { %v1120_v57 = vld.sshfl [vmem:[#allocation1] sm:$0xff pattern:$0x73625140] }
 0x15a   : > { %1121 = vrot.lane.b32.xlu0 %v1120_v57, %s2292_s21  ;;  %1147 = vst [vmem:[#allocation1] ss:$4 sm:$0xff] %v2408_v24 }
 0x15c   : > { %v819_v58 = vpop.permute.xlu1 %818 }
 0x15d   : > { %2130 = vmatpush.msk.msra.mxu0 %vm793_vm2, %v819_v58 }
 0x161   : > { %v2478_v59 = vld.sshfl [vmem:[#allocation1] sm:$0xff pattern:$0x73625140] }
 0x162   : > { %1151 = vst [vmem:[#allocation1] ss:$4 sm:$0xff] %v2408_v24 }
 0x164   : > { %v848_v60 = vpop.permute.xlu0 %847  ;;  %v935_v61 = vpop.permute.xlu2 %934 }
 0x165   : > { %2132 = vmatpush.msk.msrb.mxu1 %vm793_vm2, %v848_v60  ;;  %2138 = vmatpush.msk.msrb.mxu0 %vm793_vm2, %v935_v61 }
 0x169   : > { %v1152_v62 = vld.sshfl [vmem:[#allocation1] sm:$0xff pattern:$0x73625140] }
 0x16a   : > { %1153 = vrot.lane.b32.xlu0 %v1152_v62, %s2292_s21  ;;  %1179 = vst [vmem:[#allocation1] ss:$4 sm:$0xff] %v2412_v26 }
 0x16c   : > { %v877_v63 = vpop.permute.xlu1 %876 }
 0x16d   : > { %2134 = vmatpush.msk.msrb.mxu2 %vm793_vm2, %v877_v63 }
 0x171   : > { %v2486_v0 = vld.sshfl [vmem:[#allocation1] sm:$0xff pattern:$0x73625140] }
 0x172   : > { %1183 = vst [vmem:[#allocation1] ss:$4 sm:$0xff] %v2412_v26 }
 0x174   : > { %v906_v1 = vpop.permute.xlu0 %905  ;;  %v993_v2 = vpop.permute.xlu2 %992 }
 0x175   : > { %2136 = vmatpush.msk.msra.mxu3 %vm793_vm2, %v906_v1  ;;  %2142 = vmatpush.msk.msra.mxu2 %vm793_vm2, %v993_v2 }
 0x179   : > { %v2491_v3 = vld.sshfl [vmem:[#allocation1] sm:$0xff pattern:$0x73625140] }
 0x17a   : > { %1211 = vst [vmem:[#allocation1] ss:$4 sm:$0xff] %v2416_v28 }
 0x181   : > { %v2494_v12 = vld.sshfl [vmem:[#allocation1] sm:$0xff pattern:$0x73625140] }
 0x182   : > { %1215 = vst [vmem:[#allocation1] ss:$4 sm:$0xff] %v2416_v28 }
 0x184   : > { %v964_v13 = vpop.permute.xlu1 %963 }
 0x185   : > { %2140 = vmatpush.msk.msra.mxu1 %vm793_vm2, %v964_v13 }
 0x189   : > { %v2498_v14 = vld.sshfl [vmem:[#allocation1] sm:$0xff pattern:$0x73625140] }
 0x18a   : > { %1243 = vst [vmem:[#allocation1] ss:$4 sm:$0xff] %v2420_v30 }
 0x191   : > { %v1244_v15 = vld.sshfl [vmem:[#allocation1] sm:$0xff pattern:$0x73625140] }
 0x192   : > { %1247 = vst [vmem:[#allocation1] ss:$4 sm:$0xff] %v2420_v30 }
 0x194   : > { %v2543_v56 = vpop.permute.xlu1 %1021 }
 0x199   : > { %v1248_v18 = vld.sshfl [vmem:[#allocation1] sm:$0xff pattern:$0x73625140] }
 0x19a   : > { %1475 = vst [vmem:[#allocation1] ss:$4 sm:$0xff] %v2393_v16 }
 0x19c   : > { %v2551_v60 = vpop.permute.xlu1 %1025 }
 0x1a1   : > { %v2503_v20 = vld.sshfl [vmem:[#allocation1] sm:$0xff pattern:$0x73625140] }
 0x1a2   : > { %1504 = vst [vmem:[#allocation1] ss:$4 sm:$0xff] %v2397_v17 }
 0x1a3   : > { %v413_v31 = vpop.f32.mrf.mxu2 }
 0x1a5   : > { %v385_v22 = vpop.f32.mrf.mxu1 }
 0x1a6   : > { %v584_v23 = vmul.f32 0.25, %v385_v22 }
 0x1a8   : > { %v593_v25 = vsel %vm592_vm3, %v584_v23, -inf }
 0x1a9   : > { %594 = vmax.xlane.f32.xlu2 %v593_v25  ;;  %v2507_v27 = vld.sshfl [vmem:[#allocation1] sm:$0xff pattern:$0x73625140] }
 0x1aa   : > { %1533 = vst [vmem:[#allocation1] ss:$4 sm:$0xff] %v2401_v19 }
 0x1b1   : > { %v2510_v29 = vld.sshfl [vmem:[#allocation1] sm:$0xff pattern:$0x73625140] }
 0x1b2   : > { %1562 = vst [vmem:[#allocation1] ss:$4 sm:$0xff] %v2405_v21 }
 0x1b9   : > { %v2513_v16 = vld.sshfl [vmem:[#allocation1] sm:$0xff pattern:$0x73625140] }
 0x1ba   : > { %1591 = vst [vmem:[#allocation1] ss:$4 sm:$0xff] %v2408_v24 }
 0x1bb   : > { %v497_v17 = vpop.f32.mrf.mxu2 }
 0x1bc   : > { %v588_v32 = vmul.f32 0.25, %v497_v17 }
 0x1bd   : > { %v469_v37 = vpop.f32.mrf.mxu1 }
 0x1be   : > { %v441_v33 = vpop.f32.mrf.mxu0  ;;  %v605_v34 = vsel %vm592_vm3, %v588_v32, -inf  ;;  %v2522_v24 = vmul.f32 0.25, %v469_v37 }
 0x1bf   : > { %v586_v35 = vmul.f32 0.25, %v441_v33  ;;  %606 = vmax.xlane.f32.xlu1 %v605_v34 }
 0x1c0   : > { %v602_v40 = vsel %vm592_vm3, %v2522_v24, -inf }
 0x1c1   : > { %v599_v36 = vsel %vm592_vm3, %v586_v35, -inf  ;;  %1249 = vrot.lane.b32.xlu2 %v1248_v18, %s2292_s21  ;;  %v2519_v19 = vld.sshfl [vmem:[#allocation1] sm:$0xff pattern:$0x73625140] }
 0x1c2   : > { %600 = vmax.xlane.f32.xlu0 %v599_v36  ;;  %1620 = vst [vmem:[#allocation1] ss:$4 sm:$0xff] %v2412_v26  ;;  %v585_v26 = vmul.f32 0.25, %v413_v31 }
 0x1c3   : > { %v525_v21 = vpop.f32.mrf.mxu3 }
 0x1c4   : > { %v589_v38 = vmul.f32 0.25, %v525_v21  ;;  %v596_v43 = vsel %vm592_vm3, %v585_v26, -inf  ;;  %v581_v49 = vpop.f32.mrf.mxu2 }
 0x1c5   : > { %v553_v44 = vpop.f32.mrf.mxu1 }
 0x1c6   : > { %v608_v39 = vsel %vm592_vm3, %v589_v38, -inf  ;;  %v590_v46 = vmul.f32 0.25, %v553_v44 }
 0x1c7   : > { %609 = vmax.xlane.f32.xlu1 %v608_v39 }
 0x1c8   : > { %v611_v47 = vsel %vm592_vm3, %v590_v46, -inf }
 0x1c9   : > { %v2527_v41 = vld.sshfl [vmem:[#allocation1] sm:$0xff pattern:$0x73625140] }
 0x1ca   : > { %603 = vmax.xlane.f32.xlu0 %v602_v40  ;;  %1649 = vst [vmem:[#allocation1] ss:$4 sm:$0xff] %v2416_v28  ;;  %v591_v28 = vmul.f32 0.25, %v581_v49 }
 0x1cc   : > { %v614_v50 = vsel %vm592_vm3, %v591_v28, -inf }
 0x1d1   : > { %v2530_v42 = vld.sshfl [vmem:[#allocation1] sm:$0xff pattern:$0x73625140] }
 0x1d2   : > { %1678 = vst [vmem:[#allocation1] ss:$4 sm:$0xff] %v2420_v30  ;;  %v2541_v30 = vpop.permute.xlu0 %1117 }
 0x1da   : > { %v2545_v57 = vpop.permute.xlu0 %1121 }
 0x1de   : > { %1245 = vrot.lane.b32.xlu0 %v1244_v15, %s2291_s20 }
 0x1e0   : > { %1149 = vrot.lane.b32.xlu1 %v2478_v59, %s2291_s20 }
 0x1e2   : > { %v2553_v61 = vpop.permute.xlu0 %1153 }
 0x1ea   : > { %597 = vmax.xlane.f32.xlu2 %v596_v43 }
 0x1f2   : > { %612 = vmax.xlane.f32.xlu2 %v611_v47 }
 0x1fa   : > { %615 = vmax.xlane.f32.xlu2 %v614_v50 }
 0x212   : > { %1057 = vrot.lane.b32.xlu2 %v2449_v48, %s2292_s21 }
 0x21c   : > { %v595_v51 = vpop.xlane.xlu2 %594 }
 0x21d   : > { %v617_v53 = vsub.f32 %v584_v23, %v595_v51 }
 0x21f   : > { %v625_v55 = vmul.f32 1.442695, %v617_v53 }
 0x221   : > { %2199 = vpow2.f32 %v625_v55 }
 0x224   : > { %v2567_v34 = vpop.permute.xlu2 %1249 }
 0x227   : > { %v2547_v58 = vpop.eup %2199 }
 0x228   : > { %v641_v59 = vsel %vm592_vm3, %v2547_v58, 0.0 }
 0x229   : > { %642 = vadd.xlane.f32.xlu0 %v641_v59 }
 0x232   : > { %v607_v48 = vpop.xlane.xlu1 %606 }
 0x233   : > { %v621_v1 = vsub.f32 %v588_v32, %v607_v48 }
 0x235   : > { %v601_v62 = vpop.xlane.xlu0 %600  ;;  %v633_v13 = vmul.f32 1.442695, %v621_v1 }
 0x236   : > { %v619_v63 = vsub.f32 %v586_v35, %v601_v62 }
 0x238   : > { %v629_v2 = vmul.f32 1.442695, %v619_v63 }
 0x23a   : > { %2201 = vpow2.f32 %v629_v2  ;;  %v610_v15 = vpop.xlane.xlu1 %609 }
 0x23b   : > { %2203 = vpow2.f32 %v633_v13  ;;  %v622_v22 = vsub.f32 %v589_v38, %v610_v15 }
 0x23d   : > { %v635_v25 = vmul.f32 1.442695, %v622_v22  ;;  %v604_v35 = vpop.xlane.xlu0 %603 }
 0x23e   : > { %v620_v21 = vsub.f32 %v2522_v24, %v604_v35 }
 0x23f   : > { %2205 = vpow2.f32 %v635_v25 }
 0x240   : > { %v2555_v18 = vpop.eup %2201  ;;  %v631_v39 = vmul.f32 1.442695, %v620_v21 }
 0x241   : > { %v647_v23 = vsel %vm592_vm3, %v2555_v18, 0.0  ;;  %v2559_v31 = vpop.eup %2203 }
 0x242   : > { %648 = vadd.xlane.f32.xlu2 %v647_v23  ;;  %v653_v17 = vsel %vm592_vm3, %v2559_v31, 0.0 }
 0x245   : > { %v2563_v32 = vpop.eup %2205 }
 0x246   : > { %v656_v33 = vsel %vm592_vm3, %v2563_v32, 0.0 }
 0x24a   : > { %654 = vadd.xlane.f32.xlu2 %v653_v17 }
 0x252   : > { %657 = vadd.xlane.f32.xlu2 %v656_v33 }
 0x25d   : > { %v598_v36 = vpop.xlane.xlu2 %597 }
 0x25e   : > { %v618_v37 = vsub.f32 %v585_v26, %v598_v36 }
 0x260   : > { %v627_v38 = vmul.f32 1.442695, %v618_v37 }
 0x262   : > { %2207 = vpow2.f32 %v627_v38 }
 0x263   : > { %2209 = vpow2.f32 %v631_v39 }
 0x265   : > { %v613_v40 = vpop.xlane.xlu2 %612 }
 0x266   : > { %v623_v43 = vsub.f32 %v590_v46, %v613_v40 }
 0x268   : > { %v2570_v44 = vpop.eup %2207  ;;  %v637_v47 = vmul.f32 1.442695, %v623_v43 }
 0x269   : > { %v644_v49 = vsel %vm592_vm3, %v2570_v44, 0.0  ;;  %v2574_v51 = vpop.eup %2209 }
 0x26a   : > { %2211 = vpow2.f32 %v637_v47  ;;  %645 = vadd.xlane.f32.xlu1 %v644_v49  ;;  %v650_v55 = vsel %vm592_vm3, %v2574_v51, 0.0 }
 0x26d   : > { %v616_v50 = vpop.xlane.xlu2 %615 }
 0x26e   : > { %v624_v26 = vsub.f32 %v591_v28, %v616_v50  ;;  %v2596_v28 = vpop.permute.xlu0 %1245 }
 0x270   : > { %v2576_v53 = vpop.eup %2211  ;;  %v639_v24 = vmul.f32 1.442695, %v624_v26 }
 0x271   : > { %v659_v46 = vsel %vm592_vm3, %v2576_v53, 0.0 }
 0x272   : > { %2213 = vpow2.f32 %v639_v24  ;;  %651 = vadd.xlane.f32.xlu1 %v650_v55  ;;  %660 = vadd.xlane.f32.xlu2 %v659_v46 }
 0x275   : > { %v2604_v13 = vpop.permute.xlu2 %1057 }
 0x278   : > { %v2582_v59 = vpop.eup %2213 }
 0x279   : > { %v662_v48 = vsel %vm592_vm3, %v2582_v59, 0.0 }
 0x27a   : > { %663 = vadd.xlane.f32.xlu0 %v662_v48 }
 0x28a   : > { %1085 = vrot.lane.b32.xlu2 %v2463_v52, %s2291_s20 }
 0x28b   : > { %1089 = vrot.lane.b32.xlu1 %v2469_v54, %s2292_s21 }
 0x28e   : > { %1053 = vrot.lane.b32.xlu0 %v2442_v45, %s2291_s20 }
 0x292   : > { %1181 = vrot.lane.b32.xlu2 %v2486_v0, %s2291_s20 }
 0x293   : > { %1185 = vrot.lane.b32.xlu1 %v2491_v3, %s2292_s21 }
 0x296   : > { %1217 = vrot.lane.b32.xlu0 %v2498_v14, %s2292_s21 }
 0x29a   : > { %1477 = vrot.lane.b32.xlu2 %v2503_v20, %s2293_s22 }
 0x29b   : > { %1213 = vrot.lane.b32.xlu1 %v2494_v12, %s2291_s20  ;;  %s2909_s20 = scalar_lea.vmem %s2973_s7, %s2107_s12 }
 0x29c   : > { %v643_v52 = vpop.xlane.xlu0 %642 }
 0x29d   : > { %2215 = vrcp.f32 %v643_v52  ;;  %v676_v62 = vand.u32 2147483648, %v643_v52  ;;  %v674_v3 = vand.u32 2147483647, %v643_v52  ;;  %vm670_vm5 = vweird.f32 %v643_v52 }
 0x29f   : > { %v677_v14 = vor.u32 1.1754944e-38, %v676_v62  ;;  %vm675_vm7 = vcmp.eq.f32.partialorder %v674_v3, 8.507059e+37 }
 0x2a3   : > { %v2216_v45 = vpop.eup %2215 }
 0x2a4   : > { %v666_v54 = vmul.f32 %v2216_v45, %v643_v52  ;;  %vm671_vm4 = vweird.f32 %v2216_v45  ;;  %v1150_v52 = vpop.permute.xlu1 %1149 }
 0x2a5   : > { %vm672_vm6 = vmor %vm670_vm5, %vm671_vm4 }
 0x2a6   : > { %v667_v0 = vsub.f32 1.0, %v666_v54 }
 0x2a8   : > { %v668_v63 = vmul.f32 %v2216_v45, %v667_v0 }
 0x2aa   : > { %v669_v1 = vadd.f32 %v2216_v45, %v668_v63 }
 0x2ac   : > { %v673_v2 = vsel %vm672_vm6, %v2216_v45, %v669_v1 }
 0x2ad   : > { %v678_v20 = vsel %vm675_vm7, %v677_v14, %v673_v2 }
 0x2ae   : > { %v679_v12 = vmul.f32 %v2547_v58, %v678_v20 }
 0x2b0   : > { %2129 = vmatmul.msk.f32.vlgmr.msrb.gmra.mxu3 %vm789_vm8, %v679_v12 }
 0x2b1   : > { %2144 = vmatpush.xpose.msk.msrb.mxu3 %vm363_vm1, %v2551_v60 }
 0x2b5   : > { %v649_v15 = vpop.xlane.xlu2 %648 }
 0x2b6   : > { %2217 = vrcp.f32 %v649_v15  ;;  %v706_v33 = vand.u32 2147483648, %v649_v15  ;;  %v704_v36 = vand.u32 2147483647, %v649_v15  ;;  %vm700_vm10 = vweird.f32 %v649_v15 }
 0x2b8   : > { %v707_v58 = vor.u32 1.1754944e-38, %v706_v33  ;;  %vm705_vm12 = vcmp.eq.f32.partialorder %v704_v36, 8.507059e+37 }
 0x2bc   : > { %v2218_v22 = vpop.eup %2217 }
 0x2bd   : > { %v696_v23 = vmul.f32 %v2218_v22, %v649_v15  ;;  %v655_v25 = vpop.xlane.xlu2 %654  ;;  %vm701_vm9 = vweird.f32 %v2218_v22 }
 0x2be   : > { %2219 = vrcp.f32 %v655_v25  ;;  %vm702_vm11 = vmor %vm700_vm10, %vm701_vm9  ;;  %v736_v47 = vand.u32 2147483648, %v655_v25  ;;  %v734_v50 = vand.u32 2147483647, %v655_v25  ;;  %vm730_vm14 = vweird.f32 %v655_v25 }
 0x2bf   : > { %v697_v17 = vsub.f32 1.0, %v696_v23 }
 0x2c0   : > { %v737_v24 = vor.u32 1.1754944e-38, %v736_v47  ;;  %vm735_vm4 = vcmp.eq.f32.partialorder %v734_v50, 8.507059e+37 }
 0x2c1   : > { %v698_v35 = vmul.f32 %v2218_v22, %v697_v17 }
 0x2c3   : > { %v699_v37 = vadd.f32 %v2218_v22, %v698_v35 }
 0x2c4   : > { %v2220_v21 = vpop.eup %2219 }
 0x2c5   : > { %v703_v38 = vsel %vm702_vm11, %v2218_v22, %v699_v37  ;;  %v726_v39 = vmul.f32 %v2220_v21, %v655_v25  ;;  %vm731_vm13 = vweird.f32 %v2220_v21 }
 0x2c6   : > { %v708_v60 = vsel %vm705_vm12, %v707_v58, %v703_v38  ;;  %vm732_vm15 = vmor %vm730_vm14, %vm731_vm13 }
 0x2c7   : > { %v727_v40 = vsub.f32 1.0, %v726_v39  ;;  %v709_v43 = vmul.f32 %v2555_v18, %v708_v60  ;;  %v658_v18 = vpop.xlane.xlu2 %657 }
 0x2c8   : > { %2221 = vrcp.f32 %v658_v18  ;;  %vm745_vm10 = vweird.f32 %v658_v18  ;;  %v751_v37 = vand.u32 2147483648, %v658_v18  ;;  %v749_v39 = vand.u32 2147483647, %v658_v18 }
 0x2c9   : > { %v728_v49 = vmul.f32 %v2220_v21, %v727_v40  ;;  %2133 = vmatmul.msk.f32.vlgmr.msrb.gmra.mxu1 %vm789_vm8, %v709_v43 }
 0x2cb   : > { %v729_v26 = vadd.f32 %v2220_v21, %v728_v49 }
 0x2cd   : > { %v733_v55 = vsel %vm732_vm15, %v2220_v21, %v729_v26  ;;  %vm750_vm15 = vcmp.eq.f32.partialorder %v749_v39, 8.507059e+37 }
 0x2ce   : > { %v738_v46 = vsel %vm735_vm4, %v737_v24, %v733_v55  ;;  %v2222_v45 = vpop.eup %2221  ;;  %v752_v55 = vor.u32 1.1754944e-38, %v751_v37 }
 0x2cf   : > { %v739_v48 = vmul.f32 %v2559_v31, %v738_v46  ;;  %v741_v0 = vmul.f32 %v2222_v45, %v658_v18  ;;  %vm746_vm7 = vweird.f32 %v2222_v45 }
 0x2d0   : > { %vm2621_vm12 = vmor %vm745_vm10, %vm746_vm7 }
 0x2d1   : > { %2137 = vmatmul.msk.f32.vlgmr.msra.gmra.mxu3 %vm789_vm8, %v739_v48  ;;  %v742_v63 = vsub.f32 1.0, %v741_v0 }
 0x2d2   : > { %2152 = vmatpush.xpose.msk.msra.mxu3 %vm363_vm1, %v2553_v61 }
 0x2d3   : > { %v743_v61 = vmul.f32 %v2222_v45, %v742_v63 }
 0x2d5   : > { %v744_v22 = vadd.f32 %v2222_v45, %v743_v61 }
 0x2d7   : > { %v748_v40 = vsel %vm2621_vm12, %v2222_v45, %v744_v22 }
 0x2d8   : > { %v753_v45 = vsel %vm750_vm15, %v752_v55, %v748_v40 }
 0x2d9   : > { %2145 = vmatmul.msk.f32.vlgmr.msrb.gmra.mxu3 %vm363_vm1, %v2543_v56 }
 0x2dd   : > { %v646_v54 = vpop.xlane.xlu1 %645 }
 0x2de   : > { %2223 = vrcp.f32 %v646_v54  ;;  %v691_v2 = vand.u32 2147483648, %v646_v54  ;;  %v689_v12 = vand.u32 2147483647, %v646_v54  ;;  %vm685_vm6 = vweird.f32 %v646_v54 }
 0x2e0   : > { %v692_v23 = vor.u32 1.1754944e-38, %v691_v2  ;;  %vm690_vm11 = vcmp.eq.f32.partialorder %v689_v12, 8.507059e+37  ;;  %v754_v12 = vmul.f32 %v2563_v32, %v753_v45 }
 0x2e1   : > { %2153 = vmatmul.msk.f32.vlgmr.msra.gmra.mxu3 %vm363_vm1, %v1150_v52 }
 0x2e4   : > { %v2224_v62 = vpop.eup %2223 }
 0x2e5   : > { %v681_v31 = vmul.f32 %v2224_v62, %v646_v54  ;;  %v652_v3 = vpop.xlane.xlu1 %651  ;;  %v661_v1 = vpop.xlane.xlu2 %660  ;;  %vm686_vm5 = vweird.f32 %v2224_v62 }
 0x2e6   : > { %2225 = vrcp.f32 %v652_v3  ;;  %vm687_vm9 = vmor %vm685_vm6, %vm686_vm5  ;;  %v721_v43 = vand.u32 2147483648, %v652_v3  ;;  %v719_v26 = vand.u32 2147483647, %v652_v3  ;;  %v766_v24 = vand.u32 2147483648, %v661_v1 }
 0x2e7   : > { %v682_v14 = vsub.f32 1.0, %v681_v31  ;;  %2227 = vrcp.f32 %v661_v1  ;;  %v764_v48 = vand.u32 2147483647, %v661_v1  ;;  %vm715_vm4 = vweird.f32 %v652_v3 }
 0x2e8   : > { %vm760_vm6 = vweird.f32 %v661_v1  ;;  %vm720_vm7 = vcmp.eq.f32.partialorder %v719_v26, 8.507059e+37 }
 0x2e9   : > { %v683_v20 = vmul.f32 %v2224_v62, %v682_v14  ;;  %vm765_vm10 = vcmp.eq.f32.partialorder %v764_v48, 8.507059e+37 }
 0x2eb   : > { %v684_v56 = vadd.f32 %v2224_v62, %v683_v20 }
 0x2ec   : > { %v2226_v15 = vpop.eup %2225 }
 0x2ed   : > { %v2228_v25 = vpop.eup %2227  ;;  %v688_v17 = vsel %vm687_vm9, %v2224_v62, %v684_v56  ;;  %v711_v33 = vmul.f32 %v2226_v15, %v652_v3  ;;  %v664_v35 = vpop.xlane.xlu0 %663  ;;  %vm716_vm13 = vweird.f32 %v2226_v15  ;;  %v767_v62 = vor.u32 1.1754944e-38, %v766_v24 }
 0x2ee   : > { %v2619_v36 = vpop.permute.xlu2 %1085  ;;  %v693_v21 = vsel %vm690_vm11, %v692_v23, %v688_v17  ;;  %v756_v58 = vmul.f32 %v2228_v25, %v661_v1  ;;  %2229 = vrcp.f32 %v664_v35  ;;  %vm761_vm14 = vweird.f32 %v2228_v25  ;;  %vm717_vm5 = vmor %vm715_vm4, %vm716_vm13 }
 0x2ef   : > { %v712_v60 = vsub.f32 1.0, %v711_v33  ;;  %v694_v49 = vmul.f32 %v2570_v44, %v693_v21  ;;  %v722_v44 = vor.u32 1.1754944e-38, %v721_v43  ;;  %vm762_vm9 = vmor %vm760_vm6, %vm761_vm14  ;;  %v781_v20 = vand.u32 2147483648, %v664_v35 }
 0x2f0   : > { %v757_v47 = vsub.f32 1.0, %v756_v58  ;;  %vm775_vm12 = vweird.f32 %v664_v35 }
 0x2f1   : > { %v713_v50 = vmul.f32 %v2226_v15, %v712_v60  ;;  %2131 = vmatmul.msk.f32.vlgmr.msra.gmra.mxu0 %vm789_vm8, %v694_v49 }
 0x2f2   : > { %v758_v46 = vmul.f32 %v2228_v25, %v757_v47  ;;  %2146 = vmatpush.xpose.msk.msra.mxu0 %vm363_vm1, %v2604_v13 }
 0x2f3   : > { %v714_v18 = vadd.f32 %v2226_v15, %v713_v50 }
 0x2f4   : > { %v2230_v52 = vpop.eup %2229  ;;  %v759_v54 = vadd.f32 %v2228_v25, %v758_v46 }
 0x2f5   : > { %v718_v0 = vsel %vm717_vm5, %v2226_v15, %v714_v18  ;;  %v771_v63 = vmul.f32 %v2230_v52, %v664_v35  ;;  %vm776_vm11 = vweird.f32 %v2230_v52  ;;  %v779_v15 = vand.u32 2147483647, %v664_v35 }
 0x2f6   : > { %v1182_v31 = vpop.permute.xlu2 %1181  ;;  %v723_v14 = vsel %vm720_vm7, %v722_v44, %v718_v0  ;;  %v763_v61 = vsel %vm762_vm9, %v2228_v25, %v759_v54  ;;  %vm777_vm13 = vmor %vm775_vm12, %vm776_vm11 }
 0x2f7   : > { %v768_v3 = vsel %vm765_vm10, %v767_v62, %v763_v61  ;;  %v772_v2 = vsub.f32 1.0, %v771_v63  ;;  %v724_v13 = vmul.f32 %v2574_v51, %v723_v14  ;;  %v782_v51 = vor.u32 1.1754944e-38, %v781_v20 }
 0x2f8   : > { %v769_v56 = vmul.f32 %v2576_v53, %v768_v3  ;;  %vm780_vm14 = vcmp.eq.f32.partialorder %v779_v15, 8.507059e+37 }
 0x2f9   : > { %v773_v1 = vmul.f32 %v2230_v52, %v772_v2  ;;  %2135 = vmatmul.msk.f32.vlgmr.msrb.gmra.mxu2 %vm789_vm8, %v724_v13  ;;  %2139 = vmatmul.msk.f32.vlgmr.msrb.gmra.mxu0 %vm789_vm8, %v754_v12 }
 0x2fa   : > { %2141 = vmatmul.msk.f32.vlgmr.msra.gmra.mxu1 %vm789_vm8, %v769_v56  ;;  %2150 = vmatpush.xpose.msk.msrb.mxu2 %vm363_vm1, %v2545_v57 }
 0x2fb   : > { %v774_v22 = vadd.f32 %v2230_v52, %v773_v1 }
 0x2fd   : > { %v778_v23 = vsel %vm777_vm13, %v2230_v52, %v774_v22  ;;  %v1090_v32 = vpop.permute.xlu1 %1089 }
 0x2fe   : > { %v1478_v53 = vpop.permute.xlu2 %1477  ;;  %v783_v25 = vsel %vm780_vm14, %v782_v51, %v778_v23  ;;  %2148 = vmatpush.xpose.msk.msrb.mxu1 %vm363_vm1, %v1090_v32 }
 0x2ff   : > { %2160 = vmatpush.msk.msrb.mxu3 %vm793_vm2, %v1478_v53  ;;  %v784_v17 = vmul.f32 %v2582_v59, %v783_v25 }
 0x300   : > { %v1054_v33 = vpop.permute.xlu0 %1053 }
 0x301   : > { %2143 = vmatmul.msk.f32.vlgmr.msra.gmra.mxu2 %vm789_vm8, %v784_v17  ;;  %2147 = vmatmul.msk.f32.vlgmr.msra.gmra.mxu0 %vm363_vm1, %v1054_v33 }
 0x302   : > { %2149 = vmatmul.msk.f32.vlgmr.msrb.gmra.mxu1 %vm363_vm1, %v2619_v36  ;;  %2158 = vmatpush.xpose.msk.msra.mxu2 %vm363_vm1, %v2567_v34 }
 0x305   : > { %v1186_v57 = vpop.permute.xlu1 %1185 }
 0x306   : > { %2154 = vmatpush.xpose.msk.msrb.mxu0 %vm363_vm1, %v1186_v57 }
 0x308   : > { %v1218_v35 = vpop.permute.xlu0 %1217 }
 0x309   : > { %2151 = vmatmul.msk.f32.vlgmr.msrb.gmra.mxu2 %vm363_vm1, %v2541_v30  ;;  %2156 = vmatpush.xpose.msk.msra.mxu1 %vm363_vm1, %v1218_v35 }
 0x30a   : > { %2155 = vmatmul.msk.f32.vlgmr.msrb.gmra.mxu0 %vm363_vm1, %v1182_v31 }
 0x30d   : > { %v1214_v59 = vpop.permute.xlu1 %1213 }
 0x30e   : > { %2157 = vmatmul.msk.f32.vlgmr.msra.gmra.mxu1 %vm363_vm1, %v1214_v59 }
 0x311   : > { %2159 = vmatmul.msk.f32.vlgmr.msra.gmra.mxu2 %vm363_vm1, %v2596_v28 }
 0x333   : > { %v2657_v36 = vpop.f32.mrf.mxu3 }
 0x346   : > { %v2663_v60 = vpop.f32.mrf.mxu1 }
 0x354   : > { %v2659_v34 = vpop.f32.mrf.mxu3 }
 0x35c   : > { %v1048_v37 = vpop.f32.mrf.mxu3 }
 0x35d   : > { %v1275_v21 = vmul.f32 0.25, %v1048_v37 }
 0x35f   : > { %v1283_v58 = vsel %vm592_vm3, %v1275_v21, -inf }
 0x360   : > { %1284 = vmax.xlane.f32.xlu0 %v1283_v58 }
 0x364   : > { %v1176_v30 = vpop.f32.mrf.mxu3 }
 0x365   : > { %v1279_v38 = vmul.f32 0.25, %v1176_v30 }
 0x367   : > { %v1295_v39 = vsel %vm592_vm3, %v1279_v38, -inf }
 0x368   : > { %1296 = vmax.xlane.f32.xlu2 %v1295_v39 }
 0x36e   : > { %v2665_v40 = vpop.f32.mrf.mxu0 }
 0x376   : > { %v2667_v43 = vpop.f32.mrf.mxu0 }
 0x377   : > { %v2669_v28 = vpop.f32.mrf.mxu1 }
 0x37c   : > { %v2671_v47 = vpop.f32.mrf.mxu2 }
 0x37e   : > { %v1080_v49 = vpop.f32.mrf.mxu0 }
 0x37f   : > { %v1112_v50 = vpop.f32.mrf.mxu1  ;;  %v1276_v26 = vmul.f32 0.25, %v1080_v49 }
 0x380   : > { %v1277_v24 = vmul.f32 0.25, %v1112_v50 }
 0x381   : > { %v1286_v55 = vsel %vm592_vm3, %v1276_v26, -inf }
 0x382   : > { %v1289_v46 = vsel %vm592_vm3, %v1277_v24, -inf  ;;  %1287 = vmax.xlane.f32.xlu1 %v1286_v55 }
 0x383   : > { %1290 = vmax.xlane.f32.xlu0 %v1289_v46 }
 0x384   : > { %v2675_v48 = vpop.f32.mrf.mxu2 }
 0x387   : > { %v1208_v18 = vpop.f32.mrf.mxu0 }
 0x388   : > { %v1280_v52 = vmul.f32 0.25, %v1208_v18 }
 0x38a   : > { %v1298_v45 = vsel %vm592_vm3, %v1280_v52, -inf }
 0x38b   : > { %1299 = vmax.xlane.f32.xlu0 %v1298_v45  ;;  %v1240_v44 = vpop.f32.mrf.mxu1 }
 0x38c   : > { %v1281_v54 = vmul.f32 0.25, %v1240_v44  ;;  %v1144_v0 = vpop.f32.mrf.mxu2 }
 0x38d   : > { %v1278_v63 = vmul.f32 0.25, %v1144_v0 }
 0x38e   : > { %v1301_v62 = vsel %vm592_vm3, %v1281_v54, -inf }
 0x38f   : > { %1302 = vmax.xlane.f32.xlu2 %v1301_v62  ;;  %v1292_v61 = vsel %vm592_vm3, %v1278_v63, -inf }
 0x394   : > { %v1272_v31 = vpop.f32.mrf.mxu2 }
 0x395   : > { %v1282_v14 = vmul.f32 0.25, %v1272_v31 }
 0x397   : > { %1293 = vmax.xlane.f32.xlu2 %v1292_v61  ;;  %v1304_v3 = vsel %vm592_vm3, %v1282_v14, -inf  ;;  %v1679_v61 = vld.sshfl [vmem:[#allocation1] sm:$0xff pattern:$0x73625140] }
 0x398   : > { %1305 = vmax.xlane.f32.xlu1 %v1304_v3 }
 0x39f   : > { %1506 = vrot.lane.b32.xlu0 %v2507_v27, %s2293_s22 }
 0x3a7   : > { %1593 = vrot.lane.b32.xlu0 %v2519_v19, %s2293_s22 }
 0x3af   : > { %1535 = vrot.lane.b32.xlu2 %v2510_v29, %s2293_s22 }
 0x3b1   : > { %1564 = vrot.lane.b32.xlu1 %v2513_v16, %s2293_s22 }
 0x3d3   : > { %v1285_v2 = vpop.xlane.xlu0 %1284 }
 0x3d4   : > { %v1307_v13 = vsub.f32 %v1275_v21, %v1285_v2 }
 0x3d6   : > { %v1315_v20 = vmul.f32 1.442695, %v1307_v13 }
 0x3d8   : > { %2231 = vpow2.f32 %v1315_v20 }
 0x3db   : > { %v1297_v12 = vpop.xlane.xlu2 %1296 }
 0x3dc   : > { %v1311_v56 = vsub.f32 %v1279_v38, %v1297_v12 }
 0x3de   : > { %v2689_v1 = vpop.eup %2231  ;;  %v1323_v15 = vmul.f32 1.442695, %v1311_v56 }
 0x3df   : > { %v1331_v27 = vsel %vm592_vm3, %v2689_v1, 0.0 }
 0x3e0   : > { %2233 = vpow2.f32 %v1323_v15  ;;  %1332 = vadd.xlane.f32.xlu1 %v1331_v27 }
 0x3e6   : > { %v2693_v19 = vpop.eup %2233 }
 0x3e7   : > { %v1343_v29 = vsel %vm592_vm3, %v2693_v19, 0.0 }
 0x3e8   : > { %1344 = vadd.xlane.f32.xlu0 %v1343_v29 }
 0x3f5   : > { %v1288_v16 = vpop.xlane.xlu1 %1287 }
 0x3f6   : > { %v1291_v22 = vpop.xlane.xlu0 %1290  ;;  %v1308_v51 = vsub.f32 %v1276_v26, %v1288_v16 }
 0x3f7   : > { %v1309_v23 = vsub.f32 %v1277_v24, %v1291_v22 }
 0x3f8   : > { %v1317_v32 = vmul.f32 1.442695, %v1308_v51 }
 0x3f9   : > { %v1319_v53 = vmul.f32 1.442695, %v1309_v23 }
 0x3fa   : > { %2235 = vpow2.f32 %v1317_v32 }
 0x3fb   : > { %2237 = vpow2.f32 %v1319_v53 }
 0x3fe   : > { %v1300_v25 = vpop.xlane.xlu0 %1299 }
 0x3ff   : > { %v1312_v17 = vsub.f32 %v1280_v52, %v1300_v25 }
 0x400   : > { %v2697_v33 = vpop.eup %2235 }
 0x401   : > { %v1325_v57 = vmul.f32 1.442695, %v1312_v17  ;;  %v2699_v35 = vpop.eup %2237  ;;  %v1334_v37 = vsel %vm592_vm3, %v2697_v33, 0.0 }
 0x402   : > { %v1303_v59 = vpop.xlane.xlu2 %1302  ;;  %1335 = vadd.xlane.f32.xlu2 %v1334_v37  ;;  %v1337_v58 = vsel %vm592_vm3, %v2699_v35, 0.0 }
 0x403   : > { %2239 = vpow2.f32 %v1325_v57  ;;  %v1313_v21 = vsub.f32 %v1281_v54, %v1303_v59  ;;  %1338 = vadd.xlane.f32.xlu1 %v1337_v58 }
 0x405   : > { %v1327_v30 = vmul.f32 1.442695, %v1313_v21 }
 0x407   : > { %2241 = vpow2.f32 %v1327_v30 }
 0x409   : > { %v2705_v38 = vpop.eup %2239 }
 0x40a   : > { %v1294_v39 = vpop.xlane.xlu2 %1293  ;;  %v1346_v49 = vsel %vm592_vm3, %v2705_v38, 0.0 }
 0x40b   : > { %v1310_v50 = vsub.f32 %v1278_v63, %v1294_v39  ;;  %v1306_v26 = vpop.xlane.xlu1 %1305  ;;  %1347 = vadd.xlane.f32.xlu1 %v1346_v49 }
 0x40c   : > { %v1314_v24 = vsub.f32 %v1282_v14, %v1306_v26 }
 0x40d   : > { %v2709_v55 = vpop.eup %2241  ;;  %v1321_v46 = vmul.f32 1.442695, %v1310_v50 }
 0x40e   : > { %v1329_v18 = vmul.f32 1.442695, %v1314_v24  ;;  %v1349_v52 = vsel %vm592_vm3, %v2709_v55, 0.0 }
 0x40f   : > { %2243 = vpow2.f32 %v1321_v46  ;;  %1350 = vadd.xlane.f32.xlu0 %v1349_v52 }
 0x410   : > { %2245 = vpow2.f32 %v1329_v18 }
 0x411   : > { %v1507_v45 = vpop.permute.xlu0 %1506 }
 0x412   : > { %2162 = vmatpush.msk.msra.mxu0 %vm793_vm2, %v1507_v45  ;;  %v1536_v44 = vpop.permute.xlu2 %1535 }
 0x413   : > { %2164 = vmatpush.msk.msrb.mxu1 %vm793_vm2, %v1536_v44 }
 0x415   : > { %v2715_v54 = vpop.eup %2243 }
 0x416   : > { %v2717_v0 = vpop.eup %2245  ;;  %v1340_v62 = vsel %vm592_vm3, %v2715_v54, 0.0 }
 0x417   : > { %1341 = vadd.xlane.f32.xlu0 %v1340_v62  ;;  %v1352_v63 = vsel %vm592_vm3, %v2717_v0, 0.0 }
 0x418   : > { %1353 = vadd.xlane.f32.xlu2 %v1352_v63 }
 0x419   : > { %v1594_v31 = vpop.permute.xlu0 %1593 }
 0x41a   : > { %2168 = vmatpush.msk.msra.mxu3 %vm793_vm2, %v1594_v31 }
 0x423   : > { %v1565_v14 = vpop.permute.xlu1 %1564 }
 0x424   : > { %2166 = vmatpush.msk.msrb.mxu2 %vm793_vm2, %v1565_v14  ;;  %1680 = vrot.lane.b32.xlu1 %v1679_v61, %s2293_s22 }
 0x42b   : > { %1651 = vrot.lane.b32.xlu0 %v2530_v42, %s2293_s22 }
 0x430   : > { %1622 = vrot.lane.b32.xlu2 %v2527_v41, %s2293_s22 }
 0x453   : > { %v1333_v3 = vpop.xlane.xlu1 %1332 }
 0x454   : > { %2247 = vrcp.f32 %v1333_v3  ;;  %v1366_v56 = vand.u32 2147483648, %v1333_v3  ;;  %v1364_v27 = vand.u32 2147483647, %v1333_v3  ;;  %vm1360_vm15 = vweird.f32 %v1333_v3 }
 0x456   : > { %v1367_v22 = vor.u32 1.1754944e-38, %v1366_v56  ;;  %vm1365_vm5 = vcmp.eq.f32.partialorder %v1364_v27, 8.507059e+37 }
 0x45a   : > { %v2248_v2 = vpop.eup %2247 }
 0x45b   : > { %v1356_v13 = vmul.f32 %v2248_v2, %v1333_v3  ;;  %v1345_v20 = vpop.xlane.xlu0 %1344  ;;  %vm1361_vm3 = vweird.f32 %v2248_v2 }
 0x45c   : > { %2249 = vrcp.f32 %v1345_v20  ;;  %vm1362_vm4 = vmor %vm1360_vm15, %vm1361_vm3  ;;  %v1426_v53 = vand.u32 2147483648, %v1345_v20  ;;  %v1424_v17 = vand.u32 2147483647, %v1345_v20  ;;  %vm1420_vm7 = vweird.f32 %v1345_v20 }
 0x45d   : > { %v1357_v12 = vsub.f32 1.0, %v1356_v13 }
 0x45e   : > { %v1427_v59 = vor.u32 1.1754944e-38, %v1426_v53  ;;  %vm1425_vm10 = vcmp.eq.f32.partialorder %v1424_v17, 8.507059e+37 }
 0x45f   : > { %v1358_v15 = vmul.f32 %v2248_v2, %v1357_v12 }
 0x461   : > { %v1359_v29 = vadd.f32 %v2248_v2, %v1358_v15 }
 0x462   : > { %v2250_v16 = vpop.eup %2249 }
 0x463   : > { %v1363_v42 = vsel %vm1362_vm4, %v2248_v2, %v1359_v29  ;;  %v1416_v51 = vmul.f32 %v2250_v16, %v1345_v20  ;;  %vm1421_vm6 = vweird.f32 %v2250_v16 }
 0x464   : > { %v1368_v41 = vsel %vm1365_vm5, %v1367_v22, %v1363_v42  ;;  %vm1422_vm9 = vmor %vm1420_vm7, %vm1421_vm6 }
 0x465   : > { %v1417_v23 = vsub.f32 1.0, %v1416_v51  ;;  %v1369_v32 = vmul.f32 %v2689_v1, %v1368_v41 }
 0x467   : > { %v1418_v25 = vmul.f32 %v2250_v16, %v1417_v23  ;;  %2161 = vmatmul.msk.f32.vlgmr.msrb.gmra.mxu3 %vm789_vm8, %v1369_v32 }
 0x469   : > { %v1419_v57 = vadd.f32 %v2250_v16, %v1418_v25 }
 0x46b   : > { %v1423_v37 = vsel %vm1422_vm9, %v2250_v16, %v1419_v57 }
 0x46c   : > { %v1428_v21 = vsel %vm1425_vm10, %v1427_v59, %v1423_v37 }
 0x46d   : > { %v1429_v58 = vmul.f32 %v2693_v19, %v1428_v21 }
 0x46f   : > { %2169 = vmatmul.msk.f32.vlgmr.msra.gmra.mxu3 %vm789_vm8, %v1429_v58 }
 0x475   : > { %v1336_v30 = vpop.xlane.xlu2 %1335 }
 0x476   : > { %2251 = vrcp.f32 %v1336_v30  ;;  %v1339_v1 = vpop.xlane.xlu1 %1338  ;;  %v1381_v18 = vand.u32 2147483648, %v1336_v30  ;;  %v1379_v44 = vand.u32 2147483647, %v1336_v30  ;;  %vm1375_vm13 = vweird.f32 %v1336_v30 }
 0x477   : > { %2253 = vrcp.f32 %v1339_v1  ;;  %v1396_v62 = vand.u32 2147483648, %v1339_v1  ;;  %v1394_v31 = vand.u32 2147483647, %v1339_v1  ;;  %vm1390_vm3 = vweird.f32 %v1339_v1 }
 0x478   : > { %v1382_v61 = vor.u32 1.1754944e-38, %v1381_v18  ;;  %vm1380_vm15 = vcmp.eq.f32.partialorder %v1379_v44, 8.507059e+37 }
 0x479   : > { %v1397_v20 = vor.u32 1.1754944e-38, %v1396_v62  ;;  %vm1395_vm5 = vcmp.eq.f32.partialorder %v1394_v31, 8.507059e+37 }
 0x47c   : > { %v2252_v39 = vpop.eup %2251 }
 0x47d   : > { %v2254_v49 = vpop.eup %2253  ;;  %v1371_v50 = vmul.f32 %v2252_v39, %v1336_v30  ;;  %vm1376_vm11 = vweird.f32 %v2252_v39 }
 0x47e   : > { %v1386_v26 = vmul.f32 %v2254_v49, %v1339_v1  ;;  %v1348_v24 = vpop.xlane.xlu1 %1347  ;;  %vm1391_vm12 = vweird.f32 %v2254_v49  ;;  %vm1377_vm14 = vmor %vm1375_vm13, %vm1376_vm11 }
 0x47f   : > { %v1372_v46 = vsub.f32 1.0, %v1371_v50  ;;  %2255 = vrcp.f32 %v1348_v24  ;;  %vm1392_vm4 = vmor %vm1390_vm3, %vm1391_vm12  ;;  %v1441_v51 = vand.u32 2147483648, %v1348_v24  ;;  %v1439_v53 = vand.u32 2147483647, %v1348_v24 }
 0x480   : > { %v1387_v52 = vsub.f32 1.0, %v1386_v26  ;;  %vm1435_vm7 = vweird.f32 %v1348_v24 }
 0x481   : > { %v1373_v45 = vmul.f32 %v2252_v39, %v1372_v46  ;;  %v1442_v57 = vor.u32 1.1754944e-38, %v1441_v51  ;;  %vm1440_vm10 = vcmp.eq.f32.partialorder %v1439_v53, 8.507059e+37 }
 0x482   : > { %v2734_v19 = vpop.xlane.xlu0 %1350  ;;  %v1388_v63 = vmul.f32 %v2254_v49, %v1387_v52 }
 0x483   : > { %2257 = vrcp.f32 %v2734_v19  ;;  %v1374_v14 = vadd.f32 %v2252_v39, %v1373_v45  ;;  %vm1450_vm12 = vweird.f32 %v2734_v19  ;;  %v1456_v26 = vand.u32 2147483648, %v2734_v19 }
 0x484   : > { %v1389_v3 = vadd.f32 %v2254_v49, %v1388_v63  ;;  %v1454_v46 = vand.u32 2147483647, %v2734_v19 }
 0x485   : > { %v2256_v2 = vpop.eup %2255  ;;  %v1378_v13 = vsel %vm1377_vm14, %v2252_v39, %v1374_v14  ;;  %v1457_v31 = vor.u32 1.1754944e-38, %v1456_v26 }
 0x486   : > { %v1383_v12 = vsel %vm1380_vm15, %v1382_v61, %v1378_v13  ;;  %v1393_v56 = vsel %vm1392_vm4, %v2254_v49, %v1389_v3  ;;  %v1431_v15 = vmul.f32 %v2256_v2, %v1348_v24  ;;  %vm1436_vm6 = vweird.f32 %v2256_v2 }
 0x487   : > { %v1398_v27 = vsel %vm1395_vm5, %v1397_v20, %v1393_v56  ;;  %v1384_v29 = vmul.f32 %v2697_v33, %v1383_v12  ;;  %vm1437_vm9 = vmor %vm1435_vm7, %vm1436_vm6  ;;  %vm1455_vm15 = vcmp.eq.f32.partialorder %v1454_v46, 8.507059e+37 }
 0x488   : > { %v1432_v22 = vsub.f32 1.0, %v1431_v15  ;;  %v1399_v42 = vmul.f32 %v2699_v35, %v1398_v27 }
 0x489   : > { %v2258_v16 = vpop.eup %2257  ;;  %2163 = vmatmul.msk.f32.vlgmr.msra.gmra.mxu0 %vm789_vm8, %v1384_v29 }
 0x48a   : > { %v1446_v41 = vmul.f32 %v2258_v16, %v2734_v19  ;;  %v1342_v23 = vpop.xlane.xlu0 %1341  ;;  %v1433_v32 = vmul.f32 %v2256_v2, %v1432_v22  ;;  %2165 = vmatmul.msk.f32.vlgmr.msrb.gmra.mxu1 %vm789_vm8, %v1399_v42  ;;  %vm1451_vm11 = vweird.f32 %v2258_v16 }
 0x48b   : > { %2259 = vrcp.f32 %v1342_v23  ;;  %v1354_v25 = vpop.xlane.xlu2 %1353  ;;  %v1409_v18 = vand.u32 2147483647, %v1342_v23  ;;  %v1411_v52 = vand.u32 2147483648, %v1342_v23  ;;  %vm1452_vm13 = vmor %vm1450_vm12, %vm1451_vm11  ;;  %vm1405_vm3 = vweird.f32 %v1342_v23 }
 0x48c   : > { %v1447_v17 = vsub.f32 1.0, %v1446_v41  ;;  %2261 = vrcp.f32 %v1354_v25  ;;  %v1434_v33 = vadd.f32 %v2256_v2, %v1433_v32  ;;  %v1471_v20 = vand.u32 2147483648, %v1354_v25 }
 0x48d   : > { %vm1410_vm5 = vcmp.eq.f32.partialorder %v1409_v18, 8.507059e+37  ;;  %v1412_v19 = vor.u32 1.1754944e-38, %v1411_v52  ;;  %vm1465_vm7 = vweird.f32 %v1354_v25  ;;  %v1469_v12 = vand.u32 2147483647, %v1354_v25 }
 0x48e   : > { %v1438_v35 = vsel %vm1437_vm9, %v2256_v2, %v1434_v33  ;;  %v1448_v59 = vmul.f32 %v2258_v16, %v1447_v17 }
 0x48f   : > { %v1443_v37 = vsel %vm1440_vm10, %v1442_v57, %v1438_v35  ;;  %vm1470_vm10 = vcmp.eq.f32.partialorder %v1469_v12, 8.507059e+37 }
 0x490   : > { %v1449_v1 = vadd.f32 %v2258_v16, %v1448_v59  ;;  %v1444_v50 = vmul.f32 %v2705_v38, %v1443_v37  ;;  %v1750_v37 = vld [vmem:[%s2969_s3 + $0x18] sm:$0xff] }
 0x491   : > { %v2260_v21 = vpop.eup %2259  ;;  %1796 = vmatpush.msrb.mxu3 %v1750_v37 }
 0x492   : > { %v2262_v58 = vpop.eup %2261  ;;  %v1401_v30 = vmul.f32 %v2260_v21, %v1342_v23  ;;  %vm1406_vm14 = vweird.f32 %v2260_v21  ;;  %v1453_v62 = vsel %vm1452_vm13, %v2258_v16, %v1449_v1  ;;  %v1472_v16 = vor.u32 1.1754944e-38, %v1471_v20 }
 0x493   : > { %v1461_v39 = vmul.f32 %v2262_v58, %v1354_v25  ;;  %v1623_v49 = vpop.permute.xlu2 %1622  ;;  %vm1407_vm4 = vmor %vm1405_vm3, %vm1406_vm14  ;;  %v1458_v61 = vsel %vm1455_vm15, %v1457_v31, %v1453_v62  ;;  %vm1466_vm6 = vweird.f32 %v2262_v58 }
 0x494   : > { %v1402_v24 = vsub.f32 1.0, %v1401_v30  ;;  %2170 = vmatpush.msk.msrb.mxu0 %vm793_vm2, %v1623_v49  ;;  %vm1467_vm9 = vmor %vm1465_vm7, %vm1466_vm6  ;;  %v1459_v27 = vmul.f32 %v2709_v55, %v1458_v61 }
 0x495   : > { %v1462_v45 = vsub.f32 1.0, %v1461_v39  ;;  %2171 = vmatmul.msk.f32.vlgmr.msrb.gmra.mxu0 %vm789_vm8, %v1444_v50 }
 0x496   : > { %v1403_v44 = vmul.f32 %v2260_v21, %v1402_v24  ;;  %v1681_v38 = vpop.permute.xlu1 %1680 }
 0x497   : > { %v1463_v63 = vmul.f32 %v2262_v58, %v1462_v45  ;;  %2174 = vmatpush.msk.msra.mxu2 %vm793_vm2, %v1681_v38 }
 0x498   : > { %v1404_v14 = vadd.f32 %v2260_v21, %v1403_v44 }
 0x499   : > { %v1464_v2 = vadd.f32 %v2262_v58, %v1463_v63 }
 0x49a   : > { %v1408_v3 = vsel %vm1407_vm4, %v2260_v21, %v1404_v14  ;;  %v1749_v21 = vld [vmem:[%s2969_s3 + $0x10] sm:$0xff] }
 0x49b   : > { %v1413_v13 = vsel %vm1410_vm5, %v1412_v19, %v1408_v3  ;;  %v1468_v29 = vsel %vm1467_vm9, %v2262_v58, %v1464_v2  ;;  %1797 = vmatpush.msrb.mxu3 %v1749_v21  ;;  %v1747_v58 = vld [vmem:[%s2969_s3] sm:$0xff] }
 0x49c   : > { %v1414_v56 = vmul.f32 %v2715_v54, %v1413_v13  ;;  %v1473_v22 = vsel %vm1470_vm10, %v1472_v16, %v1468_v29 }
 0x49d   : > { %v1652_v15 = vpop.permute.xlu0 %1651  ;;  %v1474_v42 = vmul.f32 %v2717_v0, %v1473_v22 }
 0x49e   : > { %2167 = vmatmul.msk.f32.vlgmr.msrb.gmra.mxu2 %vm789_vm8, %v1414_v56  ;;  %2172 = vmatpush.msk.msra.mxu1 %vm793_vm2, %v1652_v15  ;;  %vm1829_vm2 = vcmask 254976  }
 0x49f   : > { %2173 = vmatmul.msk.f32.vlgmr.msra.gmra.mxu1 %vm789_vm8, %v1459_v27 }
 0x4a6   : > { %2175 = vmatmul.msk.f32.vlgmr.msra.gmra.mxu2 %vm789_vm8, %v1474_v42 }
 0x4ea   : > { %v1501_v51 = vpop.f32.mrf.mxu3 }
 0x4eb   : > { %1715 = vrot.lane.b32.xlu1 %v1501_v51, %s2294_s23 }
 0x4f2   : > { %v1617_v55 = vpop.f32.mrf.mxu3 }
 0x506   : > { %v1530_v54 = vpop.f32.mrf.mxu0 }
 0x507   : > { %v1559_v41 = vpop.f32.mrf.mxu1  ;;  %1717 = vrot.lane.b32.xlu2 %v1530_v54, %s2294_s23 }
 0x508   : > { %1719 = vrot.lane.b32.xlu0 %v1559_v41, %s2294_s23 }
 0x50f   : > { %1723 = vrot.lane.b32.xlu2 %v1617_v55, %s2294_s23 }
 0x512   : > { %v1646_v23 = vpop.f32.mrf.mxu0 }
 0x513   : > { %1725 = vrot.lane.b32.xlu0 %v1646_v23, %s2294_s23 }
 0x51c   : > { %v1675_v53 = vpop.f32.mrf.mxu1 }
 0x521   : > { %v1588_v32 = vpop.f32.mrf.mxu2 }
 0x522   : > { %1721 = vrot.lane.b32.xlu1 %v1588_v32, %s2294_s23 }
 0x529   : > { %v1704_v25 = vpop.f32.mrf.mxu2 }
 0x52a   : > { %1727 = vrot.lane.b32.xlu1 %v1675_v53, %s2294_s23  ;;  %1729 = vrot.lane.b32.xlu2 %v1704_v25, %s2294_s23 }
 0x55d   : > { %v1716_v0 = vpop.permute.xlu1 %1715 }
 0x55e   : > { %v1739_v17 = vsel %vm363_vm1, %v2657_v36, %v1716_v0  ;;  %v1748_v36 = vld [vmem:[%s2969_s3 + $0x8] sm:$0xff] }
 0x55f   : > { %1763 = vst [vmem:[#allocation1] ss:$4 sm:$0xff] %v1739_v17  ;;  %1798 = vmatpush.msrb.mxu3 %v1748_v36 }
 0x561   : > { %v1718_v33 = vpop.permute.xlu2 %1717  ;;  %1799 = vmatpush.msrb.mxu3 %v1747_v58 }
 0x562   : > { %v1740_v57 = vsel %vm363_vm1, %v2665_v40, %v1718_v33 }
 0x563   : > { %1765 = vst [vmem:[#allocation1 + $0x1] ss:$4 sm:$0xff] %v1740_v57 }
 0x569   : > { %v1724_v35 = vpop.permute.xlu2 %1723 }
 0x56a   : > { %v1743_v59 = vsel %vm363_vm1, %v2659_v34, %v1724_v35 }
 0x56b   : > { %1771 = vst [vmem:[#allocation1 + $0x20] ss:$4 sm:$0xff] %v1743_v59 }
 0x57a   : > { %v1720_v40 = vpop.permute.xlu0 %1719 }
 0x57b   : > { %v1741_v34 = vsel %vm363_vm1, %v2663_v60, %v1720_v40 }
 0x57c   : > { %1767 = vst [vmem:[#allocation1 + $0x2] ss:$4 sm:$0xff] %v1741_v34 }
 0x584   : > { %v1730_v30 = vpop.permute.xlu2 %1729 }
 0x585   : > { %v1746_v1 = vsel %vm363_vm1, %v2675_v48, %v1730_v30  ;;  %v1726_v39 = vpop.permute.xlu0 %1725 }
 0x586   : > { %1777 = vst [vmem:[#allocation1 + $0x23] ss:$4 sm:$0xff] %v1746_v1  ;;  %v1744_v49 = vsel %vm363_vm1, %v2667_v43, %v1726_v39  ;;  %v2196_v43 = vld [vmem:[%s2970_s4] ss:$0 sm:$0xff] }
 0x587   : > { %1773 = vst [vmem:[#allocation1 + $0x21] ss:$4 sm:$0xff] %v1744_v49 }
 0x594   : > { %v1722_v50 = vpop.permute.xlu1 %1721 }
 0x595   : > { %v1742_v60 = vsel %vm363_vm1, %v2671_v47, %v1722_v50 }
 0x596   : > { %1769 = vst [vmem:[#allocation1 + $0x3] ss:$4 sm:$0xff] %v1742_v60 }
 0x59c   : > { %v1728_v26 = vpop.permute.xlu1 %1727 }
 0x59d   : > { %v1745_v24 = vsel %vm363_vm1, %v2669_v28, %v1728_v26  ;;  %v1778_v46 = vld.sshfl [vmem:[#allocation1] sm:$0xff pattern:$0x73625140] }
 0x59e   : > { %1775 = vst [vmem:[#allocation1 + $0x22] ss:$4 sm:$0xff] %v1745_v24  ;;  %2176 = vmatmul.msk.f32.vlgmr.msrb.gmra.mxu3 %vm323_vm0, %v1778_v46 }
 0x5a5   : > { %v1779_v48 = vld.sshfl [vmem:[#allocation1 + $0x20] sm:$0xff pattern:$0x73625140] }
 0x5a6   : > { %2177 = vmatmul.msk.f32.gmra.mxu3 %vm323_vm0, %v1779_v48 }
 0x621   : > { %v1801_v18 = vpop.f32.mrf.mxu3 }
 0x622   : > { %v1802_v52 = vadd.f32 %v2196_v43, %v1801_v18 }
 0x624   : > { %v1821_v47 = vadd.f32 %v1802_v52, %v2364_v4  ;;  %v1810_v45 = vrot.slane %v1802_v52, 4  ;;  %v1809_v44 = vrot.slane %v1802_v52, 2  ;;  %v1811_v38 = vrot.slane %v1802_v52, 6 }
 0x626   : > { %v1830_v28 = vsel %vm1829_vm2, %v1821_v47, 0.0  ;;  %v1823_v62 = vadd.f32 %v1810_v45, %v2368_v6  ;;  %v1822_v63 = vadd.f32 %v1809_v44, %v2366_v5  ;;  %v1824_v4 = vadd.f32 %v1811_v38, %v2370_v7 }
 0x627   : > { %1831 = vadd.xlane.f32.xlu0 %v1830_v28 }
 0x628   : > { %v1836_v31 = vsel %vm1829_vm2, %v1823_v62, 0.0  ;;  %v1833_v14 = vsel %vm1829_vm2, %v1822_v63, 0.0  ;;  %v1839_v13 = vsel %vm1829_vm2, %v1824_v4, 0.0 }
 0x629   : > { %v1804_v19 = vpop.f32.mrf.mxu3  ;;  %1837 = vadd.xlane.f32.xlu2 %v1836_v31  ;;  %1834 = vadd.xlane.f32.xlu1 %v1833_v14 }
 0x62a   : > { %v1805_v61 = vadd.f32 %v2196_v43, %v1804_v19 }
 0x62c   : > { %v1812_v3 = vrot.slane %v1805_v61, 2  ;;  %v1825_v2 = vadd.f32 %v1805_v61, %v2374_v8  ;;  %v1813_v5 = vrot.slane %v1805_v61, 4  ;;  %v1814_v56 = vrot.slane %v1805_v61, 6 }
 0x62e   : > { %v1826_v6 = vadd.f32 %v1812_v3, %v2377_v9  ;;  %v1842_v12 = vsel %vm1829_vm2, %v1825_v2, 0.0  ;;  %v1827_v15 = vadd.f32 %v1813_v5, %v2380_v10  ;;  %v1828_v7 = vadd.f32 %v1814_v56, %v2382_v11 }
 0x62f   : > { %1840 = vadd.xlane.f32.xlu0 %v1839_v13  ;;  %v2295_v9 = vmov 32.0  }
 0x630   : > { %v1845_v20 = vsel %vm1829_vm2, %v1826_v6, 0.0  ;;  %v1848_v27 = vsel %vm1829_vm2, %v1827_v15, 0.0  ;;  %v1851_v8 = vsel %vm1829_vm2, %v1828_v7, 0.0  ;;  %2263 = vrcp.f32 %v2295_v9 }
 0x631   : > { %1846 = vadd.xlane.f32.xlu2 %v1845_v20  ;;  %1843 = vadd.xlane.f32.xlu1 %v1842_v12 }
 0x636   : > { %v2264_v29 = vpop.eup %2263 }
 0x637   : > { %1849 = vadd.xlane.f32.xlu0 %v1848_v27  ;;  %v1855_v16 = vmul.f32 32.0, %v2264_v29  ;;  %vm1859_vm0 = vweird.f32 %v2264_v29 }
 0x639   : > { %1852 = vadd.xlane.f32.xlu1 %v1851_v8  ;;  %v1856_v22 = vsub.f32 1.0, %v1855_v16 }
 0x63b   : > { %v1857_v42 = vmul.f32 %v2264_v29, %v1856_v22 }
 0x63d   : > { %v1858_v51 = vadd.f32 %v2264_v29, %v1857_v42 }
 0x63f   : > { %v2805_v54 = vsel %vm1859_vm0, %v2264_v29, %v1858_v51 }
 0x69a   : > { %v1832_v41 = vpop.xlane.xlu0 %1831 }
 0x69b   : > { %v1861_v10 = vmul.f32 %v2805_v54, %v1832_v41 }
 0x69c   : > { %v1838_v11 = vpop.xlane.xlu2 %1837  ;;  %v1835_v55 = vpop.xlane.xlu1 %1834 }
 0x69d   : > { %v2808_v23 = vsub.f32 %v1821_v47, %v1861_v10  ;;  %v1863_v32 = vmul.f32 %v2805_v54, %v1838_v11  ;;  %v1862_v53 = vmul.f32 %v2805_v54, %v1835_v55 }
 0x69f   : > { %v2812_v25 = vsub.f32 %v1823_v62, %v1863_v32  ;;  %v2814_v0 = vsub.f32 %v1822_v63, %v1862_v53  ;;  %v1877_v17 = vmul.f32 %v2808_v23, %v2808_v23 }
 0x6a1   : > { %v1885_v33 = vsel %vm1829_vm2, %v1877_v17, 0.0  ;;  %v1879_v57 = vmul.f32 %v2812_v25, %v2812_v25  ;;  %v1878_v35 = vmul.f32 %v2814_v0, %v2814_v0 }
 0x6a2   : > { %v1841_v59 = vpop.xlane.xlu0 %1840  ;;  %1886 = vadd.xlane.f32.xlu2 %v1885_v33 }
 0x6a3   : > { %v1864_v37 = vmul.f32 %v2805_v54, %v1841_v59  ;;  %v1891_v21 = vsel %vm1829_vm2, %v1879_v57, 0.0  ;;  %v1888_v36 = vsel %vm1829_vm2, %v1878_v35, 0.0 }
 0x6a4   : > { %v1847_v40 = vpop.xlane.xlu2 %1846  ;;  %1892 = vadd.xlane.f32.xlu1 %v1891_v21  ;;  %1889 = vadd.xlane.f32.xlu0 %v1888_v36  ;;  %v1844_v34 = vpop.xlane.xlu1 %1843 }
 0x6a5   : > { %v2826_v58 = vsub.f32 %v1824_v4, %v1864_v37  ;;  %v1866_v30 = vmul.f32 %v2805_v54, %v1847_v40  ;;  %v1865_v1 = vmul.f32 %v2805_v54, %v1844_v34 }
 0x6a7   : > { %v2830_v39 = vsub.f32 %v1826_v6, %v1866_v30  ;;  %v2832_v49 = vsub.f32 %v1825_v2, %v1865_v1  ;;  %v1880_v50 = vmul.f32 %v2826_v58, %v2826_v58 }
 0x6a9   : > { %v1894_v60 = vsel %vm1829_vm2, %v1880_v50, 0.0  ;;  %v1882_v26 = vmul.f32 %v2830_v39, %v2830_v39  ;;  %v1881_v24 = vmul.f32 %v2832_v49, %v2832_v49  ;;  %v2880_v50 = vld [vmem:[%s2971_s5] ss:$0 sm:$0xff] }
 0x6aa   : > { %v1850_v46 = vpop.xlane.xlu0 %1849  ;;  %1895 = vadd.xlane.f32.xlu2 %v1894_v60 }
 0x6ab   : > { %v1867_v48 = vmul.f32 %v2805_v54, %v1850_v46  ;;  %v1900_v43 = vsel %vm1829_vm2, %v1882_v26, 0.0  ;;  %v1897_v18 = vsel %vm1829_vm2, %v1881_v24, 0.0 }
 0x6ac   : > { %1901 = vadd.xlane.f32.xlu1 %v1900_v43  ;;  %1898 = vadd.xlane.f32.xlu0 %v1897_v18  ;;  %v1853_v52 = vpop.xlane.xlu1 %1852  ;;  %v2892_v18 = vld [vmem:[%s2972_s6] ss:$0 sm:$0xff] }
 0x6ad   : > { %v2844_v47 = vsub.f32 %v1827_v15, %v1867_v48  ;;  %v1868_v45 = vmul.f32 %v2805_v54, %v1853_v52 }
 0x6af   : > { %v2847_v44 = vsub.f32 %v1828_v7, %v1868_v45  ;;  %v1883_v28 = vmul.f32 %v2844_v47, %v2844_v47 }
 0x6b1   : > { %v1903_v62 = vsel %vm1829_vm2, %v1883_v28, 0.0  ;;  %v1884_v63 = vmul.f32 %v2847_v44, %v2847_v44 }
 0x6b2   : > { %1904 = vadd.xlane.f32.xlu2 %v1903_v62 }
 0x6b3   : > { %v1906_v38 = vsel %vm1829_vm2, %v1884_v63, 0.0 }
 0x6b4   : > { %1907 = vadd.xlane.f32.xlu0 %v1906_v38 }
 0x715   : > { %v1887_v31 = vpop.xlane.xlu2 %1886 }
 0x716   : > { %v1909_v14 = vmul.f32 %v1887_v31, %v2805_v54 }
 0x717   : > { %v1890_v19 = vpop.xlane.xlu0 %1889  ;;  %v1893_v61 = vpop.xlane.xlu1 %1892 }
 0x718   : > { %v1917_v4 = vadd.f32 1e-05, %v1909_v14  ;;  %v1910_v3 = vmul.f32 %v1890_v19, %v2805_v54  ;;  %v1911_v2 = vmul.f32 %v1893_v61, %v2805_v54 }
 0x71a   : > { %2265 = vrsqrt.f32 %v1917_v4  ;;  %v1918_v13 = vadd.f32 1e-05, %v1910_v3  ;;  %v1919_v6 = vadd.f32 1e-05, %v1911_v2  ;;  %vm1931_vm1 = vweird.f32 %v1917_v4 }
 0x71c   : > { %2267 = vrsqrt.f32 %v1918_v13  ;;  %vm1941_vm11 = vweird.f32 %v1918_v13  ;;  %vm1951_vm12 = vweird.f32 %v1919_v6 }
 0x71d   : > { %2269 = vrsqrt.f32 %v1919_v6  ;;  %v1896_v5 = vpop.xlane.xlu2 %1895 }
 0x71e   : > { %v1912_v20 = vmul.f32 %v1896_v5, %v2805_v54 }
 0x71f   : > { %v1899_v12 = vpop.xlane.xlu0 %1898  ;;  %v1902_v56 = vpop.xlane.xlu1 %1901 }
 0x720   : > { %v2266_v15 = vpop.eup %2265  ;;  %v2859_v7 = vadd.f32 1e-05, %v1912_v20  ;;  %v1913_v27 = vmul.f32 %v1899_v12, %v2805_v54  ;;  %v1914_v8 = vmul.f32 %v1902_v56, %v2805_v54 }
 0x721   : > { %v1926_v9 = vmul.f32 %v2266_v15, %v1917_v4  ;;  %vm1932_vm8 = vweird.f32 %v2266_v15 }
 0x722   : > { %v2268_v29 = vpop.eup %2267  ;;  %2271 = vrsqrt.f32 %v2859_v7  ;;  %v2864_v16 = vadd.f32 1e-05, %v1913_v27  ;;  %v2866_v22 = vadd.f32 1e-05, %v1914_v8  ;;  %vm1933_vm14 = vmor %vm1931_vm1, %vm1932_vm8  ;;  %vm1961_vm4 = vweird.f32 %v2859_v7 }
 0x723   : > { %v2270_v42 = vpop.eup %2269  ;;  %v1927_v51 = vmul.f32 %v2266_v15, %v1926_v9  ;;  %v1936_v41 = vmul.f32 %v2268_v29, %v1918_v13  ;;  %vm1942_vm13 = vweird.f32 %v2268_v29 }
 0x724   : > { %v1946_v10 = vmul.f32 %v2270_v42, %v1919_v6  ;;  %2273 = vrsqrt.f32 %v2864_v16  ;;  %vm1952_vm3 = vweird.f32 %v2270_v42  ;;  %vm1943_vm15 = vmor %vm1941_vm11, %vm1942_vm13  ;;  %vm1971_vm10 = vweird.f32 %v2864_v16 }
 0x725   : > { %v1928_v11 = vmul.f32 0.5, %v1927_v51  ;;  %v1937_v55 = vmul.f32 %v2268_v29, %v1936_v41  ;;  %2275 = vrsqrt.f32 %v2866_v22  ;;  %v1905_v32 = vpop.xlane.xlu2 %1904  ;;  %vm1953_vm5 = vmor %vm1951_vm12, %vm1952_vm3  ;;  %vm1981_vm8 = vweird.f32 %v2866_v22 }
 0x726   : > { %v1947_v53 = vmul.f32 %v2270_v42, %v1946_v10  ;;  %v1915_v17 = vmul.f32 %v1905_v32, %v2805_v54 }
 0x727   : > { %v1929_v33 = vsub.f32 1.5, %v1928_v11  ;;  %v1938_v57 = vmul.f32 0.5, %v1937_v55  ;;  %v1908_v35 = vpop.xlane.xlu0 %1907 }
 0x728   : > { %v2272_v59 = vpop.eup %2271  ;;  %v1948_v37 = vmul.f32 0.5, %v1947_v53  ;;  %v2871_v21 = vadd.f32 1e-05, %v1915_v17  ;;  %v1916_v36 = vmul.f32 %v1908_v35, %v2805_v54 }
 0x729   : > { %v1930_v40 = vmul.f32 %v2266_v15, %v1929_v33  ;;  %v1939_v34 = vsub.f32 1.5, %v1938_v57  ;;  %v1956_v30 = vmul.f32 %v2272_v59, %v2859_v7  ;;  %vm1962_vm6 = vweird.f32 %v2272_v59 }
 0x72a   : > { %v2875_v1 = vpop.eup %2273  ;;  %v1949_v60 = vsub.f32 1.5, %v1948_v37  ;;  %2277 = vrsqrt.f32 %v2871_v21  ;;  %v2885_v54 = vadd.f32 1e-05, %v1916_v36  ;;  %vm1963_vm9 = vmor %vm1961_vm4, %vm1962_vm6  ;;  %vm1991_vm13 = vweird.f32 %v2871_v21 }
 0x72b   : > { %v2276_v26 = vpop.eup %2275  ;;  %v1934_v24 = vsel %vm1933_vm14, %v2266_v15, %v1930_v40  ;;  %v1940_v46 = vmul.f32 %v2268_v29, %v1939_v34  ;;  %v1957_v48 = vmul.f32 %v2272_v59, %v1956_v30  ;;  %v1966_v43 = vmul.f32 %v2875_v1, %v2864_v16 }
 0x72c   : > { %v2005_v52 = vmul.f32 %v1934_v24, %v2808_v23  ;;  %v1950_v45 = vmul.f32 %v2270_v42, %v1949_v60  ;;  %v1976_v28 = vmul.f32 %v2276_v26, %v2866_v22  ;;  %2279 = vrsqrt.f32 %v2885_v54 }
 0x72d   : > { %v1944_v62 = vsel %vm1943_vm15, %v2268_v29, %v1940_v46  ;;  %v1958_v63 = vmul.f32 0.5, %v1957_v48  ;;  %v1967_v38 = vmul.f32 %v2875_v1, %v1966_v43  ;;  %vm1972_vm7 = vweird.f32 %v2875_v1 }
 0x72e   : > { %v2017_v31 = vmul.f32 %v2880_v50, %v2005_v52  ;;  %v2006_v23 = vmul.f32 %v1944_v62, %v2814_v0  ;;  %v1954_v14 = vsel %vm1953_vm5, %v2270_v42, %v1950_v45  ;;  %v1977_v19 = vmul.f32 %v2276_v26, %v1976_v28  ;;  %vm1973_vm1 = vmor %vm1971_vm10, %vm1972_vm7 }
 0x72f   : > { %v2007_v61 = vmul.f32 %v1954_v14, %v2812_v25  ;;  %v1959_v4 = vsub.f32 1.5, %v1958_v63  ;;  %v1968_v3 = vmul.f32 0.5, %v1967_v38  ;;  %vm1982_vm0 = vweird.f32 %v2276_v26 }
 0x730   : > { %v2278_v2 = vpop.eup %2277  ;;  %v2029_v13 = vadd.f32 %v2892_v18, %v2017_v31  ;;  %v2018_v0 = vmul.f32 %v2880_v50, %v2006_v23  ;;  %v1978_v6 = vmul.f32 0.5, %v1977_v19  ;;  %vm1983_vm11 = vmor %vm1981_vm8, %vm1982_vm0  ;;  %vm2001_vm15 = vweird.f32 %v2885_v54 }
 0x731   : > { %v2019_v5 = vmul.f32 %v2880_v50, %v2007_v61  ;;  %v1960_v20 = vmul.f32 %v2272_v59, %v1959_v4  ;;  %v1969_v12 = vsub.f32 1.5, %v1968_v3  ;;  %v1986_v56 = vmul.f32 %v2278_v2, %v2871_v21 }
 0x732   : > { %2037 = vst.msk [vmem:[%s2909_s20] sm:$0x3] %vm1829_vm2, %v2029_v13  ;;  %v2030_v25 = vadd.f32 %v2892_v18, %v2018_v0  ;;  %v1979_v15 = vsub.f32 1.5, %v1978_v6  ;;  %v2280_v7 = vpop.eup %2279  ;;  %vm1992_vm12 = vweird.f32 %v2278_v2 }
 0x733   : > { %v2031_v27 = vadd.f32 %v2892_v18, %v2019_v5  ;;  %v1964_v8 = vsel %vm1963_vm9, %v2272_v59, %v1960_v20  ;;  %v1970_v9 = vmul.f32 %v2875_v1, %v1969_v12  ;;  %v1987_v29 = vmul.f32 %v2278_v2, %v1986_v56  ;;  %vm1993_vm14 = vmor %vm1991_vm13, %vm1992_vm12 }
 0x734   : > { %2038 = vst.msk [vmem:[%s2909_s20 + $0x2] sm:$0x3] %vm1829_vm2, %v2030_v25  ;;  %v2008_v42 = vmul.f32 %v1964_v8, %v2826_v58  ;;  %v1980_v51 = vmul.f32 %v2276_v26, %v1979_v15  ;;  %v1996_v58 = vmul.f32 %v2280_v7, %v2885_v54  ;;  %vm2002_vm3 = vweird.f32 %v2280_v7 }
 0x735   : > { %2039 = vst.msk [vmem:[%s2909_s20 + $0x4] sm:$0x3] %vm1829_vm2, %v2031_v27  ;;  %v1974_v16 = vsel %vm1973_vm1, %v2875_v1, %v1970_v9  ;;  %v1988_v41 = vmul.f32 0.5, %v1987_v29  ;;  %vm2003_vm4 = vmor %vm2001_vm15, %vm2002_vm3 }
 0x736   : > { %v2020_v10 = vmul.f32 %v2880_v50, %v2008_v42  ;;  %v2009_v11 = vmul.f32 %v1974_v16, %v2832_v49  ;;  %v1984_v55 = vsel %vm1983_vm11, %v2276_v26, %v1980_v51  ;;  %v1997_v33 = vmul.f32 %v2280_v7, %v1996_v58 }
 0x737   : > { %v2010_v32 = vmul.f32 %v1984_v55, %v2830_v39  ;;  %v1989_v53 = vsub.f32 1.5, %v1988_v41 }
 0x738   : > { %v2032_v22 = vadd.f32 %v2892_v18, %v2020_v10  ;;  %v2021_v17 = vmul.f32 %v2880_v50, %v2009_v11  ;;  %v1998_v39 = vmul.f32 0.5, %v1997_v33 }
 0x739   : > { %v2022_v57 = vmul.f32 %v2880_v50, %v2010_v32  ;;  %v1990_v35 = vmul.f32 %v2278_v2, %v1989_v53 }
 0x73a   : > { %2040 = vst.msk [vmem:[%s2909_s20 + $0x6] sm:$0x3] %vm1829_vm2, %v2032_v22  ;;  %v2033_v49 = vadd.f32 %v2892_v18, %v2021_v17  ;;  %v1999_v40 = vsub.f32 1.5, %v1998_v39 }
 0x73b   : > { %v2034_v59 = vadd.f32 %v2892_v18, %v2022_v57  ;;  %v1994_v37 = vsel %vm1993_vm14, %v2278_v2, %v1990_v35 }
 0x73c   : > { %2041 = vst.msk [vmem:[%s2909_s20 + $0x8] sm:$0x3] %vm1829_vm2, %v2033_v49  ;;  %v2011_v36 = vmul.f32 %v1994_v37, %v2844_v47  ;;  %v2000_v34 = vmul.f32 %v2280_v7, %v1999_v40 }
 0x73d   : > { %2042 = vst.msk [vmem:[%s2909_s20 + $0xa] sm:$0x3] %vm1829_vm2, %v2034_v59 }
 0x73e   : > { %v2023_v21 = vmul.f32 %v2880_v50, %v2011_v36  ;;  %v2004_v1 = vsel %vm2003_vm4, %v2280_v7, %v2000_v34 }
 0x73f   : > { %v2012_v60 = vmul.f32 %v2004_v1, %v2847_v44 }
 0x740   : > { %v2035_v30 = vadd.f32 %v2892_v18, %v2023_v21 }
 0x741   : > { %v2024_v26 = vmul.f32 %v2880_v50, %v2012_v60 }
 0x742   : > { %2043 = vst.msk [vmem:[%s2909_s20 + $0xc] sm:$0x3] %vm1829_vm2, %v2035_v30 }
 0x743   : > { %v2036_v47 = vadd.f32 %v2892_v18, %v2024_v26 }
 0x745   : > { %2044 = vst.msk [vmem:[%s2909_s20 + $0xe] sm:$0x3] %vm1829_vm2, %v2036_v47 }
 0x746 PF: > { %s17_s24 = sadd.s32 1, %s2287_s24  }
 0x747   : > { %p14_p4 = scmp.ge.s32.totalorder %s17_s24, 4  }
 0x749   :  { %16 = sbr.rel (!%p14_p4) target bundleno = 1 (0x1), region = 92 }

</bundles_post_ra>
